<compile_context>
chip_gen: v7x
topology: tpu7x:2x2x1
jax: 0.10.0
libtpu: 0.0.40
codegen_flags: <defaults>
</compile_context>

<pallas_src>
import functools

import jax
import jax.numpy as jnp
from jax.experimental import pallas as pl
from jax.experimental.pallas import tpu as pltpu

EMBED = 256
FF = 512
NUM_LAYERS = 3
LN_EPS = 1e-5
HEAD_LANES = 128  # padded, lane-dense width of the fused head output


def _layernorm(x, gamma, beta):
    mu = jnp.mean(x, axis=-1, keepdims=True)
    var = jnp.mean((x - mu) ** 2, axis=-1, keepdims=True)
    return (x - mu) * jax.lax.rsqrt(var + LN_EPS) * gamma + beta


def _mm(x, w_bf16, b_f32):
    # MXU-native bf16 x bf16 -> f32 accumulate; activations are quantized only
    # at the MXU input, all elementwise / LayerNorm math stays f32.
    return jnp.dot(x.astype(jnp.bfloat16), w_bf16,
                   preferred_element_type=jnp.float32) + b_f32


def policy_kernel(action_dim,
                  obs_ref, emb_w_ref, emb_b_ref,
                  wvo_ref, bvo_ref,
                  w1_ref, b1_ref, w2_ref, b2_ref,
                  ln_g_ref, ln_b_ref,
                  hw1_ref, hb1_ref, hw2_ref, hb2_ref, hw3_ref, hb3_ref,
                  out_ref):
    # --- encoder embedding: Linear(input_dim, 256); dropout = identity ---
    x = _mm(obs_ref[...], emb_w_ref[...], emb_b_ref[...])

    # --- 3 transformer blocks (statically unrolled) ---
    for l in range(NUM_LAYERS):
        # seq_len==1 attention, V/O projections pre-fused: attn = x @ Wvo + bvo
        attn = _mm(x, wvo_ref[l], bvo_ref[l])
        out1 = _layernorm(x + attn, ln_g_ref[2 * l], ln_b_ref[2 * l])
        h = jnp.maximum(_mm(out1, w1_ref[l], b1_ref[l]), 0.0)
        ffn = _mm(h, w2_ref[l], b2_ref[l])
        x = _layernorm(out1 + ffn, ln_g_ref[2 * l + 1], ln_b_ref[2 * l + 1])

    # --- fused policy/value heads -> single lane-dense (B, 128) slab ---
    h = jnp.maximum(_mm(x, hw1_ref[...], hb1_ref[...]), 0.0)   # (B, 256)
    h = jnp.maximum(_mm(h, hw2_ref[...], hb2_ref[...]), 0.0)   # (B, 128)
    z = _mm(h, hw3_ref[...], hb3_ref[...])                     # (B, 128)
    lane = jax.lax.broadcasted_iota(jnp.int32, z.shape, 1)
    # sigmoid on policy lanes, identity on the value lane (and zero padding).
    out_ref[...] = jnp.where(lane < action_dim, jax.nn.sigmoid(z), z)


def _init_linear(key, in_dim, out_dim):
    """Deterministic PyTorch-style uniform init; weight returned as (in, out)."""
    kw, kb = jax.random.split(key)
    bound = 1.0 / jnp.sqrt(jnp.float32(in_dim))
    w = jax.random.uniform(kw, (in_dim, out_dim), jnp.float32, -bound, bound)
    b = jax.random.uniform(kb, (1, out_dim), jnp.float32, -bound, bound)
    return w, b


def init_raw_params(key, input_dim, action_dim):
    """Raw f32 parameters mirroring the PyTorch module layout."""
    keys = iter(jax.random.split(key, 64))
    raw = {}
    raw["emb_w"], raw["emb_b"] = _init_linear(next(keys), input_dim, EMBED)
    for name in ("wv", "bv", "wo", "bo", "w1", "b1", "w2", "b2"):
        raw[name] = []
    for _ in range(NUM_LAYERS):
        w, b = _init_linear(next(keys), EMBED, EMBED)   # v-projection slice of in_proj
        raw["wv"].append(w); raw["bv"].append(b)
        w, b = _init_linear(next(keys), EMBED, EMBED)   # attention out_proj
        raw["wo"].append(w); raw["bo"].append(b)
        w, b = _init_linear(next(keys), EMBED, FF)      # ffn linear 1
        raw["w1"].append(w); raw["b1"].append(b)
        w, b = _init_linear(next(keys), FF, EMBED)      # ffn linear 2
        raw["w2"].append(w); raw["b2"].append(b)
    # layernorm1/layernorm2 of each block, stored once: index 2*l and 2*l+1.
    raw["ln_g"] = jnp.ones((2 * NUM_LAYERS, 1, EMBED), jnp.float32)
    raw["ln_b"] = jnp.zeros((2 * NUM_LAYERS, 1, EMBED), jnp.float32)
    raw["pw1"], raw["pb1"] = _init_linear(next(keys), EMBED, 128)
    raw["pw2"], raw["pb2"] = _init_linear(next(keys), 128, 64)
    raw["pw3"], raw["pb3"] = _init_linear(next(keys), 64, action_dim)
    raw["vw1"], raw["vb1"] = _init_linear(next(keys), EMBED, 128)
    raw["vw2"], raw["vb2"] = _init_linear(next(keys), 128, 64)
    raw["vw3"], raw["vb3"] = _init_linear(next(keys), 64, 1)
    return raw


def pack_params(raw, action_dim):
    """Fuse V/O projections and the two heads; cast weight matrices to bf16."""
    bf16 = jnp.bfloat16
    # Attention V/O fusion (exact algebra, done in f32 before the bf16 cast).
    wvo = jnp.stack([raw["wv"][l] @ raw["wo"][l] for l in range(NUM_LAYERS)])
    bvo = jnp.stack([raw["bv"][l] @ raw["wo"][l] + raw["bo"][l]
                     for l in range(NUM_LAYERS)])                     # (3,1,256)
    w1 = jnp.stack(raw["w1"]); b1 = jnp.stack(raw["b1"])              # (3,256,512)/(3,1,512)
    w2 = jnp.stack(raw["w2"]); b2 = jnp.stack(raw["b2"])              # (3,512,256)/(3,1,256)

    # Fused heads: policy path in the low lanes, value path in the high lanes.
    hw1 = jnp.concatenate([raw["pw1"], raw["vw1"]], axis=1)           # (256,256)
    hb1 = jnp.concatenate([raw["pb1"], raw["vb1"]], axis=1)           # (1,256)
    hw2 = jnp.zeros((256, 128), jnp.float32)
    hw2 = hw2.at[:128, :64].set(raw["pw2"]).at[128:, 64:].set(raw["vw2"])
    hb2 = jnp.concatenate([raw["pb2"], raw["vb2"]], axis=1)           # (1,128)
    hw3 = jnp.zeros((128, HEAD_LANES), jnp.float32)
    hw3 = hw3.at[:64, :action_dim].set(raw["pw3"])
    hw3 = hw3.at[64:, action_dim:action_dim + 1].set(raw["vw3"])
    hb3 = jnp.zeros((1, HEAD_LANES), jnp.float32)
    hb3 = hb3.at[:, :action_dim].set(raw["pb3"])
    hb3 = hb3.at[:, action_dim:action_dim + 1].set(raw["vb3"])

    return [
        raw["emb_w"].astype(bf16), raw["emb_b"],
        wvo.astype(bf16), bvo,
        w1.astype(bf16), b1, w2.astype(bf16), b2,
        raw["ln_g"], raw["ln_b"],
        hw1.astype(bf16), hb1, hw2.astype(bf16), hb2, hw3.astype(bf16), hb3,
    ]


@functools.partial(jax.jit, static_argnames=("action_dim",))
def custom_transformer_policy(obs, packed_params, *, action_dim):
    B = obs.shape[0]
    vmem = pl.BlockSpec(memory_space=pltpu.MemorySpace.VMEM)
    # Single gridless call: ~2.3 MB bf16 weights + tiny activations, all VMEM
    # resident.  (A batch grid + "parallel" dimension_semantics only pays off
    # for B >> 8; at B=8 the whole forward is one short serial MXU chain.)
    out = pl.pallas_call(
        functools.partial(policy_kernel, action_dim),
        out_shape=jax.ShapeDtypeStruct((B, HEAD_LANES), jnp.float32),
        in_specs=[vmem] * (1 + len(packed_params)),
        out_specs=vmem,
        compiler_params=pltpu.CompilerParams(vmem_limit_bytes=16 << 20),
    )(obs, *packed_params)
    policy = out[:, :action_dim]
    value = out[:, action_dim:action_dim + 1]
    return policy, value


# ----------------------------- references ----------------------------------
def reference_forward_packed(obs, packed, action_dim):
    """Pure-JAX mirror of the exact kernel math (bf16 weights, fused layers)."""
    (emb_w, emb_b, wvo, bvo, w1, b1, w2, b2, ln_g, ln_b,
     hw1, hb1, hw2, hb2, hw3, hb3) = packed
    x = _mm(obs, emb_w, emb_b)
    for l in range(NUM_LAYERS):
        attn = _mm(x, wvo[l], bvo[l])
        out1 = _layernorm(x + attn, ln_g[2 * l], ln_b[2 * l])
        h = jnp.maximum(_mm(out1, w1[l], b1[l]), 0.0)
        ffn = _mm(h, w2[l], b2[l])
        x = _layernorm(out1 + ffn, ln_g[2 * l + 1], ln_b[2 * l + 1])
    h = jnp.maximum(_mm(x, hw1, hb1), 0.0)
    h = jnp.maximum(_mm(h, hw2, hb2), 0.0)
    z = _mm(h, hw3, hb3)
    return jax.nn.sigmoid(z[:, :action_dim]), z[:, action_dim:action_dim + 1]


def reference_forward_original(obs, raw):
    """Original (unfused, f32) forward semantics of the PyTorch module."""
    x = obs @ raw["emb_w"] + raw["emb_b"]
    for l in range(NUM_LAYERS):
        attn = (x @ raw["wv"][l] + raw["bv"][l]) @ raw["wo"][l] + raw["bo"][l]
        out1 = _layernorm(x + attn, raw["ln_g"][2 * l], raw["ln_b"][2 * l])
        ffn = jnp.maximum(out1 @ raw["w1"][l] + raw["b1"][l], 0.0) @ raw["w2"][l] + raw["b2"][l]
        x = _layernorm(out1 + ffn, raw["ln_g"][2 * l + 1], raw["ln_b"][2 * l + 1])
    p = jnp.maximum(x @ raw["pw1"] + raw["pb1"], 0.0)
    p = jnp.maximum(p @ raw["pw2"] + raw["pb2"], 0.0)
    p = jax.nn.sigmoid(p @ raw["pw3"] + raw["pb3"])
    v = jnp.maximum(x @ raw["vw1"] + raw["vb1"], 0.0)
    v = jnp.maximum(v @ raw["vw2"] + raw["vb2"], 0.0)
    v = v @ raw["vw3"] + raw["vb3"]
    return p, v


if __name__ == "__main__":
    B = 8            # number of observations (batch)
    INPUT_DIM = 32   # observation_space.shape[0]
    ACTION_DIM = 4   # action_space.shape[0]

    key = jax.random.PRNGKey(0)
    k_obs, k_params = jax.random.split(key)
    obs = jax.random.normal(k_obs, (B, INPUT_DIM), jnp.float32)

    raw = init_raw_params(k_params, INPUT_DIM, ACTION_DIM)
    packed = pack_params(raw, ACTION_DIM)

    policy, value = custom_transformer_policy(obs, packed, action_dim=ACTION_DIM)
    jax.block_until_ready((policy, value))
    assert policy.shape == (B, ACTION_DIM) and value.shape == (B, 1)

    # Tight check: kernel vs identical-math JAX reference (same bf16 weights).
    ref_p, ref_v = reference_forward_packed(obs, packed, ACTION_DIM)
    assert jnp.allclose(policy, ref_p, rtol=2e-3, atol=2e-3)
    assert jnp.allclose(value, ref_v, rtol=2e-3, atol=2e-3)

    # Loose check: original f32 unfused semantics (bf16 quantization + fusion
    # reordering only perturb results at the ~1e-3..1e-2 level).
    f32_p, f32_v = reference_forward_original(obs, raw)
    assert jnp.allclose(policy, f32_p, rtol=3e-2, atol=3e-2)
    assert jnp.allclose(value, f32_v, rtol=3e-2, atol=3e-2)

    print("KERNEL_OK")
</pallas_src>

<mosaic_0001>
module attributes {stable_mosaic.version = 11 : i64} {
  func.func @policy_kernel(%arg0: memref<8x32xf32, #tpu.memory_space<vmem>>, %arg1: memref<32x256xbf16, #tpu.memory_space<vmem>>, %arg2: memref<1x256xf32, #tpu.memory_space<vmem>>, %arg3: memref<3x256x256xbf16, #tpu.memory_space<vmem>>, %arg4: memref<3x1x256xf32, #tpu.memory_space<vmem>>, %arg5: memref<3x256x512xbf16, #tpu.memory_space<vmem>>, %arg6: memref<3x1x512xf32, #tpu.memory_space<vmem>>, %arg7: memref<3x512x256xbf16, #tpu.memory_space<vmem>>, %arg8: memref<3x1x256xf32, #tpu.memory_space<vmem>>, %arg9: memref<6x1x256xf32, #tpu.memory_space<vmem>>, %arg10: memref<6x1x256xf32, #tpu.memory_space<vmem>>, %arg11: memref<256x256xbf16, #tpu.memory_space<vmem>>, %arg12: memref<1x256xf32, #tpu.memory_space<vmem>>, %arg13: memref<256x128xbf16, #tpu.memory_space<vmem>>, %arg14: memref<1x128xf32, #tpu.memory_space<vmem>>, %arg15: memref<128x128xbf16, #tpu.memory_space<vmem>>, %arg16: memref<1x128xf32, #tpu.memory_space<vmem>>, %arg17: memref<8x128xf32, #tpu.memory_space<vmem>>) attributes {dimension_semantics = [], scalar_prefetch = 0 : i64, scratch_operands = 0 : i64, tpu.core_type = #tpu.core_type<tc>} {
    %c0 = arith.constant 0 : index
    %c0_0 = arith.constant 0 : index
    %0 = vector.load %arg0[%c0, %c0_0] : memref<8x32xf32, #tpu.memory_space<vmem>>, vector<8x32xf32>
    %c0_1 = arith.constant 0 : index
    %c0_2 = arith.constant 0 : index
    %1 = vector.load %arg1[%c0_1, %c0_2] : memref<32x256xbf16, #tpu.memory_space<vmem>>, vector<32x256xbf16>
    %c0_3 = arith.constant 0 : index
    %c0_4 = arith.constant 0 : index
    %2 = vector.load %arg2[%c0_3, %c0_4] : memref<1x256xf32, #tpu.memory_space<vmem>>, vector<1x256xf32>
    %3 = arith.truncf %0 : vector<8x32xf32> to vector<8x32xbf16>
    %cst = arith.constant dense<0.000000e+00> : vector<8x256xf32>
    %4 = tpu.matmul %3, %1, %cst {dimension_numbers = #tpu.dot_dimension_numbers<[1], [0], [0], [1], [0, 0, 1, 1], [], []>} : vector<8x32xbf16>, vector<32x256xbf16>, vector<8x256xf32> -> vector<8x256xf32>
    %5 = vector.broadcast %2 : vector<1x256xf32> to vector<8x256xf32>
    %6 = arith.addf %4, %5 : vector<8x256xf32>
    %c0_5 = arith.constant 0 : index
    %c0_6 = arith.constant 0 : index
    %c0_7 = arith.constant 0 : index
    %7 = vector.load %arg3[%c0_5, %c0_6, %c0_7] : memref<3x256x256xbf16, #tpu.memory_space<vmem>>, vector<1x256x256xbf16>
    %8 = vector.shape_cast %7 : vector<1x256x256xbf16> to vector<256x256xbf16>
    %c0_8 = arith.constant 0 : index
    %c0_9 = arith.constant 0 : index
    %c0_10 = arith.constant 0 : index
    %9 = vector.load %arg4[%c0_8, %c0_9, %c0_10] : memref<3x1x256xf32, #tpu.memory_space<vmem>>, vector<1x1x256xf32>
    %10 = vector.shape_cast %9 : vector<1x1x256xf32> to vector<1x256xf32>
    %11 = arith.truncf %6 : vector<8x256xf32> to vector<8x256xbf16>
    %cst_11 = arith.constant dense<0.000000e+00> : vector<8x256xf32>
    %12 = tpu.matmul %11, %8, %cst_11 {dimension_numbers = #tpu.dot_dimension_numbers<[1], [0], [0], [1], [0, 0, 1, 1], [], []>} : vector<8x256xbf16>, vector<256x256xbf16>, vector<8x256xf32> -> vector<8x256xf32>
    %13 = vector.broadcast %10 : vector<1x256xf32> to vector<8x256xf32>
    %14 = arith.addf %12, %13 : vector<8x256xf32>
    %15 = arith.addf %6, %14 : vector<8x256xf32>
    %c0_12 = arith.constant 0 : index
    %c0_13 = arith.constant 0 : index
    %c0_14 = arith.constant 0 : index
    %16 = vector.load %arg9[%c0_12, %c0_13, %c0_14] : memref<6x1x256xf32, #tpu.memory_space<vmem>>, vector<1x1x256xf32>
    %17 = vector.shape_cast %16 : vector<1x1x256xf32> to vector<1x256xf32>
    %c0_15 = arith.constant 0 : index
    %c0_16 = arith.constant 0 : index
    %c0_17 = arith.constant 0 : index
    %18 = vector.load %arg10[%c0_15, %c0_16, %c0_17] : memref<6x1x256xf32, #tpu.memory_space<vmem>>, vector<1x1x256xf32>
    %19 = vector.shape_cast %18 : vector<1x1x256xf32> to vector<1x256xf32>
    %cst_18 = arith.constant dense<0.000000e+00> : vector<8xf32>
    %20 = vector.multi_reduction <add>, %15, %cst_18 [1] : vector<8x256xf32> to vector<8xf32>
    %21 = vector.shape_cast %20 : vector<8xf32> to vector<8x1xf32>
    %cst_19 = arith.constant 2.560000e+02 : f32
    %22 = vector.broadcast %cst_19 : f32 to vector<8x1xf32>
    %23 = arith.divf %21, %22 : vector<8x1xf32>
    %24 = vector.broadcast %23 : vector<8x1xf32> to vector<8x256xf32>
    %25 = arith.subf %15, %24 : vector<8x256xf32>
    %26 = arith.mulf %25, %25 : vector<8x256xf32>
    %cst_20 = arith.constant dense<0.000000e+00> : vector<8xf32>
    %27 = vector.multi_reduction <add>, %26, %cst_20 [1] : vector<8x256xf32> to vector<8xf32>
    %28 = vector.shape_cast %27 : vector<8xf32> to vector<8x1xf32>
    %cst_21 = arith.constant 2.560000e+02 : f32
    %29 = vector.broadcast %cst_21 : f32 to vector<8x1xf32>
    %30 = arith.divf %28, %29 : vector<8x1xf32>
    %31 = vector.broadcast %23 : vector<8x1xf32> to vector<8x256xf32>
    %32 = arith.subf %15, %31 : vector<8x256xf32>
    %cst_22 = arith.constant 9.99999974E-6 : f32
    %33 = vector.broadcast %cst_22 : f32 to vector<8x1xf32>
    %34 = arith.addf %30, %33 : vector<8x1xf32>
    %35 = math.rsqrt %34 : vector<8x1xf32>
    %36 = vector.broadcast %35 : vector<8x1xf32> to vector<8x256xf32>
    %37 = arith.mulf %32, %36 : vector<8x256xf32>
    %38 = vector.broadcast %17 : vector<1x256xf32> to vector<8x256xf32>
    %39 = arith.mulf %37, %38 : vector<8x256xf32>
    %40 = vector.broadcast %19 : vector<1x256xf32> to vector<8x256xf32>
    %41 = arith.addf %39, %40 : vector<8x256xf32>
    %c0_23 = arith.constant 0 : index
    %c0_24 = arith.constant 0 : index
    %c0_25 = arith.constant 0 : index
    %42 = vector.load %arg5[%c0_23, %c0_24, %c0_25] : memref<3x256x512xbf16, #tpu.memory_space<vmem>>, vector<1x256x512xbf16>
    %43 = vector.shape_cast %42 : vector<1x256x512xbf16> to vector<256x512xbf16>
    %c0_26 = arith.constant 0 : index
    %c0_27 = arith.constant 0 : index
    %c0_28 = arith.constant 0 : index
    %44 = vector.load %arg6[%c0_26, %c0_27, %c0_28] : memref<3x1x512xf32, #tpu.memory_space<vmem>>, vector<1x1x512xf32>
    %45 = vector.shape_cast %44 : vector<1x1x512xf32> to vector<1x512xf32>
    %46 = arith.truncf %41 : vector<8x256xf32> to vector<8x256xbf16>
    %cst_29 = arith.constant dense<0.000000e+00> : vector<8x512xf32>
    %47 = tpu.matmul %46, %43, %cst_29 {dimension_numbers = #tpu.dot_dimension_numbers<[1], [0], [0], [1], [0, 0, 1, 1], [], []>} : vector<8x256xbf16>, vector<256x512xbf16>, vector<8x512xf32> -> vector<8x512xf32>
    %48 = vector.broadcast %45 : vector<1x512xf32> to vector<8x512xf32>
    %49 = arith.addf %47, %48 : vector<8x512xf32>
    %cst_30 = arith.constant 0.000000e+00 : f32
    %50 = vector.broadcast %cst_30 : f32 to vector<8x512xf32>
    %51 = arith.maximumf %49, %50 : vector<8x512xf32>
    %c0_31 = arith.constant 0 : index
    %c0_32 = arith.constant 0 : index
    %c0_33 = arith.constant 0 : index
    %52 = vector.load %arg7[%c0_31, %c0_32, %c0_33] : memref<3x512x256xbf16, #tpu.memory_space<vmem>>, vector<1x512x256xbf16>
    %53 = vector.shape_cast %52 : vector<1x512x256xbf16> to vector<512x256xbf16>
    %c0_34 = arith.constant 0 : index
    %c0_35 = arith.constant 0 : index
    %c0_36 = arith.constant 0 : index
    %54 = vector.load %arg8[%c0_34, %c0_35, %c0_36] : memref<3x1x256xf32, #tpu.memory_space<vmem>>, vector<1x1x256xf32>
    %55 = vector.shape_cast %54 : vector<1x1x256xf32> to vector<1x256xf32>
    %56 = arith.truncf %51 : vector<8x512xf32> to vector<8x512xbf16>
    %cst_37 = arith.constant dense<0.000000e+00> : vector<8x256xf32>
    %57 = tpu.matmul %56, %53, %cst_37 {dimension_numbers = #tpu.dot_dimension_numbers<[1], [0], [0], [1], [0, 0, 1, 1], [], []>} : vector<8x512xbf16>, vector<512x256xbf16>, vector<8x256xf32> -> vector<8x256xf32>
    %58 = vector.broadcast %55 : vector<1x256xf32> to vector<8x256xf32>
    %59 = arith.addf %57, %58 : vector<8x256xf32>
    %60 = arith.addf %41, %59 : vector<8x256xf32>
    %c1 = arith.constant 1 : index
    %c0_38 = arith.constant 0 : index
    %c0_39 = arith.constant 0 : index
    %61 = vector.load %arg9[%c1, %c0_38, %c0_39] : memref<6x1x256xf32, #tpu.memory_space<vmem>>, vector<1x1x256xf32>
    %62 = vector.shape_cast %61 : vector<1x1x256xf32> to vector<1x256xf32>
    %c1_40 = arith.constant 1 : index
    %c0_41 = arith.constant 0 : index
    %c0_42 = arith.constant 0 : index
    %63 = vector.load %arg10[%c1_40, %c0_41, %c0_42] : memref<6x1x256xf32, #tpu.memory_space<vmem>>, vector<1x1x256xf32>
    %64 = vector.shape_cast %63 : vector<1x1x256xf32> to vector<1x256xf32>
    %cst_43 = arith.constant dense<0.000000e+00> : vector<8xf32>
    %65 = vector.multi_reduction <add>, %60, %cst_43 [1] : vector<8x256xf32> to vector<8xf32>
    %66 = vector.shape_cast %65 : vector<8xf32> to vector<8x1xf32>
    %cst_44 = arith.constant 2.560000e+02 : f32
    %67 = vector.broadcast %cst_44 : f32 to vector<8x1xf32>
    %68 = arith.divf %66, %67 : vector<8x1xf32>
    %69 = vector.broadcast %68 : vector<8x1xf32> to vector<8x256xf32>
    %70 = arith.subf %60, %69 : vector<8x256xf32>
    %71 = arith.mulf %70, %70 : vector<8x256xf32>
    %cst_45 = arith.constant dense<0.000000e+00> : vector<8xf32>
    %72 = vector.multi_reduction <add>, %71, %cst_45 [1] : vector<8x256xf32> to vector<8xf32>
    %73 = vector.shape_cast %72 : vector<8xf32> to vector<8x1xf32>
    %cst_46 = arith.constant 2.560000e+02 : f32
    %74 = vector.broadcast %cst_46 : f32 to vector<8x1xf32>
    %75 = arith.divf %73, %74 : vector<8x1xf32>
    %76 = vector.broadcast %68 : vector<8x1xf32> to vector<8x256xf32>
    %77 = arith.subf %60, %76 : vector<8x256xf32>
    %cst_47 = arith.constant 9.99999974E-6 : f32
    %78 = vector.broadcast %cst_47 : f32 to vector<8x1xf32>
    %79 = arith.addf %75, %78 : vector<8x1xf32>
    %80 = math.rsqrt %79 : vector<8x1xf32>
    %81 = vector.broadcast %80 : vector<8x1xf32> to vector<8x256xf32>
    %82 = arith.mulf %77, %81 : vector<8x256xf32>
    %83 = vector.broadcast %62 : vector<1x256xf32> to vector<8x256xf32>
    %84 = arith.mulf %82, %83 : vector<8x256xf32>
    %85 = vector.broadcast %64 : vector<1x256xf32> to vector<8x256xf32>
    %86 = arith.addf %84, %85 : vector<8x256xf32>
    %c1_48 = arith.constant 1 : index
    %c0_49 = arith.constant 0 : index
    %c0_50 = arith.constant 0 : index
    %87 = vector.load %arg3[%c1_48, %c0_49, %c0_50] : memref<3x256x256xbf16, #tpu.memory_space<vmem>>, vector<1x256x256xbf16>
    %88 = vector.shape_cast %87 : vector<1x256x256xbf16> to vector<256x256xbf16>
    %c1_51 = arith.constant 1 : index
    %c0_52 = arith.constant 0 : index
    %c0_53 = arith.constant 0 : index
    %89 = vector.load %arg4[%c1_51, %c0_52, %c0_53] : memref<3x1x256xf32, #tpu.memory_space<vmem>>, vector<1x1x256xf32>
    %90 = vector.shape_cast %89 : vector<1x1x256xf32> to vector<1x256xf32>
    %91 = arith.truncf %86 : vector<8x256xf32> to vector<8x256xbf16>
    %cst_54 = arith.constant dense<0.000000e+00> : vector<8x256xf32>
    %92 = tpu.matmul %91, %88, %cst_54 {dimension_numbers = #tpu.dot_dimension_numbers<[1], [0], [0], [1], [0, 0, 1, 1], [], []>} : vector<8x256xbf16>, vector<256x256xbf16>, vector<8x256xf32> -> vector<8x256xf32>
    %93 = vector.broadcast %90 : vector<1x256xf32> to vector<8x256xf32>
    %94 = arith.addf %92, %93 : vector<8x256xf32>
    %95 = arith.addf %86, %94 : vector<8x256xf32>
    %c2 = arith.constant 2 : index
    %c0_55 = arith.constant 0 : index
    %c0_56 = arith.constant 0 : index
    %96 = vector.load %arg9[%c2, %c0_55, %c0_56] : memref<6x1x256xf32, #tpu.memory_space<vmem>>, vector<1x1x256xf32>
    %97 = vector.shape_cast %96 : vector<1x1x256xf32> to vector<1x256xf32>
    %c2_57 = arith.constant 2 : index
    %c0_58 = arith.constant 0 : index
    %c0_59 = arith.constant 0 : index
    %98 = vector.load %arg10[%c2_57, %c0_58, %c0_59] : memref<6x1x256xf32, #tpu.memory_space<vmem>>, vector<1x1x256xf32>
    %99 = vector.shape_cast %98 : vector<1x1x256xf32> to vector<1x256xf32>
    %cst_60 = arith.constant dense<0.000000e+00> : vector<8xf32>
    %100 = vector.multi_reduction <add>, %95, %cst_60 [1] : vector<8x256xf32> to vector<8xf32>
    %101 = vector.shape_cast %100 : vector<8xf32> to vector<8x1xf32>
    %cst_61 = arith.constant 2.560000e+02 : f32
    %102 = vector.broadcast %cst_61 : f32 to vector<8x1xf32>
    %103 = arith.divf %101, %102 : vector<8x1xf32>
    %104 = vector.broadcast %103 : vector<8x1xf32> to vector<8x256xf32>
    %105 = arith.subf %95, %104 : vector<8x256xf32>
    %106 = arith.mulf %105, %105 : vector<8x256xf32>
    %cst_62 = arith.constant dense<0.000000e+00> : vector<8xf32>
    %107 = vector.multi_reduction <add>, %106, %cst_62 [1] : vector<8x256xf32> to vector<8xf32>
    %108 = vector.shape_cast %107 : vector<8xf32> to vector<8x1xf32>
    %cst_63 = arith.constant 2.560000e+02 : f32
    %109 = vector.broadcast %cst_63 : f32 to vector<8x1xf32>
    %110 = arith.divf %108, %109 : vector<8x1xf32>
    %111 = vector.broadcast %103 : vector<8x1xf32> to vector<8x256xf32>
    %112 = arith.subf %95, %111 : vector<8x256xf32>
    %cst_64 = arith.constant 9.99999974E-6 : f32
    %113 = vector.broadcast %cst_64 : f32 to vector<8x1xf32>
    %114 = arith.addf %110, %113 : vector<8x1xf32>
    %115 = math.rsqrt %114 : vector<8x1xf32>
    %116 = vector.broadcast %115 : vector<8x1xf32> to vector<8x256xf32>
    %117 = arith.mulf %112, %116 : vector<8x256xf32>
    %118 = vector.broadcast %97 : vector<1x256xf32> to vector<8x256xf32>
    %119 = arith.mulf %117, %118 : vector<8x256xf32>
    %120 = vector.broadcast %99 : vector<1x256xf32> to vector<8x256xf32>
    %121 = arith.addf %119, %120 : vector<8x256xf32>
    %c1_65 = arith.constant 1 : index
    %c0_66 = arith.constant 0 : index
    %c0_67 = arith.constant 0 : index
    %122 = vector.load %arg5[%c1_65, %c0_66, %c0_67] : memref<3x256x512xbf16, #tpu.memory_space<vmem>>, vector<1x256x512xbf16>
    %123 = vector.shape_cast %122 : vector<1x256x512xbf16> to vector<256x512xbf16>
    %c1_68 = arith.constant 1 : index
    %c0_69 = arith.constant 0 : index
    %c0_70 = arith.constant 0 : index
    %124 = vector.load %arg6[%c1_68, %c0_69, %c0_70] : memref<3x1x512xf32, #tpu.memory_space<vmem>>, vector<1x1x512xf32>
    %125 = vector.shape_cast %124 : vector<1x1x512xf32> to vector<1x512xf32>
    %126 = arith.truncf %121 : vector<8x256xf32> to vector<8x256xbf16>
    %cst_71 = arith.constant dense<0.000000e+00> : vector<8x512xf32>
    %127 = tpu.matmul %126, %123, %cst_71 {dimension_numbers = #tpu.dot_dimension_numbers<[1], [0], [0], [1], [0, 0, 1, 1], [], []>} : vector<8x256xbf16>, vector<256x512xbf16>, vector<8x512xf32> -> vector<8x512xf32>
    %128 = vector.broadcast %125 : vector<1x512xf32> to vector<8x512xf32>
    %129 = arith.addf %127, %128 : vector<8x512xf32>
    %cst_72 = arith.constant 0.000000e+00 : f32
    %130 = vector.broadcast %cst_72 : f32 to vector<8x512xf32>
    %131 = arith.maximumf %129, %130 : vector<8x512xf32>
    %c1_73 = arith.constant 1 : index
    %c0_74 = arith.constant 0 : index
    %c0_75 = arith.constant 0 : index
    %132 = vector.load %arg7[%c1_73, %c0_74, %c0_75] : memref<3x512x256xbf16, #tpu.memory_space<vmem>>, vector<1x512x256xbf16>
    %133 = vector.shape_cast %132 : vector<1x512x256xbf16> to vector<512x256xbf16>
    %c1_76 = arith.constant 1 : index
    %c0_77 = arith.constant 0 : index
    %c0_78 = arith.constant 0 : index
    %134 = vector.load %arg8[%c1_76, %c0_77, %c0_78] : memref<3x1x256xf32, #tpu.memory_space<vmem>>, vector<1x1x256xf32>
    %135 = vector.shape_cast %134 : vector<1x1x256xf32> to vector<1x256xf32>
    %136 = arith.truncf %131 : vector<8x512xf32> to vector<8x512xbf16>
    %cst_79 = arith.constant dense<0.000000e+00> : vector<8x256xf32>
    %137 = tpu.matmul %136, %133, %cst_79 {dimension_numbers = #tpu.dot_dimension_numbers<[1], [0], [0], [1], [0, 0, 1, 1], [], []>} : vector<8x512xbf16>, vector<512x256xbf16>, vector<8x256xf32> -> vector<8x256xf32>
    %138 = vector.broadcast %135 : vector<1x256xf32> to vector<8x256xf32>
    %139 = arith.addf %137, %138 : vector<8x256xf32>
    %140 = arith.addf %121, %139 : vector<8x256xf32>
    %c3 = arith.constant 3 : index
    %c0_80 = arith.constant 0 : index
    %c0_81 = arith.constant 0 : index
    %141 = vector.load %arg9[%c3, %c0_80, %c0_81] : memref<6x1x256xf32, #tpu.memory_space<vmem>>, vector<1x1x256xf32>
    %142 = vector.shape_cast %141 : vector<1x1x256xf32> to vector<1x256xf32>
    %c3_82 = arith.constant 3 : index
    %c0_83 = arith.constant 0 : index
    %c0_84 = arith.constant 0 : index
    %143 = vector.load %arg10[%c3_82, %c0_83, %c0_84] : memref<6x1x256xf32, #tpu.memory_space<vmem>>, vector<1x1x256xf32>
    %144 = vector.shape_cast %143 : vector<1x1x256xf32> to vector<1x256xf32>
    %cst_85 = arith.constant dense<0.000000e+00> : vector<8xf32>
    %145 = vector.multi_reduction <add>, %140, %cst_85 [1] : vector<8x256xf32> to vector<8xf32>
    %146 = vector.shape_cast %145 : vector<8xf32> to vector<8x1xf32>
    %cst_86 = arith.constant 2.560000e+02 : f32
    %147 = vector.broadcast %cst_86 : f32 to vector<8x1xf32>
    %148 = arith.divf %146, %147 : vector<8x1xf32>
    %149 = vector.broadcast %148 : vector<8x1xf32> to vector<8x256xf32>
    %150 = arith.subf %140, %149 : vector<8x256xf32>
    %151 = arith.mulf %150, %150 : vector<8x256xf32>
    %cst_87 = arith.constant dense<0.000000e+00> : vector<8xf32>
    %152 = vector.multi_reduction <add>, %151, %cst_87 [1] : vector<8x256xf32> to vector<8xf32>
    %153 = vector.shape_cast %152 : vector<8xf32> to vector<8x1xf32>
    %cst_88 = arith.constant 2.560000e+02 : f32
    %154 = vector.broadcast %cst_88 : f32 to vector<8x1xf32>
    %155 = arith.divf %153, %154 : vector<8x1xf32>
    %156 = vector.broadcast %148 : vector<8x1xf32> to vector<8x256xf32>
    %157 = arith.subf %140, %156 : vector<8x256xf32>
    %cst_89 = arith.constant 9.99999974E-6 : f32
    %158 = vector.broadcast %cst_89 : f32 to vector<8x1xf32>
    %159 = arith.addf %155, %158 : vector<8x1xf32>
    %160 = math.rsqrt %159 : vector<8x1xf32>
    %161 = vector.broadcast %160 : vector<8x1xf32> to vector<8x256xf32>
    %162 = arith.mulf %157, %161 : vector<8x256xf32>
    %163 = vector.broadcast %142 : vector<1x256xf32> to vector<8x256xf32>
    %164 = arith.mulf %162, %163 : vector<8x256xf32>
    %165 = vector.broadcast %144 : vector<1x256xf32> to vector<8x256xf32>
    %166 = arith.addf %164, %165 : vector<8x256xf32>
    %c2_90 = arith.constant 2 : index
    %c0_91 = arith.constant 0 : index
    %c0_92 = arith.constant 0 : index
    %167 = vector.load %arg3[%c2_90, %c0_91, %c0_92] : memref<3x256x256xbf16, #tpu.memory_space<vmem>>, vector<1x256x256xbf16>
    %168 = vector.shape_cast %167 : vector<1x256x256xbf16> to vector<256x256xbf16>
    %c2_93 = arith.constant 2 : index
    %c0_94 = arith.constant 0 : index
    %c0_95 = arith.constant 0 : index
    %169 = vector.load %arg4[%c2_93, %c0_94, %c0_95] : memref<3x1x256xf32, #tpu.memory_space<vmem>>, vector<1x1x256xf32>
    %170 = vector.shape_cast %169 : vector<1x1x256xf32> to vector<1x256xf32>
    %171 = arith.truncf %166 : vector<8x256xf32> to vector<8x256xbf16>
    %cst_96 = arith.constant dense<0.000000e+00> : vector<8x256xf32>
    %172 = tpu.matmul %171, %168, %cst_96 {dimension_numbers = #tpu.dot_dimension_numbers<[1], [0], [0], [1], [0, 0, 1, 1], [], []>} : vector<8x256xbf16>, vector<256x256xbf16>, vector<8x256xf32> -> vector<8x256xf32>
    %173 = vector.broadcast %170 : vector<1x256xf32> to vector<8x256xf32>
    %174 = arith.addf %172, %173 : vector<8x256xf32>
    %175 = arith.addf %166, %174 : vector<8x256xf32>
    %c4 = arith.constant 4 : index
    %c0_97 = arith.constant 0 : index
    %c0_98 = arith.constant 0 : index
    %176 = vector.load %arg9[%c4, %c0_97, %c0_98] : memref<6x1x256xf32, #tpu.memory_space<vmem>>, vector<1x1x256xf32>
    %177 = vector.shape_cast %176 : vector<1x1x256xf32> to vector<1x256xf32>
    %c4_99 = arith.constant 4 : index
    %c0_100 = arith.constant 0 : index
    %c0_101 = arith.constant 0 : index
    %178 = vector.load %arg10[%c4_99, %c0_100, %c0_101] : memref<6x1x256xf32, #tpu.memory_space<vmem>>, vector<1x1x256xf32>
    %179 = vector.shape_cast %178 : vector<1x1x256xf32> to vector<1x256xf32>
    %cst_102 = arith.constant dense<0.000000e+00> : vector<8xf32>
    %180 = vector.multi_reduction <add>, %175, %cst_102 [1] : vector<8x256xf32> to vector<8xf32>
    %181 = vector.shape_cast %180 : vector<8xf32> to vector<8x1xf32>
    %cst_103 = arith.constant 2.560000e+02 : f32
    %182 = vector.broadcast %cst_103 : f32 to vector<8x1xf32>
    %183 = arith.divf %181, %182 : vector<8x1xf32>
    %184 = vector.broadcast %183 : vector<8x1xf32> to vector<8x256xf32>
    %185 = arith.subf %175, %184 : vector<8x256xf32>
    %186 = arith.mulf %185, %185 : vector<8x256xf32>
    %cst_104 = arith.constant dense<0.000000e+00> : vector<8xf32>
    %187 = vector.multi_reduction <add>, %186, %cst_104 [1] : vector<8x256xf32> to vector<8xf32>
    %188 = vector.shape_cast %187 : vector<8xf32> to vector<8x1xf32>
    %cst_105 = arith.constant 2.560000e+02 : f32
    %189 = vector.broadcast %cst_105 : f32 to vector<8x1xf32>
    %190 = arith.divf %188, %189 : vector<8x1xf32>
    %191 = vector.broadcast %183 : vector<8x1xf32> to vector<8x256xf32>
    %192 = arith.subf %175, %191 : vector<8x256xf32>
    %cst_106 = arith.constant 9.99999974E-6 : f32
    %193 = vector.broadcast %cst_106 : f32 to vector<8x1xf32>
    %194 = arith.addf %190, %193 : vector<8x1xf32>
    %195 = math.rsqrt %194 : vector<8x1xf32>
    %196 = vector.broadcast %195 : vector<8x1xf32> to vector<8x256xf32>
    %197 = arith.mulf %192, %196 : vector<8x256xf32>
    %198 = vector.broadcast %177 : vector<1x256xf32> to vector<8x256xf32>
    %199 = arith.mulf %197, %198 : vector<8x256xf32>
    %200 = vector.broadcast %179 : vector<1x256xf32> to vector<8x256xf32>
    %201 = arith.addf %199, %200 : vector<8x256xf32>
    %c2_107 = arith.constant 2 : index
    %c0_108 = arith.constant 0 : index
    %c0_109 = arith.constant 0 : index
    %202 = vector.load %arg5[%c2_107, %c0_108, %c0_109] : memref<3x256x512xbf16, #tpu.memory_space<vmem>>, vector<1x256x512xbf16>
    %203 = vector.shape_cast %202 : vector<1x256x512xbf16> to vector<256x512xbf16>
    %c2_110 = arith.constant 2 : index
    %c0_111 = arith.constant 0 : index
    %c0_112 = arith.constant 0 : index
    %204 = vector.load %arg6[%c2_110, %c0_111, %c0_112] : memref<3x1x512xf32, #tpu.memory_space<vmem>>, vector<1x1x512xf32>
    %205 = vector.shape_cast %204 : vector<1x1x512xf32> to vector<1x512xf32>
    %206 = arith.truncf %201 : vector<8x256xf32> to vector<8x256xbf16>
    %cst_113 = arith.constant dense<0.000000e+00> : vector<8x512xf32>
    %207 = tpu.matmul %206, %203, %cst_113 {dimension_numbers = #tpu.dot_dimension_numbers<[1], [0], [0], [1], [0, 0, 1, 1], [], []>} : vector<8x256xbf16>, vector<256x512xbf16>, vector<8x512xf32> -> vector<8x512xf32>
    %208 = vector.broadcast %205 : vector<1x512xf32> to vector<8x512xf32>
    %209 = arith.addf %207, %208 : vector<8x512xf32>
    %cst_114 = arith.constant 0.000000e+00 : f32
    %210 = vector.broadcast %cst_114 : f32 to vector<8x512xf32>
    %211 = arith.maximumf %209, %210 : vector<8x512xf32>
    %c2_115 = arith.constant 2 : index
    %c0_116 = arith.constant 0 : index
    %c0_117 = arith.constant 0 : index
    %212 = vector.load %arg7[%c2_115, %c0_116, %c0_117] : memref<3x512x256xbf16, #tpu.memory_space<vmem>>, vector<1x512x256xbf16>
    %213 = vector.shape_cast %212 : vector<1x512x256xbf16> to vector<512x256xbf16>
    %c2_118 = arith.constant 2 : index
    %c0_119 = arith.constant 0 : index
    %c0_120 = arith.constant 0 : index
    %214 = vector.load %arg8[%c2_118, %c0_119, %c0_120] : memref<3x1x256xf32, #tpu.memory_space<vmem>>, vector<1x1x256xf32>
    %215 = vector.shape_cast %214 : vector<1x1x256xf32> to vector<1x256xf32>
    %216 = arith.truncf %211 : vector<8x512xf32> to vector<8x512xbf16>
    %cst_121 = arith.constant dense<0.000000e+00> : vector<8x256xf32>
    %217 = tpu.matmul %216, %213, %cst_121 {dimension_numbers = #tpu.dot_dimension_numbers<[1], [0], [0], [1], [0, 0, 1, 1], [], []>} : vector<8x512xbf16>, vector<512x256xbf16>, vector<8x256xf32> -> vector<8x256xf32>
    %218 = vector.broadcast %215 : vector<1x256xf32> to vector<8x256xf32>
    %219 = arith.addf %217, %218 : vector<8x256xf32>
    %220 = arith.addf %201, %219 : vector<8x256xf32>
    %c5 = arith.constant 5 : index
    %c0_122 = arith.constant 0 : index
    %c0_123 = arith.constant 0 : index
    %221 = vector.load %arg9[%c5, %c0_122, %c0_123] : memref<6x1x256xf32, #tpu.memory_space<vmem>>, vector<1x1x256xf32>
    %222 = vector.shape_cast %221 : vector<1x1x256xf32> to vector<1x256xf32>
    %c5_124 = arith.constant 5 : index
    %c0_125 = arith.constant 0 : index
    %c0_126 = arith.constant 0 : index
    %223 = vector.load %arg10[%c5_124, %c0_125, %c0_126] : memref<6x1x256xf32, #tpu.memory_space<vmem>>, vector<1x1x256xf32>
    %224 = vector.shape_cast %223 : vector<1x1x256xf32> to vector<1x256xf32>
    %cst_127 = arith.constant dense<0.000000e+00> : vector<8xf32>
    %225 = vector.multi_reduction <add>, %220, %cst_127 [1] : vector<8x256xf32> to vector<8xf32>
    %226 = vector.shape_cast %225 : vector<8xf32> to vector<8x1xf32>
    %cst_128 = arith.constant 2.560000e+02 : f32
    %227 = vector.broadcast %cst_128 : f32 to vector<8x1xf32>
    %228 = arith.divf %226, %227 : vector<8x1xf32>
    %229 = vector.broadcast %228 : vector<8x1xf32> to vector<8x256xf32>
    %230 = arith.subf %220, %229 : vector<8x256xf32>
    %231 = arith.mulf %230, %230 : vector<8x256xf32>
    %cst_129 = arith.constant dense<0.000000e+00> : vector<8xf32>
    %232 = vector.multi_reduction <add>, %231, %cst_129 [1] : vector<8x256xf32> to vector<8xf32>
    %233 = vector.shape_cast %232 : vector<8xf32> to vector<8x1xf32>
    %cst_130 = arith.constant 2.560000e+02 : f32
    %234 = vector.broadcast %cst_130 : f32 to vector<8x1xf32>
    %235 = arith.divf %233, %234 : vector<8x1xf32>
    %236 = vector.broadcast %228 : vector<8x1xf32> to vector<8x256xf32>
    %237 = arith.subf %220, %236 : vector<8x256xf32>
    %cst_131 = arith.constant 9.99999974E-6 : f32
    %238 = vector.broadcast %cst_131 : f32 to vector<8x1xf32>
    %239 = arith.addf %235, %238 : vector<8x1xf32>
    %240 = math.rsqrt %239 : vector<8x1xf32>
    %241 = vector.broadcast %240 : vector<8x1xf32> to vector<8x256xf32>
    %242 = arith.mulf %237, %241 : vector<8x256xf32>
    %243 = vector.broadcast %222 : vector<1x256xf32> to vector<8x256xf32>
    %244 = arith.mulf %242, %243 : vector<8x256xf32>
    %245 = vector.broadcast %224 : vector<1x256xf32> to vector<8x256xf32>
    %246 = arith.addf %244, %245 : vector<8x256xf32>
    %c0_132 = arith.constant 0 : index
    %c0_133 = arith.constant 0 : index
    %247 = vector.load %arg11[%c0_132, %c0_133] : memref<256x256xbf16, #tpu.memory_space<vmem>>, vector<256x256xbf16>
    %c0_134 = arith.constant 0 : index
    %c0_135 = arith.constant 0 : index
    %248 = vector.load %arg12[%c0_134, %c0_135] : memref<1x256xf32, #tpu.memory_space<vmem>>, vector<1x256xf32>
    %249 = arith.truncf %246 : vector<8x256xf32> to vector<8x256xbf16>
    %cst_136 = arith.constant dense<0.000000e+00> : vector<8x256xf32>
    %250 = tpu.matmul %249, %247, %cst_136 {dimension_numbers = #tpu.dot_dimension_numbers<[1], [0], [0], [1], [0, 0, 1, 1], [], []>} : vector<8x256xbf16>, vector<256x256xbf16>, vector<8x256xf32> -> vector<8x256xf32>
    %251 = vector.broadcast %248 : vector<1x256xf32> to vector<8x256xf32>
    %252 = arith.addf %250, %251 : vector<8x256xf32>
    %cst_137 = arith.constant 0.000000e+00 : f32
    %253 = vector.broadcast %cst_137 : f32 to vector<8x256xf32>
    %254 = arith.maximumf %252, %253 : vector<8x256xf32>
    %c0_138 = arith.constant 0 : index
    %c0_139 = arith.constant 0 : index
    %255 = vector.load %arg13[%c0_138, %c0_139] : memref<256x128xbf16, #tpu.memory_space<vmem>>, vector<256x128xbf16>
    %c0_140 = arith.constant 0 : index
    %c0_141 = arith.constant 0 : index
    %256 = vector.load %arg14[%c0_140, %c0_141] : memref<1x128xf32, #tpu.memory_space<vmem>>, vector<1x128xf32>
    %257 = arith.truncf %254 : vector<8x256xf32> to vector<8x256xbf16>
    %cst_142 = arith.constant dense<0.000000e+00> : vector<8x128xf32>
    %258 = tpu.matmul %257, %255, %cst_142 {dimension_numbers = #tpu.dot_dimension_numbers<[1], [0], [0], [1], [0, 0, 1, 1], [], []>} : vector<8x256xbf16>, vector<256x128xbf16>, vector<8x128xf32> -> vector<8x128xf32>
    %259 = vector.broadcast %256 : vector<1x128xf32> to vector<8x128xf32>
    %260 = arith.addf %258, %259 : vector<8x128xf32>
    %cst_143 = arith.constant 0.000000e+00 : f32
    %261 = vector.broadcast %cst_143 : f32 to vector<8x128xf32>
    %262 = arith.maximumf %260, %261 : vector<8x128xf32>
    %c0_144 = arith.constant 0 : index
    %c0_145 = arith.constant 0 : index
    %263 = vector.load %arg15[%c0_144, %c0_145] : memref<128x128xbf16, #tpu.memory_space<vmem>>, vector<128x128xbf16>
    %c0_146 = arith.constant 0 : index
    %c0_147 = arith.constant 0 : index
    %264 = vector.load %arg16[%c0_146, %c0_147] : memref<1x128xf32, #tpu.memory_space<vmem>>, vector<1x128xf32>
    %265 = arith.truncf %262 : vector<8x128xf32> to vector<8x128xbf16>
    %cst_148 = arith.constant dense<0.000000e+00> : vector<8x128xf32>
    %266 = tpu.matmul %265, %263, %cst_148 {dimension_numbers = #tpu.dot_dimension_numbers<[1], [0], [0], [1], [0, 0, 1, 1], [], []>} : vector<8x128xbf16>, vector<128x128xbf16>, vector<8x128xf32> -> vector<8x128xf32>
    %267 = vector.broadcast %264 : vector<1x128xf32> to vector<8x128xf32>
    %268 = arith.addf %266, %267 : vector<8x128xf32>
    %269 = tpu.iota {dimensions = array<i32: 1>} : vector<8x128xi32>
    %c4_i32 = arith.constant 4 : i32
    %270 = vector.broadcast %c4_i32 : i32 to vector<8x128xi32>
    %271 = arith.cmpi slt, %269, %270 : vector<8x128xi32>
    %272 = arith.negf %268 : vector<8x128xf32>
    %273 = math.exp %272 : vector<8x128xf32>
    %cst_149 = arith.constant 1.000000e+00 : f32
    %274 = vector.broadcast %cst_149 : f32 to vector<8x128xf32>
    %275 = arith.addf %274, %273 : vector<8x128xf32>
    %276 = arith.divf %274, %275 : vector<8x128xf32>
    %277 = arith.select %271, %276, %268 : vector<8x128xi1>, vector<8x128xf32>
    %c0_150 = arith.constant 0 : index
    %c0_151 = arith.constant 0 : index
    %278 = vector.load %arg17[%c0_150, %c0_151] : memref<8x128xf32, #tpu.memory_space<vmem>>, vector<8x128xf32>
    tpu.vector_store %arg17[%c0_150, %c0_151], %277 {strides = array<i32>} : memref<8x128xf32, #tpu.memory_space<vmem>>, vector<8x128xf32>,
    return
  }
}

</mosaic_0001>

<bundles_post_ra>
// kernel: custom_transformer_policy.1
= control target key start
LH: loop header
LB: loop body
LE: loop exit
PB: predicated region body
PF: predicated region fallthrough
CT: control target
= control target key end

     0   :  { %s7013_s0 = inlined_call_operand.vmem [shape: f32[8,32], index: 0, kind: input, shape index: {}]   ;;  %s7014_s1 = inlined_call_operand.vmem [shape: bf16[32,256], index: 1, kind: input, shape index: {}]   ;;  %s7015_s2 = inlined_call_operand.vmem [shape: f32[1,256], index: 2, kind: input, shape index: {}]   ;;  %s7016_s3 = inlined_call_operand.hbm [shape: bf16[3,256,256], index: 3, kind: input, shape index: {}]   ;;  %s7017_s4 = inlined_call_operand.hbm [shape: f32[3,1,256], index: 4, kind: input, shape index: {}]   ;;  %s7018_s5 = inlined_call_operand.hbm [shape: bf16[3,256,512], index: 5, kind: input, shape index: {}]   ;;  %s7019_s6 = inlined_call_operand.vmem [shape: f32[3,1,512], index: 6, kind: input, shape index: {}]   ;;  %s7020_s7 = inlined_call_operand.hbm [shape: bf16[3,512,256], index: 7, kind: input, shape index: {}]   ;;  %s7021_s8 = inlined_call_operand.hbm [shape: f32[3,1,256], index: 8, kind: input, shape index: {}]   ;;  %s7022_s9 = inlined_call_operand.hbm [shape: f32[6,1,256], index: 9, kind: input, shape index: {}]   ;;  %s7023_s10 = inlined_call_operand.hbm [shape: f32[6,1,256], index: 10, kind: input, shape index: {}]   ;;  %s7024_s11 = inlined_call_operand.hbm [shape: bf16[256,256], index: 11, kind: input, shape index: {}]   ;;  %s7025_s12 = inlined_call_operand.vmem [shape: f32[1,256], index: 12, kind: input, shape index: {}]   ;;  %s7026_s13 = inlined_call_operand.hbm [shape: bf16[256,128], index: 13, kind: input, shape index: {}]   ;;  %s7027_s14 = inlined_call_operand.hbm [shape: f32[1,128], index: 14, kind: input, shape index: {}]   ;;  %s7028_s15 = inlined_call_operand.hbm [shape: bf16[128,128], index: 15, kind: input, shape index: {}]   ;;  %s7029_s16 = inlined_call_operand.hbm [shape: f32[1,128], index: 16, kind: input, shape index: {}]   ;;  %s7030_s17 = inlined_call_operand.vmem [shape: f32[8,128], index: 17, kind: output, shape index: {}]  }
   0x1   :  { %7032 = sst [smem:[#allocation28_spill]] %s7013_s0 }
   0x2   :  { %7033 = sst [smem:[#allocation29_spill]] %s7014_s1 }
   0x3   :  { %7034 = sst [smem:[#allocation30_spill]] %s7030_s17 }
   0x4   :  { %22 = vsyncpa [#allocation3], 0 }
   0x5   :  { %23 = vsyncpa [#allocation5], 0 }
   0x6   :  { %24 = vsyncpa [#allocation8], 0 }
   0x7   :  { %25 = vsyncpa [#allocation11], 0 }
   0x8   :  { %26 = vsyncpa [#allocation14], 0 }
   0x9   :  { %27 = vsyncpa [#allocation17], 0 }
   0xa   :  { %28 = vsyncpa [#allocation20], 0  ;;  %s6540_s24 = smov [#allocation4]   ;;  %s6262_s28 = scalar_lea.hbm %s7017_s4, 96 }
   0xb   :  { %s52_s25 = sshll.u32 %s6540_s24, 4  ;;  %p6263_p0 = scmp.ne.s32.totalorder %s7017_s4, %s6262_s28  ;;  %s53_s25 = int_to_ptr.vmem [resolvable:$true] %s52_s25 }
   0xc   :  { %p6266_p1 = scmp.lt.u32.totalorder %s6262_s28, %s7017_s4 }
   0xe   :  { %p6268_p2 = pnand %p6266_p1, %p6263_p0 }
  0x10   :  { %6271 = shalt.err (!%p6268_p2)
}
  0x11   :  { %s6272_s19 = scalar_lea.vmem %s53_s25, 96  ;;  %p6277_p4 = scmp.lt.s32.totalorder %s53_s25, %s53_s25 }
  0x12   :  { %p6273_p3 = scmp.ne.s32.totalorder %s53_s25, %s6272_s19  ;;  %p6278_p5 = scmp.lt.s32.totalorder %s6272_s19, %s6272_s19 }
  0x14   :  { %p6279_p6 = por %p6278_p5, %p6277_p4 }
  0x16   :  { %p6280_p7 = pnand %p6279_p6, %p6273_p3 }
  0x18   :  { %6283 = shalt.err (!%p6280_p7)
}
  0x19   :  { %s6541_s1 = smov 32   ;;  %s6542_s20 = smov 2  }
  0x1a   :  { %58 = dma.hbm_to_vmem [thread:$0]  %s7017_s4, 96, %s53_s25, [#allocation5], %s6541_s1, %s6541_s1, %s6542_s20  }
  0x1b   :  { %s6543_s23 = smov [#allocation7]   ;;  %s6544_s26 = smov [#allocation10]  }
  0x1c   :  { %s78_s24 = sshll.u32 %s6543_s23, 4  ;;  %s102_s27 = sshll.u32 %s6544_s26, 4  ;;  %s79_s24 = int_to_ptr.vmem [resolvable:$true] %s78_s24  ;;  %s103_s27 = int_to_ptr.vmem [resolvable:$true] %s102_s27 }
  0x1d   :  { %s6284_s0 = scalar_lea.hbm %s7020_s7, 24576 }
  0x1e   :  { %p6285_p8 = scmp.ne.s32.totalorder %s7020_s7, %s6284_s0  ;;  %p6288_p9 = scmp.lt.u32.totalorder %s6284_s0, %s7020_s7 }
  0x20   :  { %p6290_p10 = pnand %p6288_p9, %p6285_p8 }
  0x22   :  { %6293 = shalt.err (!%p6290_p10)
}
  0x23   :  { %s6294_s4 = scalar_lea.vmem %s79_s24, 24576  ;;  %p6299_p12 = scmp.lt.s32.totalorder %s79_s24, %s79_s24 }
  0x24   :  { %p6295_p11 = scmp.ne.s32.totalorder %s79_s24, %s6294_s4  ;;  %p6300_p13 = scmp.lt.s32.totalorder %s6294_s4, %s6294_s4 }
  0x26   :  { %p6301_p0 = por %p6300_p13, %p6299_p12 }
  0x28   :  { %p6302_p1 = pnand %p6301_p0, %p6295_p11 }
  0x2a   :  { %6305 = shalt.err (!%p6302_p1)
}
  0x2b   :  { %s6545_s25 = smov 128   ;;  %s6546_s21 = smov 8  }
  0x2c   :  { %84 = dma.hbm_to_vmem [thread:$0]  %s7020_s7, 24576, %s79_s24, [#allocation8], %s6545_s25, %s6545_s25, %s6546_s21  }
  0x2d   :  { %s6306_s28 = scalar_lea.hbm %s7022_s9, 192 }
  0x2e   :  { %p6307_p2 = scmp.ne.s32.totalorder %s7022_s9, %s6306_s28  ;;  %p6310_p3 = scmp.lt.u32.totalorder %s6306_s28, %s7022_s9 }
  0x30   :  { %p6312_p4 = pnand %p6310_p3, %p6307_p2 }
  0x32   :  { %6315 = shalt.err (!%p6312_p4)
}
  0x33   :  { %s6316_s19 = scalar_lea.vmem %s103_s27, 192  ;;  %p6321_p6 = scmp.lt.s32.totalorder %s103_s27, %s103_s27 }
  0x34   :  { %p6317_p5 = scmp.ne.s32.totalorder %s103_s27, %s6316_s19  ;;  %p6322_p7 = scmp.lt.s32.totalorder %s6316_s19, %s6316_s19 }
  0x36   :  { %p6323_p8 = por %p6322_p7, %p6321_p6 }
  0x38   :  { %p6324_p9 = pnand %p6323_p8, %p6317_p5 }
  0x3a   :  { %6327 = shalt.err (!%p6324_p9)
}
  0x3b   :  { %108 = dma.hbm_to_vmem [thread:$0]  %s7022_s9, 192, %s103_s27, [#allocation11], %s6541_s1, %s6541_s1, %s6542_s20  }
  0x3c   :  { %s6547_s4 = smov [#allocation13]   ;;  %s6548_s23 = smov [#allocation16]  }
  0x3d   :  { %s126_s22 = sshll.u32 %s6547_s4, 4  ;;  %s153_s17 = sshll.u32 %s6548_s23, 4  ;;  %s127_s22 = int_to_ptr.vmem [resolvable:$true] %s126_s22  ;;  %s154_s17 = int_to_ptr.vmem [resolvable:$true] %s153_s17 }
  0x3e   :  { %s6328_s29 = scalar_lea.hbm %s7024_s11, 4096 }
  0x3f   :  { %p6329_p10 = scmp.ne.s32.totalorder %s7024_s11, %s6328_s29  ;;  %p6332_p11 = scmp.lt.u32.totalorder %s6328_s29, %s7024_s11 }
  0x41   :  { %p6334_p12 = pnand %p6332_p11, %p6329_p10 }
  0x43   :  { %6337 = shalt.err (!%p6334_p12)
}
  0x44   :  { %s6338_s9 = scalar_lea.vmem %s127_s22, 4096  ;;  %p6343_p0 = scmp.lt.s32.totalorder %s127_s22, %s127_s22 }
  0x45   :  { %p6339_p13 = scmp.ne.s32.totalorder %s127_s22, %s6338_s9  ;;  %p6344_p1 = scmp.lt.s32.totalorder %s6338_s9, %s6338_s9 }
  0x47   :  { %p6345_p2 = por %p6344_p1, %p6343_p0 }
  0x49   :  { %p6346_p3 = pnand %p6345_p2, %p6339_p13 }
  0x4b   :  { %6349 = shalt.err (!%p6346_p3)
}
  0x4c   :  { %132 = dma.hbm_to_vmem [thread:$0]  %s7024_s11, 4096, %s127_s22, [#allocation14], %s6545_s25, %s6545_s25, %s6546_s21  }
  0x4d   :  { %s6350_s23 = scalar_lea.hbm %s7027_s14, 16 }
  0x4e   :  { %p6351_p4 = scmp.ne.s32.totalorder %s7027_s14, %s6350_s23  ;;  %p6354_p5 = scmp.lt.u32.totalorder %s6350_s23, %s7027_s14 }
  0x50   :  { %p6356_p6 = pnand %p6354_p5, %p6351_p4 }
  0x52   :  { %6359 = shalt.err (!%p6356_p6)
}
  0x53   :  { %s6360_s30 = scalar_lea.vmem %s154_s17, 16  ;;  %s6364_s18 = scalar_lea.vmem %s154_s17, 32 }
  0x54   :  { %p6361_p7 = scmp.ne.s32.totalorder %s154_s17, %s6360_s30  ;;  %p6365_p8 = scmp.lt.s32.totalorder %s154_s17, %s154_s17 }
  0x55   :  { %p6366_p9 = scmp.lt.s32.totalorder %s6364_s18, %s6360_s30 }
  0x57   :  { %p6367_p10 = por %p6366_p9, %p6365_p8 }
  0x59   :  { %p6368_p11 = pnand %p6367_p10, %p6361_p7 }
  0x5b   :  { %6371 = shalt.err (!%p6368_p11)
}
  0x5c   :  { %156 = dma.hbm_to_vmem [thread:$0]  %s7027_s14, 16, %s154_s17, [#allocation17]  }
  0x5d   :  { %s6549_s19 = smov [#allocation2]   ;;  %s6550_s27 = smov [#allocation6]  }
  0x5e   :  { %s40_s9 = sshll.u32 %s6549_s19, 4  ;;  %s64_s7 = sshll.u32 %s6550_s27, 4  ;;  %s41_s9 = int_to_ptr.vmem [resolvable:$true] %s40_s9  ;;  %s65_s7 = int_to_ptr.vmem [resolvable:$true] %s64_s7 }
  0x5f   :  { %s6372_s23 = scalar_lea.hbm %s7016_s3, 12288 }
  0x60   :  { %p6373_p12 = scmp.ne.s32.totalorder %s7016_s3, %s6372_s23  ;;  %p6376_p13 = scmp.lt.u32.totalorder %s6372_s23, %s7016_s3 }
  0x62   :  { %p6378_p0 = pnand %p6376_p13, %p6373_p12 }
  0x64   :  { %6381 = shalt.err (!%p6378_p0)
}
  0x65   :  { %s6382_s14 = scalar_lea.vmem %s41_s9, 12288  ;;  %p6387_p2 = scmp.lt.s32.totalorder %s41_s9, %s41_s9 }
  0x66   :  { %p6383_p1 = scmp.ne.s32.totalorder %s41_s9, %s6382_s14  ;;  %p6388_p3 = scmp.lt.s32.totalorder %s6382_s14, %s6382_s14 }
  0x68   :  { %p6389_p4 = por %p6388_p3, %p6387_p2 }
  0x6a   :  { %p6390_p5 = pnand %p6389_p4, %p6383_p1 }
  0x6c   :  { %6393 = shalt.err (!%p6390_p5)
}
  0x6d   :  { %46 = dma.hbm_to_vmem [thread:$0]  %s7016_s3, 12288, %s41_s9, [#allocation3], %s6545_s25, %s6545_s25, %s6546_s21  }
  0x6e   :  { %s6394_s22 = scalar_lea.hbm %s7018_s5, 24576 }
  0x6f   :  { %p6395_p6 = scmp.ne.s32.totalorder %s7018_s5, %s6394_s22  ;;  %p6398_p7 = scmp.lt.u32.totalorder %s6394_s22, %s7018_s5 }
  0x71   :  { %p6400_p8 = pnand %p6398_p7, %p6395_p6 }
  0x73   :  { %6403 = shalt.err (!%p6400_p8)
}
  0x74   :  { %s6404_s23 = scalar_lea.vmem %s65_s7, 24576  ;;  %p6409_p10 = scmp.lt.s32.totalorder %s65_s7, %s65_s7 }
  0x75   :  { %p6405_p9 = scmp.ne.s32.totalorder %s65_s7, %s6404_s23  ;;  %p6410_p11 = scmp.lt.s32.totalorder %s6404_s23, %s6404_s23 }
  0x77   :  { %p6411_p12 = por %p6410_p11, %p6409_p10 }
  0x79   :  { %p6412_p13 = pnand %p6411_p12, %p6405_p9 }
  0x7b   :  { %6415 = shalt.err (!%p6412_p13)
}
  0x7c   :  { %s6551_s3 = smov 256   ;;  %s6552_s25 = smov 16  }
  0x7d   :  { %70 = dma.hbm_to_vmem [thread:$0]  %s7018_s5, 24576, %s65_s7, [#allocation5], %s6551_s3, %s6551_s3, %s6552_s25  }
  0x7e   :  { %s6553_s26 = smov [#allocation9]   ;;  %s6554_s29 = smov [#allocation12]  }
  0x7f   :  { %s90_s28 = sshll.u32 %s6553_s26, 4  ;;  %s114_s0 = sshll.u32 %s6554_s29, 4  ;;  %s91_s28 = int_to_ptr.vmem [resolvable:$true] %s90_s28  ;;  %s115_s0 = int_to_ptr.vmem [resolvable:$true] %s114_s0 }
  0x80   :  { %s6416_s30 = scalar_lea.hbm %s7021_s8, 96 }
  0x81   :  { %p6417_p0 = scmp.ne.s32.totalorder %s7021_s8, %s6416_s30  ;;  %p6420_p1 = scmp.lt.u32.totalorder %s6416_s30, %s7021_s8 }
  0x83   :  { %p6422_p2 = pnand %p6420_p1, %p6417_p0 }
  0x85   :  { %6425 = shalt.err (!%p6422_p2)
}
  0x86   :  { %s6426_s5 = scalar_lea.vmem %s91_s28, 96  ;;  %p6431_p4 = scmp.lt.s32.totalorder %s91_s28, %s91_s28 }
  0x87   :  { %p6427_p3 = scmp.ne.s32.totalorder %s91_s28, %s6426_s5  ;;  %p6432_p5 = scmp.lt.s32.totalorder %s6426_s5, %s6426_s5 }
  0x89   :  { %p6433_p6 = por %p6432_p5, %p6431_p4 }
  0x8b   :  { %p6434_p7 = pnand %p6433_p6, %p6427_p3 }
  0x8d   :  { %6437 = shalt.err (!%p6434_p7)
}
  0x8e   :  { %96 = dma.hbm_to_vmem [thread:$0]  %s7021_s8, 96, %s91_s28, [#allocation8], %s6541_s1, %s6541_s1, %s6542_s20  }
  0x8f   :  { %s6438_s23 = scalar_lea.hbm %s7023_s10, 192 }
  0x90   :  { %p6439_p8 = scmp.ne.s32.totalorder %s7023_s10, %s6438_s23  ;;  %p6442_p9 = scmp.lt.u32.totalorder %s6438_s23, %s7023_s10 }
  0x92   :  { %p6444_p10 = pnand %p6442_p9, %p6439_p8 }
  0x94   :  { %6447 = shalt.err (!%p6444_p10)
}
  0x95   :  { %s6448_s26 = scalar_lea.vmem %s115_s0, 192  ;;  %p6453_p12 = scmp.lt.s32.totalorder %s115_s0, %s115_s0 }
  0x96   :  { %p6449_p11 = scmp.ne.s32.totalorder %s115_s0, %s6448_s26  ;;  %p6454_p13 = scmp.lt.s32.totalorder %s6448_s26, %s6448_s26 }
  0x98   :  { %p6455_p0 = por %p6454_p13, %p6453_p12 }
  0x9a   :  { %p6456_p1 = pnand %p6455_p0, %p6449_p11 }
  0x9c   :  { %6459 = shalt.err (!%p6456_p1)
}
  0x9d   :  { %120 = dma.hbm_to_vmem [thread:$0]  %s7023_s10, 192, %s115_s0, [#allocation11], %s6541_s1, %s6541_s1, %s6542_s20  }
  0x9e   :  { %s6555_s29 = smov [#allocation15]   ;;  %s6460_s18 = scalar_lea.hbm %s7026_s13, 2048 }
  0x9f   :  { %s140_s14 = sshll.u32 %s6555_s29, 4  ;;  %p6461_p2 = scmp.ne.s32.totalorder %s7026_s13, %s6460_s18  ;;  %s141_s14 = int_to_ptr.vmem [resolvable:$true] %s140_s14 }
  0xa0   :  { %p6464_p3 = scmp.lt.u32.totalorder %s6460_s18, %s7026_s13 }
  0xa2   :  { %p6466_p4 = pnand %p6464_p3, %p6461_p2 }
  0xa4   :  { %6469 = shalt.err (!%p6466_p4)
}
  0xa5   :  { %s6470_s7 = scalar_lea.vmem %s141_s14, 2048  ;;  %p6475_p6 = scmp.lt.s32.totalorder %s141_s14, %s141_s14 }
  0xa6   :  { %p6471_p5 = scmp.ne.s32.totalorder %s141_s14, %s6470_s7  ;;  %p6476_p7 = scmp.lt.s32.totalorder %s6470_s7, %s6470_s7 }
  0xa8   :  { %p6477_p8 = por %p6476_p7, %p6475_p6 }
  0xaa   :  { %p6478_p9 = pnand %p6477_p8, %p6471_p5 }
  0xac   :  { %6481 = shalt.err (!%p6478_p9)
}
  0xad   :  { %s6556_s10 = smov 64   ;;  %s6557_s1 = smov 4  }
  0xae   :  { %146 = dma.hbm_to_vmem [thread:$0]  %s7026_s13, 2048, %s141_s14, [#allocation14], %s6556_s10, %s6556_s10, %s6557_s1  }
  0xaf   :  { %s6558_s27 = smov [#allocation18]   ;;  %s6559_s4 = smov [#allocation19]  }
  0xb0   :  { %s162_s24 = sshll.u32 %s6558_s27, 4  ;;  %s175_s23 = sshll.u32 %s6559_s4, 4  ;;  %s163_s24 = int_to_ptr.vmem [resolvable:$true] %s162_s24  ;;  %s176_s23 = int_to_ptr.vmem [resolvable:$true] %s175_s23 }
  0xb1   :  { %s6482_s21 = scalar_lea.hbm %s7028_s15, 1024 }
  0xb2   :  { %p6483_p10 = scmp.ne.s32.totalorder %s7028_s15, %s6482_s21  ;;  %p6486_p11 = scmp.lt.u32.totalorder %s6482_s21, %s7028_s15 }
  0xb4   :  { %p6488_p12 = pnand %p6486_p11, %p6483_p10 }
  0xb6   :  { %6491 = shalt.err (!%p6488_p12)
}
  0xb7   :  { %s6492_s13 = scalar_lea.vmem %s163_s24, 1024  ;;  %p6497_p0 = scmp.lt.s32.totalorder %s163_s24, %s163_s24 }
  0xb8   :  { %p6493_p13 = scmp.ne.s32.totalorder %s163_s24, %s6492_s13  ;;  %p6498_p1 = scmp.lt.s32.totalorder %s6492_s13, %s6492_s13 }
  0xba   :  { %p6499_p2 = por %p6498_p1, %p6497_p0 }
  0xbc   :  { %p6500_p3 = pnand %p6499_p2, %p6493_p13 }
  0xbe   :  { %6503 = shalt.err (!%p6500_p3)
}
  0xbf   :  { %168 = dma.hbm_to_vmem [thread:$0]  %s7028_s15, 1024, %s163_s24, [#allocation17], %s6556_s10, %s6556_s10, %s6557_s1  }
  0xc0   :  { %s6504_s18 = scalar_lea.hbm %s7029_s16, 16 }
  0xc1   :  { %p6505_p4 = scmp.ne.s32.totalorder %s7029_s16, %s6504_s18  ;;  %p6508_p5 = scmp.lt.u32.totalorder %s6504_s18, %s7029_s16 }
  0xc3   :  { %p6510_p6 = pnand %p6508_p5, %p6505_p4 }
  0xc5   :  { %6513 = shalt.err (!%p6510_p6)
}
  0xc6   :  { %s6514_s7 = scalar_lea.vmem %s176_s23, 16  ;;  %s6518_s20 = scalar_lea.vmem %s176_s23, 32 }
  0xc7   :  { %p6515_p7 = scmp.ne.s32.totalorder %s176_s23, %s6514_s7  ;;  %p6519_p8 = scmp.lt.s32.totalorder %s176_s23, %s176_s23 }
  0xc8   :  { %p6520_p9 = scmp.lt.s32.totalorder %s6518_s20, %s6514_s7 }
  0xca   :  { %p6521_p10 = por %p6520_p9, %p6519_p8 }
  0xcc   :  { %p6522_p11 = pnand %p6521_p10, %p6515_p7 }
  0xce   :  { %6525 = shalt.err (!%p6522_p11)
}
  0xcf   :  { %178 = dma.hbm_to_vmem [thread:$0]  %s7029_s16, 16, %s176_s23, [#allocation20]  }
  0xd0   :  { %6526 = dma.done.wait [#allocation3], 12288  }
  0xd1   :  { %6527 = vsyncadd [#allocation3], 4294955008 }
  0xd2   :  { %6528 = dma.done.wait [#allocation5], 24672  }
  0xd3   :  { %6529 = vsyncadd [#allocation5], 4294942624 }
  0xd4   :  { %6530 = dma.done.wait [#allocation8], 24672  }
  0xd5   :  { %6531 = vsyncadd [#allocation8], 4294942624 }
  0xd6   :  { %6532 = dma.done.wait [#allocation11], 384  }
  0xd7   :  { %6533 = vsyncadd [#allocation11], 4294966912 }
  0xd8   :  { %6534 = dma.done.wait [#allocation14], 6144  }
  0xd9   :  { %6535 = vsyncadd [#allocation14], 4294961152 }
  0xda   :  { %6536 = dma.done.wait [#allocation17], 1040  }
  0xdb   :  { %6537 = vsyncadd [#allocation17], 4294966256 }
  0xdc   :  { %6538 = dma.done.wait [#allocation20], 16  }
  0xdd   :  { %6539 = vsyncadd [#allocation20], 4294967280  ;;  %v6560_v0 = vmov 0   ;;  %s7035_s27 = sld [smem:[#allocation29_spill]]  ;;  %s7036_s26 = sld [smem:[#allocation28_spill]]  ;;  %vm254_vm0 = vcmask 261120   ;;  %v224_v39 = vlaneseq }
  0xde   :  { %290 = vmatprep.mubr.bf16.mxu0 %v6560_v0  ;;  %v5454_v6 = vld [vmem:[#allocation2 + $0x4] ss:$8 sps:$4 sm:$0xff]   ;;  %v5456_v7 = vld [vmem:[#allocation2] ss:$8 sps:$4 sm:$0xff]   ;;  %v5457_v8 = vld [vmem:[#allocation2 + $0x14] ss:$8 sps:$4 sm:$0xff]  }
  0xdf   :  { %505 = vmatprep.subr.bf16.mxu1 %v5454_v6  ;;  %v5459_v10 = vld [vmem:[#allocation2 + $0x10] ss:$8 sps:$4 sm:$0xff]   ;;  %v5460_v11 = vld [vmem:[#allocation2 + $0x24] ss:$8 sps:$4 sm:$0xff]   ;;  %v5462_v12 = vld [vmem:[#allocation2 + $0x20] ss:$8 sps:$4 sm:$0xff]  }
  0xe0   :  { %506 = vmatpush1.bf16.msra.mxu1 %v5456_v7  ;;  %v5463_v13 = vld [vmem:[#allocation2 + $0x34] ss:$8 sps:$4 sm:$0xff]   ;;  %v5465_v14 = vld [vmem:[#allocation2 + $0x30] ss:$8 sps:$4 sm:$0xff]   ;;  %v5466_v15 = vld [vmem:[#allocation2 + $0x44] ss:$8 sps:$4 sm:$0xff]  }
  0xe1   :  { %507 = vmatprep.subr.bf16.mxu1 %v5457_v8  ;;  %v5468_v16 = vld [vmem:[#allocation2 + $0x40] ss:$8 sps:$4 sm:$0xff]   ;;  %v5469_v17 = vld [vmem:[#allocation2 + $0x54] ss:$8 sps:$4 sm:$0xff]   ;;  %v5471_v18 = vld [vmem:[#allocation2 + $0x50] ss:$8 sps:$4 sm:$0xff]  }
  0xe2   :  { %v5472_v19 = vld [vmem:[#allocation2 + $0x64] ss:$8 sps:$4 sm:$0xff]   ;;  %v5474_v20 = vld [vmem:[#allocation2 + $0x60] ss:$8 sps:$4 sm:$0xff]   ;;  %v5475_v21 = vld [vmem:[#allocation2 + $0x74] ss:$8 sps:$4 sm:$0xff]  }
  0xe3   :  { %v5448_v1 = vld [vmem:[%s7035_s27 + $0x4] ss:$8 sps:$4 sm:$0xff]   ;;  %v5450_v2 = vld [vmem:[%s7035_s27] ss:$8 sps:$4 sm:$0xff]   ;;  %v5451_v3 = vld [vmem:[%s7035_s27 + $0x14] ss:$8 sps:$4 sm:$0xff]  }
  0xe4   :  { %258 = vmatprep.subr.bf16.mxu0 %v5448_v1  ;;  %v5453_v4 = vld [vmem:[%s7035_s27 + $0x10] ss:$8 sps:$4 sm:$0xff]   ;;  %v216_v5 = vld [vmem:[%s7036_s26] sm:$0xff]  ;;  %508 = vmatpush1.bf16.msra.mxu1 %v5459_v10  ;;  %v5481_v25 = vld [vmem:[#allocation2 + $0x94] ss:$8 sps:$4 sm:$0xff]   ;;  %v6834_v40 = vshrl.u32 %v224_v39, 7 }
  0xe5   :  { %259 = vmatpush1.bf16.msra.mxu0 %v5450_v2  ;;  %v222_v9 = vpack.c.bf16 %v216_v5, %v216_v5  ;;  %509 = vmatprep.subr.bf16.mxu1 %v5460_v11  ;;  %v5477_v22 = vld [vmem:[#allocation2 + $0x70] ss:$8 sps:$4 sm:$0xff]   ;;  %v5478_v23 = vld [vmem:[#allocation2 + $0x84] ss:$8 sps:$4 sm:$0xff]   ;;  %v5480_v24 = vld [vmem:[#allocation2 + $0x80] ss:$8 sps:$4 sm:$0xff]  }
  0xe6   :  { %260 = vmatprep.subr.bf16.mxu0 %v5451_v3  ;;  %v5483_v26 = vld [vmem:[#allocation2 + $0x90] ss:$8 sps:$4 sm:$0xff]   ;;  %v5484_v27 = vld [vmem:[#allocation2 + $0xa4] ss:$8 sps:$4 sm:$0xff]   ;;  %v5486_v28 = vld [vmem:[#allocation2 + $0xa0] ss:$8 sps:$4 sm:$0xff]  }
  0xe7   :  { %v5487_v29 = vld [vmem:[#allocation2 + $0xb4] ss:$8 sps:$4 sm:$0xff]   ;;  %v5489_v30 = vld [vmem:[#allocation2 + $0xb0] ss:$8 sps:$4 sm:$0xff]   ;;  %v5490_v31 = vld [vmem:[#allocation2 + $0xc4] ss:$8 sps:$4 sm:$0xff]  }
  0xe8   :  { %510 = vmatpush1.bf16.msra.mxu1 %v5462_v12  ;;  %v5492_v32 = vld [vmem:[#allocation2 + $0xc0] ss:$8 sps:$4 sm:$0xff]   ;;  %v5493_v33 = vld [vmem:[#allocation2 + $0xd4] ss:$8 sps:$4 sm:$0xff]   ;;  %v5495_v34 = vld [vmem:[#allocation2 + $0xd0] ss:$8 sps:$4 sm:$0xff]  }
  0xe9   :  { %261 = vmatpush1.bf16.msra.mxu0 %v5453_v4  ;;  %511 = vmatprep.subr.bf16.mxu1 %v5463_v13  ;;  %v5496_v35 = vld [vmem:[#allocation2 + $0xe4] ss:$8 sps:$4 sm:$0xff]   ;;  %v5498_v36 = vld [vmem:[#allocation2 + $0xe0] ss:$8 sps:$4 sm:$0xff]   ;;  %v5499_v37 = vld [vmem:[#allocation2 + $0xf4] ss:$8 sps:$4 sm:$0xff]  }
  0xea   :  { %v5501_v38 = vld [vmem:[#allocation2 + $0xf0] ss:$8 sps:$4 sm:$0xff]   ;;  %v6837_v41 = vsub.s32 0, %v6834_v40  ;;  %v221_v42 = vld [vmem:[%s7015_s2] sm:$0x3]  ;;  %v6843_v43 = vsub.s32 1, %v6834_v40 }
  0xeb   :  { %v331_v54 = vld [vmem:[#allocation4] sm:$0x3]  ;;  %v5502_v2 = vld [vmem:[#allocation6] ss:$16 sps:$4 sm:$0xff]   ;;  %v5504_v3 = vld [vmem:[#allocation6 + $0x4] ss:$16 sps:$4 sm:$0xff]  }
  0xec   :  { %4832 = vmatmul.mubr.msk.bf16.vlgmr.msra.gmra.mrb[0].mxu0 %vm254_vm0, %v222_v9  ;;  %512 = vmatpush1.bf16.msra.mxu1 %v5465_v14  ;;  %v227_v44 = vrot.slane %v221_v42, %v6837_v41  ;;  %v231_v45 = vrot.slane %v221_v42, %v6843_v43  ;;  %v338_v55 = vrot.slane %v331_v54, %v6837_v41  ;;  %v5505_v4 = vld [vmem:[#allocation6 + $0x8] ss:$16 sps:$4 sm:$0xff]   ;;  %v5507_v5 = vld [vmem:[#allocation6 + $0xc] ss:$16 sps:$4 sm:$0xff]   ;;  %v5510_v6 = vld [vmem:[#allocation6 + $0x24] ss:$16 sps:$4 sm:$0xff]  }
  0xed   :  { %513 = vmatprep.subr.bf16.mxu1 %v5466_v15  ;;  %v342_v56 = vrot.slane %v331_v54, %v6843_v43  ;;  %1001 = vmatprep.subr.bf16.mxu0 %v5504_v3  ;;  %v5513_v7 = vld [vmem:[#allocation6 + $0x2c] ss:$16 sps:$4 sm:$0xff]   ;;  %v5508_v8 = vld [vmem:[#allocation6 + $0x20] ss:$16 sps:$4 sm:$0xff]   ;;  %v5511_v9 = vld [vmem:[#allocation6 + $0x28] ss:$16 sps:$4 sm:$0xff]  }
  0xee   :  { %1002 = vmatpush1.bf16.msra.mxu0 %v5502_v2  ;;  %v5516_v10 = vld [vmem:[#allocation6 + $0x44] ss:$16 sps:$4 sm:$0xff]   ;;  %v5519_v11 = vld [vmem:[#allocation6 + $0x4c] ss:$16 sps:$4 sm:$0xff]   ;;  %v5514_v12 = vld [vmem:[#allocation6 + $0x40] ss:$16 sps:$4 sm:$0xff]  }
  0xef   :  { %1003 = vmatprep.subr.bf16.mxu0 %v5510_v6  ;;  %v5517_v13 = vld [vmem:[#allocation6 + $0x48] ss:$16 sps:$4 sm:$0xff]   ;;  %v5522_v14 = vld [vmem:[#allocation6 + $0x64] ss:$16 sps:$4 sm:$0xff]   ;;  %v5525_v15 = vld [vmem:[#allocation6 + $0x6c] ss:$16 sps:$4 sm:$0xff]  }
  0xf0   :  { %514 = vmatpush1.bf16.msra.mxu1 %v5468_v16  ;;  %v5520_v16 = vld [vmem:[#allocation6 + $0x60] ss:$16 sps:$4 sm:$0xff]   ;;  %v5561_v42 = vld [vmem:[#allocation6 + $0x12c] ss:$16 sps:$4 sm:$0xff]   ;;  %vm6562_vm1 = vmmov 0   ;;  %s7037_s22 = sld [smem:[#allocation30_spill]] }
  0xf1   :  { %515 = vmatprep.subr.bf16.mxu1 %v5469_v17  ;;  %v5523_v17 = vld [vmem:[#allocation6 + $0x68] ss:$16 sps:$4 sm:$0xff]   ;;  %v5567_v54 = vld [vmem:[#allocation6 + $0x14c] ss:$16 sps:$4 sm:$0xff]   ;;  %v5580_v3 = vld [vmem:[#allocation6 + $0x1a0] ss:$16 sps:$4 sm:$0xff]  }
  0xf2   :  { %1004 = vmatpush1.bf16.msra.mxu0 %v5508_v8  ;;  %v5585_v2 = vld [vmem:[#allocation6 + $0x1ac] ss:$16 sps:$4 sm:$0xff]   ;;  %v5589_v8 = vld [vmem:[#allocation6 + $0x1c8] ss:$16 sps:$4 sm:$0xff]  }
  0xf3   :  { %1005 = vmatprep.subr.bf16.mxu0 %v5516_v10  ;;  %v5591_v6 = vld [vmem:[#allocation6 + $0x1cc] ss:$16 sps:$4 sm:$0xff]  }
  0xf4   :  { %516 = vmatpush1.bf16.msra.mxu1 %v5471_v18  ;;  %v5528_v18 = vld [vmem:[#allocation6 + $0x84] ss:$16 sps:$4 sm:$0xff]   ;;  %v5597_v10 = vld [vmem:[#allocation6 + $0x1ec] ss:$16 sps:$4 sm:$0xff]  }
  0xf5   :  { %517 = vmatprep.subr.bf16.mxu1 %v5472_v19  ;;  %v5531_v19 = vld [vmem:[#allocation6 + $0x8c] ss:$16 sps:$4 sm:$0xff]  }
  0xf6   :  { %1006 = vmatpush1.bf16.msra.mxu0 %v5514_v12  ;;  %v5595_v12 = vld [vmem:[#allocation6 + $0x1e8] ss:$16 sps:$4 sm:$0xff]  }
  0xf7   :  { %1007 = vmatprep.subr.bf16.mxu0 %v5522_v14  ;;  %v5603_v14 = vld [vmem:[#allocation7 + $0x104] ss:$8 sps:$4 sm:$0xff]  }
  0xf8   :  { %518 = vmatpush1.bf16.msra.mxu1 %v5474_v20  ;;  %v5526_v20 = vld [vmem:[#allocation6 + $0x80] ss:$16 sps:$4 sm:$0xff]  }
  0xf9   :  { %519 = vmatprep.subr.bf16.mxu1 %v5475_v21  ;;  %v5529_v21 = vld [vmem:[#allocation6 + $0x88] ss:$16 sps:$4 sm:$0xff]  }
  0xfa   :  { %1008 = vmatpush1.bf16.msra.mxu0 %v5520_v16 }
  0xfb   :  { %1009 = vmatprep.subr.bf16.mxu0 %v5528_v18  ;;  %v548_v18 = vld [vmem:[#allocation10] sm:$0x3] }
  0xfc   :  { %520 = vmatpush1.bf16.msra.mxu1 %v5477_v22  ;;  %v5534_v22 = vld [vmem:[#allocation6 + $0xa4] ss:$16 sps:$4 sm:$0xff]  }
  0xfd   :  { %521 = vmatprep.subr.bf16.mxu1 %v5478_v23  ;;  %v5537_v23 = vld [vmem:[#allocation6 + $0xac] ss:$16 sps:$4 sm:$0xff]  }
  0xfe   :  { %1010 = vmatpush1.bf16.msra.mxu0 %v5526_v20  ;;  %v571_v20 = vrot.slane %v548_v18, %v6837_v41 }
  0xff   :  { %1011 = vmatprep.subr.bf16.mxu0 %v5534_v22 }
 0x100   :  { %522 = vmatpush1.bf16.msra.mxu1 %v5480_v24  ;;  %v5532_v24 = vld [vmem:[#allocation6 + $0xa0] ss:$16 sps:$4 sm:$0xff]  }
 0x101   :  { %523 = vmatprep.subr.bf16.mxu1 %v5481_v25  ;;  %v5535_v25 = vld [vmem:[#allocation6 + $0xa8] ss:$16 sps:$4 sm:$0xff]  }
 0x102   :  { %1012 = vmatpush1.bf16.msra.mxu0 %v5532_v24 }
 0x104   :  { %524 = vmatpush1.bf16.msra.mxu1 %v5483_v26  ;;  %v5540_v26 = vld [vmem:[#allocation6 + $0xc4] ss:$16 sps:$4 sm:$0xff]  }
 0x105   :  { %525 = vmatprep.subr.bf16.mxu1 %v5484_v27  ;;  %v5543_v27 = vld [vmem:[#allocation6 + $0xcc] ss:$16 sps:$4 sm:$0xff]   ;;  %1013 = vmatprep.subr.bf16.mxu0 %v5540_v26 }
 0x108   :  { %526 = vmatpush1.bf16.msra.mxu1 %v5486_v28  ;;  %v5538_v28 = vld [vmem:[#allocation6 + $0xc0] ss:$16 sps:$4 sm:$0xff]  }
 0x109   :  { %527 = vmatprep.subr.bf16.mxu1 %v5487_v29  ;;  %v5541_v29 = vld [vmem:[#allocation6 + $0xc8] ss:$16 sps:$4 sm:$0xff]   ;;  %1014 = vmatpush1.bf16.msra.mxu0 %v5538_v28 }
 0x10c   :  { %528 = vmatpush1.bf16.msra.mxu1 %v5489_v30  ;;  %v5546_v30 = vld [vmem:[#allocation6 + $0xe4] ss:$16 sps:$4 sm:$0xff]  }
 0x10d   :  { %529 = vmatprep.subr.bf16.mxu1 %v5490_v31  ;;  %v5549_v31 = vld [vmem:[#allocation6 + $0xec] ss:$16 sps:$4 sm:$0xff]   ;;  %1015 = vmatprep.subr.bf16.mxu0 %v5546_v30 }
 0x110   :  { %530 = vmatpush1.bf16.msra.mxu1 %v5492_v32  ;;  %v5544_v32 = vld [vmem:[#allocation6 + $0xe0] ss:$16 sps:$4 sm:$0xff]  }
 0x111   :  { %531 = vmatprep.subr.bf16.mxu1 %v5493_v33  ;;  %v5547_v33 = vld [vmem:[#allocation6 + $0xe8] ss:$16 sps:$4 sm:$0xff]   ;;  %1016 = vmatpush1.bf16.msra.mxu0 %v5544_v32 }
 0x114   :  { %532 = vmatpush1.bf16.msra.mxu1 %v5495_v34  ;;  %v5552_v34 = vld [vmem:[#allocation6 + $0x104] ss:$16 sps:$4 sm:$0xff]  }
 0x115   :  { %533 = vmatprep.subr.bf16.mxu1 %v5496_v35  ;;  %v5555_v35 = vld [vmem:[#allocation6 + $0x10c] ss:$16 sps:$4 sm:$0xff]   ;;  %1017 = vmatprep.subr.bf16.mxu0 %v5552_v34  ;;  %v5601_v34 = vld [vmem:[#allocation7 + $0x100] ss:$8 sps:$4 sm:$0xff]  }
 0x118   :  { %534 = vmatpush1.bf16.msra.mxu1 %v5498_v36  ;;  %v5550_v36 = vld [vmem:[#allocation6 + $0x100] ss:$16 sps:$4 sm:$0xff]  }
 0x119   :  { %535 = vmatprep.subr.bf16.mxu1 %v5499_v37  ;;  %v5553_v37 = vld [vmem:[#allocation6 + $0x108] ss:$16 sps:$4 sm:$0xff]   ;;  %1018 = vmatpush1.bf16.msra.mxu0 %v5550_v36  ;;  %v5609_v36 = vld [vmem:[#allocation7 + $0x114] ss:$8 sps:$4 sm:$0xff]  }
 0x11c   :  { %536 = vmatpush1.bf16.msra.mxu1 %v5501_v38  ;;  %v5558_v38 = vld [vmem:[#allocation6 + $0x124] ss:$16 sps:$4 sm:$0xff]  }
 0x11d   :  { %1042 = vmatprep.subr.bf16.mxu1 %v5507_v5  ;;  %1019 = vmatprep.subr.bf16.mxu0 %v5558_v38  ;;  %v5588_v5 = vld [vmem:[#allocation6 + $0x1c4] ss:$16 sps:$4 sm:$0xff]   ;;  %v5607_v38 = vld [vmem:[#allocation7 + $0x110] ss:$8 sps:$4 sm:$0xff]  }
 0x1bf   :  { %v292_v46 = vpop.f32.mrb[0].mxu0 }
 0x1c0   :  { %v293_v47 = vadd.f32 %v292_v46, %v227_v44  ;;  %v294_v48 = vpop.f32.mrb[1].mxu0  ;;  %v5556_v44 = vld [vmem:[#allocation6 + $0x120] ss:$16 sps:$4 sm:$0xff]  }
 0x1c1   :  { %v295_v49 = vadd.f32 %v294_v48, %v231_v45  ;;  %v296_v50 = vpop.f32.mrb[2].mxu0  ;;  %v5559_v45 = vld [vmem:[#allocation6 + $0x128] ss:$16 sps:$4 sm:$0xff]   ;;  %1020 = vmatpush1.bf16.msra.mxu0 %v5556_v44  ;;  %v5615_v44 = vld [vmem:[#allocation7 + $0x124] ss:$8 sps:$4 sm:$0xff]  }
 0x1c2   :  { %v297_v51 = vpop.f32.mrb[3].mxu0  ;;  %v332_v53 = vpack.c.bf16 %v293_v47, %v293_v47 }
 0x1c3   :  { %v333_v52 = vpack.c.bf16 %v295_v49, %v295_v49 }
 0x1c5   :  { %537 = vmatprep.mubr.bf16.mxu1 %v333_v52 }
 0x1c6   :  { %538 = vmatmul.mubr.bf16.vlgmr.msra.gmra.mrb[0].mxu1 %v332_v53  ;;  %v5564_v53 = vld [vmem:[#allocation6 + $0x144] ss:$16 sps:$4 sm:$0xff]  }
 0x1c7   :  { %1043 = vmatpush1.bf16.msra.mxu1 %v5505_v4  ;;  %1021 = vmatprep.subr.bf16.mxu0 %v5564_v53  ;;  %v5583_v4 = vld [vmem:[#allocation6 + $0x1a8] ss:$16 sps:$4 sm:$0xff]  }
 0x1c8   :  { %1044 = vmatprep.subr.bf16.mxu1 %v5513_v7  ;;  %v5586_v7 = vld [vmem:[#allocation6 + $0x1c0] ss:$16 sps:$4 sm:$0xff]  }
 0x1c9   :  { %v5622_v53 = vld [vmem:[#allocation7 + $0x40] ss:$8 sps:$4 sm:$0xff]  }
 0x1cb   :  { %1045 = vmatpush1.bf16.msra.mxu1 %v5511_v9  ;;  %v5594_v9 = vld [vmem:[#allocation6 + $0x1e4] ss:$16 sps:$4 sm:$0xff]  }
 0x1cc   :  { %1046 = vmatprep.subr.bf16.mxu1 %v5519_v11  ;;  %v5592_v11 = vld [vmem:[#allocation6 + $0x1e0] ss:$16 sps:$4 sm:$0xff]  }
 0x1cf   :  { %1047 = vmatpush1.bf16.msra.mxu1 %v5517_v13  ;;  %v5600_v13 = vld [vmem:[#allocation7 + $0x4] ss:$8 sps:$4 sm:$0xff]  }
 0x1d0   :  { %1048 = vmatprep.subr.bf16.mxu1 %v5525_v15 }
 0x1d3   :  { %1049 = vmatpush1.bf16.msra.mxu1 %v5523_v17 }
 0x1d4   :  { %1050 = vmatprep.subr.bf16.mxu1 %v5531_v19  ;;  %v549_v19 = vld [vmem:[#allocation12] sm:$0x3] }
 0x1d5   :  { %v588_v26 = vrot.slane %v549_v19, %v6843_v43 }
 0x1d7   :  { %1051 = vmatpush1.bf16.msra.mxu1 %v5529_v21  ;;  %v575_v21 = vrot.slane %v548_v18, %v6843_v43  ;;  %v5667_v18 = vld [vmem:[#allocation7 + $0x1b0] ss:$8 sps:$4 sm:$0xff]  }
 0x1d8   :  { %1052 = vmatprep.subr.bf16.mxu1 %v5537_v23 }
 0x1db   :  { %1053 = vmatpush1.bf16.msra.mxu1 %v5535_v25  ;;  %v584_v25 = vrot.slane %v549_v19, %v6837_v41  ;;  %v5672_v19 = vld [vmem:[#allocation7 + $0xc4] ss:$8 sps:$4 sm:$0xff]  }
 0x1dc   :  { %1054 = vmatprep.subr.bf16.mxu1 %v5543_v27 }
 0x1df   :  { %1055 = vmatpush1.bf16.msra.mxu1 %v5541_v29 }
 0x1e0   :  { %1056 = vmatprep.subr.bf16.mxu1 %v5549_v31 }
 0x1e3   :  { %1057 = vmatpush1.bf16.msra.mxu1 %v5547_v33  ;;  %v5598_v33 = vld [vmem:[#allocation7] ss:$8 sps:$4 sm:$0xff]  }
 0x1e4   :  { %1058 = vmatprep.subr.bf16.mxu1 %v5555_v35  ;;  %v5606_v35 = vld [vmem:[#allocation7 + $0x14] ss:$8 sps:$4 sm:$0xff]  }
 0x1e7   :  { %1059 = vmatpush1.bf16.msra.mxu1 %v5553_v37  ;;  %v5604_v37 = vld [vmem:[#allocation7 + $0x10] ss:$8 sps:$4 sm:$0xff]  }
 0x1e8   :  { %1060 = vmatprep.subr.bf16.mxu1 %v5561_v42  ;;  %v5612_v42 = vld [vmem:[#allocation7 + $0x24] ss:$8 sps:$4 sm:$0xff]  }
 0x1eb   :  { %1061 = vmatpush1.bf16.msra.mxu1 %v5559_v45  ;;  %v5610_v45 = vld [vmem:[#allocation7 + $0x20] ss:$8 sps:$4 sm:$0xff]  }
 0x1ec   :  { %1062 = vmatprep.subr.bf16.mxu1 %v5567_v54  ;;  %v5625_v54 = vld [vmem:[#allocation7 + $0x140] ss:$8 sps:$4 sm:$0xff]  }
 0x299   :  { %v539_v57 = vpop.f32.mrb[0].mxu1 }
 0x29a   :  { %v540_v58 = vadd.f32 %v539_v57, %v338_v55  ;;  %v541_v59 = vpop.f32.mrb[1].mxu1  ;;  %v5562_v55 = vld [vmem:[#allocation6 + $0x140] ss:$16 sps:$4 sm:$0xff]   ;;  %v5570_v57 = vld [vmem:[#allocation6 + $0x164] ss:$16 sps:$4 sm:$0xff]  }
 0x29b   :  { %v542_v60 = vadd.f32 %v541_v59, %v342_v56  ;;  %v543_v61 = vpop.f32.mrb[2].mxu1  ;;  %v5565_v56 = vld [vmem:[#allocation6 + $0x148] ss:$16 sps:$4 sm:$0xff]   ;;  %1022 = vmatpush1.bf16.msra.mxu0 %v5562_v55  ;;  %v5568_v59 = vld [vmem:[#allocation6 + $0x160] ss:$16 sps:$4 sm:$0xff]  }
 0x29c   :  { %v544_v62 = vpop.f32.mrb[3].mxu1  ;;  %v6849_v63 = vadd.f32 %v540_v58, %v293_v47  ;;  %1063 = vmatpush1.bf16.msra.mxu1 %v5565_v56  ;;  %v5573_v58 = vld [vmem:[#allocation6 + $0x16c] ss:$16 sps:$4 sm:$0xff]   ;;  %1023 = vmatprep.subr.bf16.mxu0 %v5570_v57  ;;  %v5576_v61 = vld [vmem:[#allocation6 + $0x184] ss:$16 sps:$4 sm:$0xff]  }
 0x29d   :  { %v6851_v0 = vadd.f32 %v542_v60, %v295_v49  ;;  %v5571_v60 = vld [vmem:[#allocation6 + $0x168] ss:$16 sps:$4 sm:$0xff]   ;;  %1064 = vmatprep.subr.bf16.mxu1 %v5573_v58  ;;  %v5579_v62 = vld [vmem:[#allocation6 + $0x18c] ss:$16 sps:$4 sm:$0xff]  }
 0x29e   :  { %v5630_v55 = vld [vmem:[#allocation7 + $0x54] ss:$8 sps:$4 sm:$0xff]   ;;  %v5628_v57 = vld [vmem:[#allocation7 + $0x50] ss:$8 sps:$4 sm:$0xff]  }
 0x29f   :  { %v550_v1 = vadd.f32 %v6851_v0, %v6849_v63  ;;  %1024 = vmatpush1.bf16.msra.mxu0 %v5568_v59  ;;  %v5633_v56 = vld [vmem:[#allocation7 + $0x154] ss:$8 sps:$4 sm:$0xff]   ;;  %v5631_v58 = vld [vmem:[#allocation7 + $0x150] ss:$8 sps:$4 sm:$0xff]   ;;  %v5636_v59 = vld [vmem:[#allocation7 + $0x64] ss:$8 sps:$4 sm:$0xff]  }
 0x2a0   :  { %1065 = vmatpush1.bf16.msra.mxu1 %v5571_v60  ;;  %1025 = vmatprep.subr.bf16.mxu0 %v5576_v61  ;;  %v5639_v60 = vld [vmem:[#allocation7 + $0x164] ss:$8 sps:$4 sm:$0xff]   ;;  %v5634_v61 = vld [vmem:[#allocation7 + $0x60] ss:$8 sps:$4 sm:$0xff]  }
 0x2a1   :  { %551 = vadd.xlane.f32.xlu0 %v550_v1  ;;  %1066 = vmatprep.subr.bf16.mxu1 %v5579_v62  ;;  %v5582_v1 = vld [vmem:[#allocation6 + $0x1a4] ss:$16 sps:$4 sm:$0xff]   ;;  %v5637_v62 = vld [vmem:[#allocation7 + $0x160] ss:$8 sps:$4 sm:$0xff]  }
 0x32e   :  { %v552_v46 = vpop.xlane.xlu0 %551 }
 0x32f   :  { %v554_v47 = vmul.f32 0.00390625, %v552_v46  ;;  %v5613_v46 = vld [vmem:[#allocation7 + $0x120] ss:$8 sps:$4 sm:$0xff]  }
 0x331   :  { %v6856_v48 = vsub.f32 %v6849_v63, %v554_v47  ;;  %v6859_v49 = vsub.f32 %v6851_v0, %v554_v47  ;;  %v5574_v63 = vld [vmem:[#allocation6 + $0x180] ss:$16 sps:$4 sm:$0xff]   ;;  %v5577_v0 = vld [vmem:[#allocation6 + $0x188] ss:$16 sps:$4 sm:$0xff]   ;;  %v5618_v47 = vld [vmem:[#allocation7 + $0x34] ss:$8 sps:$4 sm:$0xff]  }
 0x332   :  { %1026 = vmatpush1.bf16.msra.mxu0 %v5574_v63  ;;  %1067 = vmatpush1.bf16.msra.mxu1 %v5577_v0  ;;  %v5642_v63 = vld [vmem:[#allocation7 + $0x74] ss:$8 sps:$4 sm:$0xff]  }
 0x333   :  { %v557_v50 = vmul.f32 %v6856_v48, %v6856_v48  ;;  %v558_v51 = vmul.f32 %v6859_v49, %v6859_v49  ;;  %1027 = vmatprep.subr.bf16.mxu0 %v5582_v1  ;;  %1068 = vmatprep.subr.bf16.mxu1 %v5585_v2  ;;  %v5645_v0 = vld [vmem:[#allocation7 + $0x174] ss:$8 sps:$4 sm:$0xff]   ;;  %v5640_v1 = vld [vmem:[#allocation7 + $0x70] ss:$8 sps:$4 sm:$0xff]  }
 0x334   :  { %v5643_v2 = vld [vmem:[#allocation7 + $0x170] ss:$8 sps:$4 sm:$0xff]  }
 0x335   :  { %v559_v52 = vadd.f32 %v558_v51, %v557_v50  ;;  %v5619_v50 = vld [vmem:[#allocation7 + $0x130] ss:$8 sps:$4 sm:$0xff]   ;;  %v5624_v51 = vld [vmem:[#allocation7 + $0x44] ss:$8 sps:$4 sm:$0xff]  }
 0x336   :  { %1028 = vmatpush1.bf16.msra.mxu0 %v5580_v3  ;;  %1069 = vmatpush1.bf16.msra.mxu1 %v5583_v4  ;;  %v5648_v3 = vld [vmem:[#allocation7 + $0x84] ss:$8 sps:$4 sm:$0xff]  }
 0x337   :  { %560 = vadd.xlane.f32.xlu0 %v559_v52  ;;  %1029 = vmatprep.subr.bf16.mxu0 %v5588_v5  ;;  %v5627_v52 = vld [vmem:[#allocation7 + $0x144] ss:$8 sps:$4 sm:$0xff]   ;;  %v5646_v5 = vld [vmem:[#allocation7 + $0x80] ss:$8 sps:$4 sm:$0xff]  }
 0x338   :  { %1070 = vmatprep.subr.bf16.mxu1 %v5591_v6  ;;  %v5651_v4 = vld [vmem:[#allocation7 + $0x184] ss:$8 sps:$4 sm:$0xff]   ;;  %v5649_v6 = vld [vmem:[#allocation7 + $0x180] ss:$8 sps:$4 sm:$0xff]  }
 0x33a   :  { %1030 = vmatpush1.bf16.msra.mxu0 %v5586_v7  ;;  %1071 = vmatpush1.bf16.msra.mxu1 %v5589_v8  ;;  %v5654_v7 = vld [vmem:[#allocation7 + $0x94] ss:$8 sps:$4 sm:$0xff]  }
 0x33b   :  { %1031 = vmatprep.subr.bf16.mxu0 %v5594_v9  ;;  %1072 = vmatprep.subr.bf16.mxu1 %v5597_v10  ;;  %v5657_v8 = vld [vmem:[#allocation7 + $0x194] ss:$8 sps:$4 sm:$0xff]   ;;  %v5652_v9 = vld [vmem:[#allocation7 + $0x90] ss:$8 sps:$4 sm:$0xff]  }
 0x33c   :  { %v5655_v10 = vld [vmem:[#allocation7 + $0x190] ss:$8 sps:$4 sm:$0xff]  }
 0x33e   :  { %1032 = vmatpush1.bf16.msra.mxu0 %v5592_v11  ;;  %1073 = vmatpush1.bf16.msra.mxu1 %v5595_v12  ;;  %v5660_v11 = vld [vmem:[#allocation7 + $0xa4] ss:$8 sps:$4 sm:$0xff]  }
 0x33f   :  { %1487 = vmatprep.subr.bf16.mxu0 %v5600_v13  ;;  %1528 = vmatprep.subr.bf16.mxu1 %v5603_v14  ;;  %v5663_v12 = vld [vmem:[#allocation7 + $0x1a4] ss:$8 sps:$4 sm:$0xff]   ;;  %v5658_v13 = vld [vmem:[#allocation7 + $0xa0] ss:$8 sps:$4 sm:$0xff]  }
 0x340   :  { %v5661_v14 = vld [vmem:[#allocation7 + $0x1a0] ss:$8 sps:$4 sm:$0xff]  }
 0x3c4   :  { %v561_v15 = vpop.xlane.xlu0 %560 }
 0x3c5   :  { %v562_v16 = vmul.f32 0.00390625, %v561_v15  ;;  %v5666_v15 = vld [vmem:[#allocation7 + $0xb4] ss:$8 sps:$4 sm:$0xff]  }
 0x3c7   :  { %v563_v17 = vadd.f32 1e-05, %v562_v16  ;;  %v5669_v16 = vld [vmem:[#allocation7 + $0x1b4] ss:$8 sps:$4 sm:$0xff]  }
 0x3c9   :  { %6246 = vrsqrt.f32 %v563_v17  ;;  %v5664_v17 = vld [vmem:[#allocation7 + $0xb0] ss:$8 sps:$4 sm:$0xff]  }
 0x3d3   :  { %v6247_v22 = vpop.eup %6246 }
 0x3d4   :  { %v565_v23 = vmul.f32 %v6247_v22, %v6856_v48  ;;  %v566_v24 = vmul.f32 %v6247_v22, %v6859_v49  ;;  %v5621_v48 = vld [vmem:[#allocation7 + $0x134] ss:$8 sps:$4 sm:$0xff]   ;;  %v5616_v49 = vld [vmem:[#allocation7 + $0x30] ss:$8 sps:$4 sm:$0xff]   ;;  %v5673_v22 = vld [vmem:[#allocation7 + $0x1c0] ss:$8 sps:$4 sm:$0xff]  }
 0x3d6   :  { %v579_v27 = vmul.f32 %v575_v21, %v566_v24  ;;  %v578_v28 = vmul.f32 %v571_v20, %v565_v23  ;;  %v5675_v20 = vld [vmem:[#allocation7 + $0x1c4] ss:$8 sps:$4 sm:$0xff]   ;;  %v5670_v21 = vld [vmem:[#allocation7 + $0xc0] ss:$8 sps:$4 sm:$0xff]   ;;  %v5678_v23 = vld [vmem:[#allocation7 + $0xd4] ss:$8 sps:$4 sm:$0xff]  }
 0x3d7   :  { %v5681_v24 = vld [vmem:[#allocation7 + $0x1d4] ss:$8 sps:$4 sm:$0xff]  }
 0x3d8   :  { %v6871_v29 = vadd.f32 %v588_v26, %v579_v27  ;;  %v6873_v30 = vadd.f32 %v584_v25, %v578_v28  ;;  %v5676_v25 = vld [vmem:[#allocation7 + $0xd0] ss:$8 sps:$4 sm:$0xff]   ;;  %v5684_v27 = vld [vmem:[#allocation7 + $0xe4] ss:$8 sps:$4 sm:$0xff]  }
 0x3d9   :  { %v5679_v26 = vld [vmem:[#allocation7 + $0x1d0] ss:$8 sps:$4 sm:$0xff]   ;;  %v5687_v28 = vld [vmem:[#allocation7 + $0x1e4] ss:$8 sps:$4 sm:$0xff]  }
 0x3da   :  { %v659_v31 = vpack.c.bf16 %v6871_v29, %v6871_v29  ;;  %v658_v32 = vpack.c.bf16 %v6873_v30, %v6873_v30 }
 0x3dc   :  { %1033 = vmatprep.mubr.bf16.mxu0 %v659_v31  ;;  %1074 = vmatprep.mubr.bf16.mxu1 %v659_v31  ;;  %v5682_v31 = vld [vmem:[#allocation7 + $0xe0] ss:$8 sps:$4 sm:$0xff]  }
 0x3dd   :  { %1034 = vmatmul.mubr.bf16.vlgmr.msra.gmra.mrb[4].mxu0 %v658_v32  ;;  %1075 = vmatmul.mubr.bf16.vlgmr.msra.gmra.mrb[4].mxu1 %v658_v32  ;;  %v5685_v32 = vld [vmem:[#allocation7 + $0x1e0] ss:$8 sps:$4 sm:$0xff]  }
 0x3de   :  { %1488 = vmatpush1.bf16.msra.mxu0 %v5598_v33  ;;  %1529 = vmatpush1.bf16.msra.mxu1 %v5601_v34  ;;  %v5690_v33 = vld [vmem:[#allocation7 + $0xf4] ss:$8 sps:$4 sm:$0xff]  }
 0x3df   :  { %1489 = vmatprep.subr.bf16.mxu0 %v5606_v35  ;;  %1530 = vmatprep.subr.bf16.mxu1 %v5609_v36  ;;  %v5693_v34 = vld [vmem:[#allocation7 + $0x1f4] ss:$8 sps:$4 sm:$0xff]   ;;  %v5688_v35 = vld [vmem:[#allocation7 + $0xf0] ss:$8 sps:$4 sm:$0xff]  }
 0x3e0   :  { %v5691_v36 = vld [vmem:[#allocation7 + $0x1f0] ss:$8 sps:$4 sm:$0xff]  }
 0x3e2   :  { %1490 = vmatpush1.bf16.msra.mxu0 %v5604_v37  ;;  %1531 = vmatpush1.bf16.msra.mxu1 %v5607_v38  ;;  %v6880_v37 = vsub.s32 2, %v6834_v40  ;;  %v657_v38 = vld [vmem:[%s7019_s6] sm:$0xf] }
 0x3e3   :  { %1491 = vmatprep.subr.bf16.mxu0 %v5612_v42  ;;  %1532 = vmatprep.subr.bf16.mxu1 %v5615_v44  ;;  %v6886_v42 = vsub.s32 3, %v6834_v40  ;;  %v664_v44 = vrot.slane %v657_v38, %v6837_v41 }
 0x3e6   :  { %1492 = vmatpush1.bf16.msra.mxu0 %v5610_v45  ;;  %1533 = vmatpush1.bf16.msra.mxu1 %v5613_v46  ;;  %v672_v45 = vrot.slane %v657_v38, %v6880_v37  ;;  %v668_v46 = vrot.slane %v657_v38, %v6843_v43 }
 0x3e7   :  { %1493 = vmatprep.subr.bf16.mxu0 %v5618_v47  ;;  %1534 = vmatprep.subr.bf16.mxu1 %v5621_v48  ;;  %v676_v47 = vrot.slane %v657_v38, %v6886_v42  ;;  %v5720_v38 = vld [vmem:[#allocation2 + $0x184] ss:$8 sps:$4 sm:$0xff]  }
 0x3ea   :  { %1494 = vmatpush1.bf16.msra.mxu0 %v5616_v49  ;;  %1535 = vmatpush1.bf16.msra.mxu1 %v5619_v50 }
 0x3eb   :  { %1495 = vmatprep.subr.bf16.mxu0 %v5624_v51  ;;  %1536 = vmatprep.subr.bf16.mxu1 %v5627_v52 }
 0x3ee   :  { %1496 = vmatpush1.bf16.msra.mxu0 %v5622_v53  ;;  %1537 = vmatpush1.bf16.msra.mxu1 %v5625_v54 }
 0x3ef   :  { %1497 = vmatprep.subr.bf16.mxu0 %v5630_v55  ;;  %1538 = vmatprep.subr.bf16.mxu1 %v5633_v56 }
 0x3f2   :  { %1498 = vmatpush1.bf16.msra.mxu0 %v5628_v57  ;;  %1539 = vmatpush1.bf16.msra.mxu1 %v5631_v58 }
 0x3f3   :  { %1499 = vmatprep.subr.bf16.mxu0 %v5636_v59  ;;  %1540 = vmatprep.subr.bf16.mxu1 %v5639_v60 }
 0x3f6   :  { %1500 = vmatpush1.bf16.msra.mxu0 %v5634_v61  ;;  %1541 = vmatpush1.bf16.msra.mxu1 %v5637_v62 }
 0x3f7   :  { %1501 = vmatprep.subr.bf16.mxu0 %v5642_v63  ;;  %1542 = vmatprep.subr.bf16.mxu1 %v5645_v0 }
 0x3fa   :  { %1502 = vmatpush1.bf16.msra.mxu0 %v5640_v1  ;;  %1543 = vmatpush1.bf16.msra.mxu1 %v5643_v2 }
 0x3fb   :  { %1503 = vmatprep.subr.bf16.mxu0 %v5648_v3  ;;  %1544 = vmatprep.subr.bf16.mxu1 %v5651_v4  ;;  %v1151_v3 = vld [vmem:[#allocation9] sm:$0x3] }
 0x3fc   :  { %v1160_v4 = vrot.slane %v1151_v3, %v6837_v41 }
 0x3fe   :  { %1504 = vmatpush1.bf16.msra.mxu0 %v5646_v5  ;;  %1545 = vmatpush1.bf16.msra.mxu1 %v5649_v6  ;;  %v1164_v5 = vrot.slane %v1151_v3, %v6843_v43 }
 0x3ff   :  { %1505 = vmatprep.subr.bf16.mxu0 %v5654_v7  ;;  %1546 = vmatprep.subr.bf16.mxu1 %v5657_v8 }
 0x402   :  { %1506 = vmatpush1.bf16.msra.mxu0 %v5652_v9  ;;  %1547 = vmatpush1.bf16.msra.mxu1 %v5655_v10 }
 0x403   :  { %1507 = vmatprep.subr.bf16.mxu0 %v5660_v11  ;;  %1548 = vmatprep.subr.bf16.mxu1 %v5663_v12 }
 0x406   :  { %1508 = vmatpush1.bf16.msra.mxu0 %v5658_v13  ;;  %1549 = vmatpush1.bf16.msra.mxu1 %v5661_v14 }
 0x407   :  { %1509 = vmatprep.subr.bf16.mxu0 %v5666_v15  ;;  %1550 = vmatprep.subr.bf16.mxu1 %v5669_v16 }
 0x40a   :  { %1510 = vmatpush1.bf16.msra.mxu0 %v5664_v17  ;;  %1551 = vmatpush1.bf16.msra.mxu1 %v5667_v18 }
 0x40b   :  { %1511 = vmatprep.subr.bf16.mxu0 %v5672_v19  ;;  %1552 = vmatprep.subr.bf16.mxu1 %v5675_v20 }
 0x40e   :  { %1512 = vmatpush1.bf16.msra.mxu0 %v5670_v21  ;;  %1553 = vmatpush1.bf16.msra.mxu1 %v5673_v22  ;;  %v5694_v21 = vld [vmem:[#allocation2 + $0x100] ss:$8 sps:$4 sm:$0xff]   ;;  %v5696_v22 = vld [vmem:[#allocation2 + $0x104] ss:$8 sps:$4 sm:$0xff]  }
 0x40f   :  { %1513 = vmatprep.subr.bf16.mxu0 %v5678_v23  ;;  %1554 = vmatprep.subr.bf16.mxu1 %v5681_v24  ;;  %v5699_v23 = vld [vmem:[#allocation2 + $0x114] ss:$8 sps:$4 sm:$0xff]   ;;  %v5697_v24 = vld [vmem:[#allocation2 + $0x110] ss:$8 sps:$4 sm:$0xff]  }
 0x412   :  { %1514 = vmatpush1.bf16.msra.mxu0 %v5676_v25  ;;  %1555 = vmatpush1.bf16.msra.mxu1 %v5679_v26  ;;  %v5702_v25 = vld [vmem:[#allocation2 + $0x124] ss:$8 sps:$4 sm:$0xff]   ;;  %v5700_v26 = vld [vmem:[#allocation2 + $0x120] ss:$8 sps:$4 sm:$0xff]  }
 0x413   :  { %1515 = vmatprep.subr.bf16.mxu0 %v5684_v27  ;;  %1556 = vmatprep.subr.bf16.mxu1 %v5687_v28  ;;  %v5705_v27 = vld [vmem:[#allocation2 + $0x134] ss:$8 sps:$4 sm:$0xff]   ;;  %v5703_v28 = vld [vmem:[#allocation2 + $0x130] ss:$8 sps:$4 sm:$0xff]  }
 0x416   :  { %1516 = vmatpush1.bf16.msra.mxu0 %v5682_v31  ;;  %1557 = vmatpush1.bf16.msra.mxu1 %v5685_v32  ;;  %v5711_v31 = vld [vmem:[#allocation2 + $0x154] ss:$8 sps:$4 sm:$0xff]   ;;  %v5709_v32 = vld [vmem:[#allocation2 + $0x150] ss:$8 sps:$4 sm:$0xff]  }
 0x417   :  { %1517 = vmatprep.subr.bf16.mxu0 %v5690_v33  ;;  %1558 = vmatprep.subr.bf16.mxu1 %v5693_v34  ;;  %v5714_v33 = vld [vmem:[#allocation2 + $0x164] ss:$8 sps:$4 sm:$0xff]   ;;  %v5712_v34 = vld [vmem:[#allocation2 + $0x160] ss:$8 sps:$4 sm:$0xff]  }
 0x41a   :  { %1518 = vmatpush1.bf16.msra.mxu0 %v5688_v35  ;;  %1559 = vmatpush1.bf16.msra.mxu1 %v5691_v36  ;;  %v5717_v35 = vld [vmem:[#allocation2 + $0x174] ss:$8 sps:$4 sm:$0xff]   ;;  %v5715_v36 = vld [vmem:[#allocation2 + $0x170] ss:$8 sps:$4 sm:$0xff]  }
 0x41b   :  { %1825 = vmatprep.subr.bf16.mxu0 %v5696_v22 }
 0x4b0   :  { %v1035_v48 = vpop.f32.mrb[4].mxu0  ;;  %v1076_v49 = vpop.f32.mrb[4].mxu1 }
 0x4b1   :  { %v1036_v50 = vadd.f32 %v1035_v48, %v664_v44  ;;  %v1077_v51 = vadd.f32 %v1076_v49, %v672_v45  ;;  %v1037_v52 = vpop.f32.mrb[5].mxu0  ;;  %v1078_v53 = vpop.f32.mrb[5].mxu1  ;;  %v5718_v44 = vld [vmem:[#allocation2 + $0x180] ss:$8 sps:$4 sm:$0xff]   ;;  %v5723_v45 = vld [vmem:[#allocation2 + $0x194] ss:$8 sps:$4 sm:$0xff]  }
 0x4b2   :  { %v1038_v54 = vadd.f32 %v1037_v52, %v668_v46  ;;  %v1079_v55 = vadd.f32 %v1078_v53, %v676_v47  ;;  %v1039_v56 = vpop.f32.mrb[6].mxu0  ;;  %v1080_v57 = vpop.f32.mrb[6].mxu1  ;;  %v5721_v46 = vld [vmem:[#allocation2 + $0x190] ss:$8 sps:$4 sm:$0xff]  }
 0x4b3   :  { %v1083_v40 = vmax.f32 %v1036_v50, 0.0  ;;  %v1085_v58 = vmax.f32 %v1077_v51, 0.0  ;;  %v1040_v59 = vpop.f32.mrb[7].mxu0  ;;  %v1081_v60 = vpop.f32.mrb[7].mxu1  ;;  %v5729_v56 = vld [vmem:[#allocation2 + $0x1b4] ss:$8 sps:$4 sm:$0xff]  }
 0x4b4   :  { %v1084_v61 = vmax.f32 %v1038_v54, 0.0  ;;  %v1086_v62 = vmax.f32 %v1079_v55, 0.0  ;;  %v5726_v54 = vld [vmem:[#allocation2 + $0x1a4] ss:$8 sps:$4 sm:$0xff]   ;;  %v5724_v55 = vld [vmem:[#allocation2 + $0x1a0] ss:$8 sps:$4 sm:$0xff]  }
 0x4b5   :  { %v1152_v1 = vpack.c.bf16 %v1083_v40, %v1083_v40  ;;  %v1154_v2 = vpack.c.bf16 %v1085_v58, %v1085_v58  ;;  %v5727_v57 = vld [vmem:[#allocation2 + $0x1b0] ss:$8 sps:$4 sm:$0xff]   ;;  %v5732_v40 = vld [vmem:[#allocation2 + $0x1c4] ss:$8 sps:$4 sm:$0xff]   ;;  %v5730_v58 = vld [vmem:[#allocation2 + $0x1c0] ss:$8 sps:$4 sm:$0xff]  }
 0x4b6   :  { %v1153_v63 = vpack.c.bf16 %v1084_v61, %v1084_v61  ;;  %v1155_v0 = vpack.c.bf16 %v1086_v62, %v1086_v62  ;;  %v5735_v59 = vld [vmem:[#allocation2 + $0x1d4] ss:$8 sps:$4 sm:$0xff]   ;;  %v5733_v60 = vld [vmem:[#allocation2 + $0x1d0] ss:$8 sps:$4 sm:$0xff]   ;;  %v5738_v61 = vld [vmem:[#allocation2 + $0x1e4] ss:$8 sps:$4 sm:$0xff]  }
 0x4b7   :  { %v5736_v62 = vld [vmem:[#allocation2 + $0x1e0] ss:$8 sps:$4 sm:$0xff]  }
 0x4b8   :  { %1519 = vmatprep.mubr.bf16.mxu0 %v1153_v63  ;;  %1560 = vmatprep.mubr.bf16.mxu1 %v1155_v0  ;;  %v5741_v63 = vld [vmem:[#allocation2 + $0x1f4] ss:$8 sps:$4 sm:$0xff]   ;;  %v5739_v0 = vld [vmem:[#allocation2 + $0x1f0] ss:$8 sps:$4 sm:$0xff]  }
 0x4b9   :  { %1520 = vmatmul.mubr.bf16.vlgmr.msra.gmra.mrb[8].mxu0 %v1152_v1  ;;  %1561 = vmatmul.mubr.bf16.vlgmr.msra.gmra.mrb[8].mxu1 %v1154_v2 }
 0x4ba   :  { %1826 = vmatpush1.bf16.msra.mxu0 %v5694_v21 }
 0x4bb   :  { %1827 = vmatprep.subr.bf16.mxu0 %v5699_v23 }
 0x4be   :  { %1828 = vmatpush1.bf16.msra.mxu0 %v5697_v24 }
 0x4bf   :  { %1829 = vmatprep.subr.bf16.mxu0 %v5702_v25 }
 0x4c2   :  { %1830 = vmatpush1.bf16.msra.mxu0 %v5700_v26 }
 0x4c3   :  { %1831 = vmatprep.subr.bf16.mxu0 %v5705_v27 }
 0x4c6   :  { %1832 = vmatpush1.bf16.msra.mxu0 %v5703_v28 }
 0x58c   :  { %v1521_v6 = vpop.f32.mrb[8].mxu0  ;;  %v1562_v7 = vpop.f32.mrb[8].mxu1 }
 0x58d   :  { %v1522_v8 = vadd.f32 %v1521_v6, %v1160_v4  ;;  %v1523_v9 = vpop.f32.mrb[9].mxu0  ;;  %v1564_v10 = vpop.f32.mrb[9].mxu1  ;;  %v1572_v4 = vld [vmem:[#allocation10 + $0x2] sm:$0x3] }
 0x58e   :  { %v1524_v11 = vadd.f32 %v1523_v9, %v1164_v5  ;;  %v1525_v12 = vpop.f32.mrb[10].mxu0  ;;  %v1566_v13 = vpop.f32.mrb[10].mxu1  ;;  %v1574_v5 = vld [vmem:[#allocation12 + $0x2] sm:$0x3]  ;;  %v1595_v6 = vrot.slane %v1572_v4, %v6837_v41 }
 0x58f   :  { %v1563_v14 = vadd.f32 %v1562_v7, %v1522_v8  ;;  %v1526_v15 = vpop.f32.mrb[11].mxu0  ;;  %v1567_v16 = vpop.f32.mrb[11].mxu1  ;;  %v1599_v7 = vrot.slane %v1572_v4, %v6843_v43  ;;  %v1612_v12 = vrot.slane %v1574_v5, %v6843_v43  ;;  %v5792_v4 = vld [vmem:[#allocation6 + $0x304] ss:$16 sps:$4 sm:$0xff]  }
 0x590   :  { %v1565_v17 = vadd.f32 %v1564_v10, %v1524_v11  ;;  %v1608_v11 = vrot.slane %v1574_v5, %v6837_v41  ;;  %v5795_v5 = vld [vmem:[#allocation6 + $0x30c] ss:$16 sps:$4 sm:$0xff]  }
 0x591   :  { %v1569_v18 = vadd.f32 %v1563_v14, %v6873_v30  ;;  %v5708_v30 = vld [vmem:[#allocation2 + $0x144] ss:$8 sps:$4 sm:$0xff]  }
 0x592   :  { %v1570_v19 = vadd.f32 %v1565_v17, %v6871_v29  ;;  %v5706_v29 = vld [vmem:[#allocation2 + $0x140] ss:$8 sps:$4 sm:$0xff]   ;;  %1833 = vmatprep.subr.bf16.mxu0 %v5708_v30 }
 0x593   :  { %1834 = vmatpush1.bf16.msra.mxu0 %v5706_v29 }
 0x594   :  { %v1575_v20 = vadd.f32 %v1570_v19, %v1569_v18  ;;  %1835 = vmatprep.subr.bf16.mxu0 %v5711_v31  ;;  %v5742_v31 = vld [vmem:[#allocation6 + $0x200] ss:$16 sps:$4 sm:$0xff]  }
 0x596   :  { %1576 = vadd.xlane.f32.xlu1 %v1575_v20 }
 0x597   :  { %1836 = vmatpush1.bf16.msra.mxu0 %v5709_v32  ;;  %v5744_v32 = vld [vmem:[#allocation6 + $0x204] ss:$16 sps:$4 sm:$0xff]  }
 0x598   :  { %1837 = vmatprep.subr.bf16.mxu0 %v5714_v33  ;;  %v5745_v33 = vld [vmem:[#allocation6 + $0x208] ss:$16 sps:$4 sm:$0xff]   ;;  %2324 = vmatprep.subr.bf16.mxu1 %v5744_v32  ;;  %v5825_v32 = vld [vmem:[#allocation6 + $0x3ac] ss:$16 sps:$4 sm:$0xff]  }
 0x599   :  { %2325 = vmatpush1.bf16.msra.mxu1 %v5742_v31  ;;  %v5822_v31 = vld [vmem:[#allocation6 + $0x3a4] ss:$16 sps:$4 sm:$0xff]  }
 0x59b   :  { %1838 = vmatpush1.bf16.msra.mxu0 %v5712_v34  ;;  %v5747_v34 = vld [vmem:[#allocation6 + $0x20c] ss:$16 sps:$4 sm:$0xff]  }
 0x59c   :  { %1839 = vmatprep.subr.bf16.mxu0 %v5717_v35  ;;  %v5750_v35 = vld [vmem:[#allocation6 + $0x224] ss:$16 sps:$4 sm:$0xff]  }
 0x59d   :  { %2326 = vmatprep.subr.bf16.mxu1 %v5750_v35  ;;  %v5828_v35 = vld [vmem:[#allocation6 + $0x3c4] ss:$16 sps:$4 sm:$0xff]  }
 0x59f   :  { %1840 = vmatpush1.bf16.msra.mxu0 %v5715_v36  ;;  %v5753_v36 = vld [vmem:[#allocation6 + $0x22c] ss:$16 sps:$4 sm:$0xff]  }
 0x5a0   :  { %1841 = vmatprep.subr.bf16.mxu0 %v5720_v38  ;;  %v5748_v38 = vld [vmem:[#allocation6 + $0x220] ss:$16 sps:$4 sm:$0xff]  }
 0x5a1   :  { %2327 = vmatpush1.bf16.msra.mxu1 %v5748_v38  ;;  %v5826_v38 = vld [vmem:[#allocation6 + $0x3c0] ss:$16 sps:$4 sm:$0xff]  }
 0x5a3   :  { %1842 = vmatpush1.bf16.msra.mxu0 %v5718_v44  ;;  %v5751_v44 = vld [vmem:[#allocation6 + $0x228] ss:$16 sps:$4 sm:$0xff]  }
 0x5a4   :  { %1843 = vmatprep.subr.bf16.mxu0 %v5723_v45  ;;  %v5756_v45 = vld [vmem:[#allocation6 + $0x244] ss:$16 sps:$4 sm:$0xff]  }
 0x5a5   :  { %2328 = vmatprep.subr.bf16.mxu1 %v5756_v45  ;;  %v5834_v45 = vld [vmem:[#allocation6 + $0x3e4] ss:$16 sps:$4 sm:$0xff]  }
 0x5a7   :  { %1844 = vmatpush1.bf16.msra.mxu0 %v5721_v46  ;;  %v5759_v46 = vld [vmem:[#allocation6 + $0x24c] ss:$16 sps:$4 sm:$0xff]  }
 0x5a8   :  { %1845 = vmatprep.subr.bf16.mxu0 %v5726_v54  ;;  %v5771_v54 = vld [vmem:[#allocation6 + $0x28c] ss:$16 sps:$4 sm:$0xff]  }
 0x5ab   :  { %1846 = vmatpush1.bf16.msra.mxu0 %v5724_v55  ;;  %v5766_v55 = vld [vmem:[#allocation6 + $0x280] ss:$16 sps:$4 sm:$0xff]  }
 0x5ac   :  { %1847 = vmatprep.subr.bf16.mxu0 %v5729_v56  ;;  %v5769_v56 = vld [vmem:[#allocation6 + $0x288] ss:$16 sps:$4 sm:$0xff]  }
 0x5af   :  { %1848 = vmatpush1.bf16.msra.mxu0 %v5727_v57  ;;  %v5774_v57 = vld [vmem:[#allocation6 + $0x2a4] ss:$16 sps:$4 sm:$0xff]  }
 0x5b0   :  { %1849 = vmatprep.subr.bf16.mxu0 %v5732_v40  ;;  %v5777_v40 = vld [vmem:[#allocation6 + $0x2ac] ss:$16 sps:$4 sm:$0xff]  }
 0x5b3   :  { %1850 = vmatpush1.bf16.msra.mxu0 %v5730_v58  ;;  %v5772_v58 = vld [vmem:[#allocation6 + $0x2a0] ss:$16 sps:$4 sm:$0xff]  }
 0x5b4   :  { %1851 = vmatprep.subr.bf16.mxu0 %v5735_v59  ;;  %v5775_v59 = vld [vmem:[#allocation6 + $0x2a8] ss:$16 sps:$4 sm:$0xff]  }
 0x5b7   :  { %1852 = vmatpush1.bf16.msra.mxu0 %v5733_v60  ;;  %v5780_v60 = vld [vmem:[#allocation6 + $0x2c4] ss:$16 sps:$4 sm:$0xff]  }
 0x5b8   :  { %1853 = vmatprep.subr.bf16.mxu0 %v5738_v61  ;;  %v5783_v61 = vld [vmem:[#allocation6 + $0x2cc] ss:$16 sps:$4 sm:$0xff]  }
 0x5bb   :  { %1854 = vmatpush1.bf16.msra.mxu0 %v5736_v62  ;;  %v5778_v62 = vld [vmem:[#allocation6 + $0x2c0] ss:$16 sps:$4 sm:$0xff]  }
 0x5bc   :  { %1855 = vmatprep.subr.bf16.mxu0 %v5741_v63  ;;  %v5781_v63 = vld [vmem:[#allocation6 + $0x2c8] ss:$16 sps:$4 sm:$0xff]  }
 0x5bf   :  { %1856 = vmatpush1.bf16.msra.mxu0 %v5739_v0  ;;  %v5786_v0 = vld [vmem:[#allocation6 + $0x2e4] ss:$16 sps:$4 sm:$0xff]  }
 0x5c0   :  { %2365 = vmatprep.subr.bf16.mxu0 %v5747_v34  ;;  %v5823_v34 = vld [vmem:[#allocation6 + $0x3a8] ss:$16 sps:$4 sm:$0xff]  }
 0x623   :  { %v1577_v47 = vpop.xlane.xlu1 %1576 }
 0x624   :  { %v1578_v48 = vmul.f32 0.00390625, %v1577_v47  ;;  %v5754_v47 = vld [vmem:[#allocation6 + $0x240] ss:$16 sps:$4 sm:$0xff]  }
 0x625   :  { %2329 = vmatpush1.bf16.msra.mxu1 %v5754_v47  ;;  %v5832_v47 = vld [vmem:[#allocation6 + $0x3e0] ss:$16 sps:$4 sm:$0xff]  }
 0x626   :  { %v1579_v49 = vsub.f32 %v1569_v18, %v1578_v48  ;;  %v1580_v50 = vsub.f32 %v1570_v19, %v1578_v48  ;;  %v1651_v19 = vld [vmem:[#allocation4 + $0x2] sm:$0x3]  ;;  %v5757_v48 = vld [vmem:[#allocation6 + $0x248] ss:$16 sps:$4 sm:$0xff]  }
 0x627   :  { %v1658_v20 = vrot.slane %v1651_v19, %v6837_v41  ;;  %v1662_v21 = vrot.slane %v1651_v19, %v6843_v43  ;;  %v5804_v19 = vld [vmem:[#allocation6 + $0x344] ss:$16 sps:$4 sm:$0xff]  }
 0x628   :  { %v1581_v51 = vmul.f32 %v1579_v49, %v1579_v49  ;;  %v1582_v52 = vmul.f32 %v1580_v50, %v1580_v50 }
 0x62a   :  { %v1583_v53 = vadd.f32 %v1582_v52, %v1581_v51  ;;  %v5760_v51 = vld [vmem:[#allocation6 + $0x260] ss:$16 sps:$4 sm:$0xff]   ;;  %v5763_v52 = vld [vmem:[#allocation6 + $0x268] ss:$16 sps:$4 sm:$0xff]  }
 0x62c   :  { %1584 = vadd.xlane.f32.xlu1 %v1583_v53  ;;  %v5768_v53 = vld [vmem:[#allocation6 + $0x284] ss:$16 sps:$4 sm:$0xff]  }
 0x6b9   :  { %v1585_v1 = vpop.xlane.xlu1 %1584 }
 0x6ba   :  { %v1586_v2 = vmul.f32 0.00390625, %v1585_v1  ;;  %v5789_v1 = vld [vmem:[#allocation6 + $0x2ec] ss:$16 sps:$4 sm:$0xff]  }
 0x6bc   :  { %v1587_v3 = vadd.f32 1e-05, %v1586_v2  ;;  %v5784_v2 = vld [vmem:[#allocation6 + $0x2e0] ss:$16 sps:$4 sm:$0xff]  }
 0x6be   :  { %6248 = vrsqrt.f32 %v1587_v3  ;;  %v5787_v3 = vld [vmem:[#allocation6 + $0x2e8] ss:$16 sps:$4 sm:$0xff]  }
 0x6c8   :  { %v6249_v8 = vpop.eup %6248 }
 0x6c9   :  { %v1589_v9 = vmul.f32 %v6249_v8, %v1579_v49  ;;  %v1590_v10 = vmul.f32 %v6249_v8, %v1580_v50  ;;  %v5762_v49 = vld [vmem:[#allocation6 + $0x264] ss:$16 sps:$4 sm:$0xff]   ;;  %v5765_v50 = vld [vmem:[#allocation6 + $0x26c] ss:$16 sps:$4 sm:$0xff]  }
 0x6ca   :  { %2330 = vmatprep.subr.bf16.mxu1 %v5762_v49  ;;  %v5798_v8 = vld [vmem:[#allocation6 + $0x324] ss:$16 sps:$4 sm:$0xff]  }
 0x6cb   :  { %v1603_v13 = vmul.f32 %v1599_v7, %v1590_v10  ;;  %v1602_v14 = vmul.f32 %v1595_v6, %v1589_v9  ;;  %2331 = vmatpush1.bf16.msra.mxu1 %v5760_v51  ;;  %v5790_v6 = vld [vmem:[#allocation6 + $0x300] ss:$16 sps:$4 sm:$0xff]   ;;  %v5793_v7 = vld [vmem:[#allocation6 + $0x308] ss:$16 sps:$4 sm:$0xff]   ;;  %v5801_v9 = vld [vmem:[#allocation6 + $0x32c] ss:$16 sps:$4 sm:$0xff]  }
 0x6cc   :  { %2332 = vmatprep.subr.bf16.mxu1 %v5768_v53  ;;  %v5796_v10 = vld [vmem:[#allocation6 + $0x320] ss:$16 sps:$4 sm:$0xff]   ;;  %v5840_v49 = vld [vmem:[#allocation7 + $0x204] ss:$8 sps:$4 sm:$0xff]  }
 0x6cd   :  { %v1616_v15 = vadd.f32 %v1612_v12, %v1603_v13  ;;  %v1615_v16 = vadd.f32 %v1608_v11, %v1602_v14  ;;  %v5799_v11 = vld [vmem:[#allocation6 + $0x328] ss:$16 sps:$4 sm:$0xff]  }
 0x6cf   :  { %v1653_v17 = vpack.c.bf16 %v1616_v15, %v1616_v15  ;;  %v1652_v18 = vpack.c.bf16 %v1615_v16, %v1615_v16  ;;  %2333 = vmatpush1.bf16.msra.mxu1 %v5766_v55  ;;  %v1871_v55 = vld [vmem:[#allocation12 + $0x4] sm:$0x3] }
 0x6d0   :  { %2334 = vmatprep.subr.bf16.mxu1 %v5774_v57 }
 0x6d1   :  { %1857 = vmatprep.mubr.bf16.mxu0 %v1653_v17 }
 0x6d2   :  { %1858 = vmatmul.mubr.bf16.vlgmr.msra.gmra.mrb[12].mxu0 %v1652_v18 }
 0x6d3   :  { %2366 = vmatpush1.bf16.msra.mxu0 %v5745_v33  ;;  %2335 = vmatpush1.bf16.msra.mxu1 %v5772_v58  ;;  %v5820_v33 = vld [vmem:[#allocation6 + $0x3a0] ss:$16 sps:$4 sm:$0xff]  }
 0x6d4   :  { %2367 = vmatprep.subr.bf16.mxu0 %v5753_v36  ;;  %2336 = vmatprep.subr.bf16.mxu1 %v5780_v60  ;;  %v5831_v36 = vld [vmem:[#allocation6 + $0x3cc] ss:$16 sps:$4 sm:$0xff]   ;;  %v1905_v60 = vrot.slane %v1871_v55, %v6837_v41 }
 0x6d7   :  { %2368 = vmatpush1.bf16.msra.mxu0 %v5751_v44  ;;  %2337 = vmatpush1.bf16.msra.mxu1 %v5778_v62  ;;  %v5829_v44 = vld [vmem:[#allocation6 + $0x3c8] ss:$16 sps:$4 sm:$0xff]  }
 0x6d8   :  { %2369 = vmatprep.subr.bf16.mxu0 %v5759_v46  ;;  %2338 = vmatprep.subr.bf16.mxu1 %v5786_v0  ;;  %v5837_v46 = vld [vmem:[#allocation6 + $0x3ec] ss:$16 sps:$4 sm:$0xff]  }
 0x6db   :  { %2370 = vmatpush1.bf16.msra.mxu0 %v5757_v48  ;;  %2339 = vmatpush1.bf16.msra.mxu1 %v5784_v2  ;;  %v5835_v48 = vld [vmem:[#allocation6 + $0x3e8] ss:$16 sps:$4 sm:$0xff]  }
 0x6dc   :  { %2371 = vmatprep.subr.bf16.mxu0 %v5765_v50  ;;  %2340 = vmatprep.subr.bf16.mxu1 %v5792_v4  ;;  %v5843_v50 = vld [vmem:[#allocation7 + $0x304] ss:$8 sps:$4 sm:$0xff]   ;;  %v5838_v4 = vld [vmem:[#allocation7 + $0x200] ss:$8 sps:$4 sm:$0xff]  }
 0x6df   :  { %2372 = vmatpush1.bf16.msra.mxu0 %v5763_v52  ;;  %2341 = vmatpush1.bf16.msra.mxu1 %v5790_v6  ;;  %v5846_v6 = vld [vmem:[#allocation7 + $0x214] ss:$8 sps:$4 sm:$0xff]  }
 0x6e0   :  { %2373 = vmatprep.subr.bf16.mxu0 %v5771_v54  ;;  %2342 = vmatprep.subr.bf16.mxu1 %v5798_v8  ;;  %v1869_v54 = vld [vmem:[#allocation10 + $0x4] sm:$0x3]  ;;  %v5844_v8 = vld [vmem:[#allocation7 + $0x210] ss:$8 sps:$4 sm:$0xff]  }
 0x6e1   :  { %v1896_v57 = vrot.slane %v1869_v54, %v6843_v43 }
 0x6e3   :  { %2374 = vmatpush1.bf16.msra.mxu0 %v5769_v56  ;;  %2343 = vmatpush1.bf16.msra.mxu1 %v5796_v10  ;;  %v1892_v56 = vrot.slane %v1869_v54, %v6837_v41  ;;  %v5852_v10 = vld [vmem:[#allocation7 + $0x224] ss:$8 sps:$4 sm:$0xff]   ;;  %v5904_v54 = vld [vmem:[#allocation7 + $0x2b0] ss:$8 sps:$4 sm:$0xff]  }
 0x6e4   :  { %2375 = vmatprep.subr.bf16.mxu0 %v5777_v40  ;;  %2344 = vmatprep.subr.bf16.mxu1 %v5804_v19  ;;  %v5867_v19 = vld [vmem:[#allocation7 + $0x344] ss:$8 sps:$4 sm:$0xff]  }
 0x6e7   :  { %2376 = vmatpush1.bf16.msra.mxu0 %v5775_v59 }
 0x6e8   :  { %2377 = vmatprep.subr.bf16.mxu0 %v5783_v61  ;;  %v1909_v61 = vrot.slane %v1871_v55, %v6843_v43  ;;  %v5907_v55 = vld [vmem:[#allocation7 + $0x3b0] ss:$8 sps:$4 sm:$0xff]  }
 0x6eb   :  { %2378 = vmatpush1.bf16.msra.mxu0 %v5781_v63 }
 0x6ec   :  { %2379 = vmatprep.subr.bf16.mxu0 %v5789_v1 }
 0x6ef   :  { %2380 = vmatpush1.bf16.msra.mxu0 %v5787_v3 }
 0x6f0   :  { %2381 = vmatprep.subr.bf16.mxu0 %v5795_v5  ;;  %v5841_v5 = vld [vmem:[#allocation7 + $0x300] ss:$8 sps:$4 sm:$0xff]  }
 0x6f3   :  { %2382 = vmatpush1.bf16.msra.mxu0 %v5793_v7  ;;  %v5849_v7 = vld [vmem:[#allocation7 + $0x314] ss:$8 sps:$4 sm:$0xff]  }
 0x6f4   :  { %2383 = vmatprep.subr.bf16.mxu0 %v5801_v9  ;;  %v5847_v9 = vld [vmem:[#allocation7 + $0x310] ss:$8 sps:$4 sm:$0xff]  }
 0x6f7   :  { %2384 = vmatpush1.bf16.msra.mxu0 %v5799_v11  ;;  %v5855_v11 = vld [vmem:[#allocation7 + $0x324] ss:$8 sps:$4 sm:$0xff]  }
 0x7a5   :  { %v1859_v22 = vpop.f32.mrb[12].mxu0 }
 0x7a6   :  { %v1860_v23 = vadd.f32 %v1859_v22, %v1658_v20  ;;  %v1861_v24 = vpop.f32.mrb[13].mxu0  ;;  %v5807_v20 = vld [vmem:[#allocation6 + $0x34c] ss:$16 sps:$4 sm:$0xff]   ;;  %v5805_v22 = vld [vmem:[#allocation6 + $0x348] ss:$16 sps:$4 sm:$0xff]  }
 0x7a7   :  { %v1862_v25 = vadd.f32 %v1861_v24, %v1662_v21  ;;  %v1863_v26 = vpop.f32.mrb[14].mxu0  ;;  %v5802_v21 = vld [vmem:[#allocation6 + $0x340] ss:$16 sps:$4 sm:$0xff]   ;;  %2385 = vmatprep.subr.bf16.mxu0 %v5807_v20  ;;  %v5813_v24 = vld [vmem:[#allocation6 + $0x36c] ss:$16 sps:$4 sm:$0xff]  }
 0x7a8   :  { %v6902_v27 = vadd.f32 %v1860_v23, %v1615_v16  ;;  %v1864_v28 = vpop.f32.mrb[15].mxu0  ;;  %2345 = vmatpush1.bf16.msra.mxu1 %v5802_v21  ;;  %2386 = vmatpush1.bf16.msra.mxu0 %v5805_v22  ;;  %v5810_v23 = vld [vmem:[#allocation6 + $0x364] ss:$16 sps:$4 sm:$0xff]   ;;  %v5811_v26 = vld [vmem:[#allocation6 + $0x368] ss:$16 sps:$4 sm:$0xff]  }
 0x7a9   :  { %v6904_v30 = vadd.f32 %v1862_v25, %v1616_v15  ;;  %v5808_v25 = vld [vmem:[#allocation6 + $0x360] ss:$16 sps:$4 sm:$0xff]   ;;  %2346 = vmatprep.subr.bf16.mxu1 %v5810_v23  ;;  %2387 = vmatprep.subr.bf16.mxu0 %v5813_v24  ;;  %v5819_v28 = vld [vmem:[#allocation6 + $0x38c] ss:$16 sps:$4 sm:$0xff]  }
 0x7aa   :  { %v5862_v20 = vld [vmem:[#allocation7 + $0x240] ss:$8 sps:$4 sm:$0xff]   ;;  %v5870_v22 = vld [vmem:[#allocation7 + $0x254] ss:$8 sps:$4 sm:$0xff]   ;;  %v5868_v24 = vld [vmem:[#allocation7 + $0x250] ss:$8 sps:$4 sm:$0xff]  }
 0x7ab   :  { %v1872_v29 = vadd.f32 %v6904_v30, %v6902_v27  ;;  %v5865_v21 = vld [vmem:[#allocation7 + $0x340] ss:$8 sps:$4 sm:$0xff]   ;;  %v5873_v23 = vld [vmem:[#allocation7 + $0x354] ss:$8 sps:$4 sm:$0xff]  }
 0x7ac   :  { %2347 = vmatpush1.bf16.msra.mxu1 %v5808_v25  ;;  %2388 = vmatpush1.bf16.msra.mxu0 %v5811_v26  ;;  %v5871_v25 = vld [vmem:[#allocation7 + $0x350] ss:$8 sps:$4 sm:$0xff]   ;;  %v5876_v26 = vld [vmem:[#allocation7 + $0x264] ss:$8 sps:$4 sm:$0xff]  }
 0x7ad   :  { %1873 = vadd.xlane.f32.xlu0 %v1872_v29  ;;  %v5817_v29 = vld [vmem:[#allocation6 + $0x388] ss:$16 sps:$4 sm:$0xff]   ;;  %2389 = vmatprep.subr.bf16.mxu0 %v5819_v28 }
 0x7ae   :  { %v5874_v28 = vld [vmem:[#allocation7 + $0x260] ss:$8 sps:$4 sm:$0xff]  }
 0x7b0   :  { %2390 = vmatpush1.bf16.msra.mxu0 %v5817_v29  ;;  %v5882_v29 = vld [vmem:[#allocation7 + $0x274] ss:$8 sps:$4 sm:$0xff]  }
 0x7b1   :  { %2391 = vmatprep.subr.bf16.mxu0 %v5825_v32  ;;  %v5880_v32 = vld [vmem:[#allocation7 + $0x270] ss:$8 sps:$4 sm:$0xff]  }
 0x7b4   :  { %2392 = vmatpush1.bf16.msra.mxu0 %v5823_v34  ;;  %v5888_v34 = vld [vmem:[#allocation7 + $0x284] ss:$8 sps:$4 sm:$0xff]  }
 0x7b5   :  { %2393 = vmatprep.subr.bf16.mxu0 %v5831_v36  ;;  %v5886_v36 = vld [vmem:[#allocation7 + $0x280] ss:$8 sps:$4 sm:$0xff]  }
 0x7b8   :  { %2394 = vmatpush1.bf16.msra.mxu0 %v5829_v44  ;;  %v5894_v44 = vld [vmem:[#allocation7 + $0x294] ss:$8 sps:$4 sm:$0xff]  }
 0x7b9   :  { %2395 = vmatprep.subr.bf16.mxu0 %v5837_v46  ;;  %v5892_v46 = vld [vmem:[#allocation7 + $0x290] ss:$8 sps:$4 sm:$0xff]  }
 0x7bc   :  { %2396 = vmatpush1.bf16.msra.mxu0 %v5835_v48  ;;  %v5900_v48 = vld [vmem:[#allocation7 + $0x2a4] ss:$8 sps:$4 sm:$0xff]  }
 0x7bd   :  { %2853 = vmatprep.subr.bf16.mxu0 %v5843_v50  ;;  %v5898_v50 = vld [vmem:[#allocation7 + $0x2a0] ss:$8 sps:$4 sm:$0xff]  }
 0x83a   :  { %v1874_v12 = vpop.xlane.xlu0 %1873 }
 0x83b   :  { %v1875_v13 = vmul.f32 0.00390625, %v1874_v12  ;;  %v5850_v12 = vld [vmem:[#allocation7 + $0x220] ss:$8 sps:$4 sm:$0xff]  }
 0x83d   :  { %v6909_v14 = vsub.f32 %v6902_v27, %v1875_v13  ;;  %v6912_v15 = vsub.f32 %v6904_v30, %v1875_v13  ;;  %v5816_v27 = vld [vmem:[#allocation6 + $0x384] ss:$16 sps:$4 sm:$0xff]   ;;  %v5814_v30 = vld [vmem:[#allocation6 + $0x380] ss:$16 sps:$4 sm:$0xff]  }
 0x83e   :  { %2348 = vmatprep.subr.bf16.mxu1 %v5816_v27  ;;  %v5853_v13 = vld [vmem:[#allocation7 + $0x320] ss:$8 sps:$4 sm:$0xff]   ;;  %v5879_v27 = vld [vmem:[#allocation7 + $0x364] ss:$8 sps:$4 sm:$0xff]  }
 0x83f   :  { %v1878_v16 = vmul.f32 %v6909_v14, %v6909_v14  ;;  %v1879_v17 = vmul.f32 %v6912_v15, %v6912_v15  ;;  %2349 = vmatpush1.bf16.msra.mxu1 %v5814_v30  ;;  %v5877_v30 = vld [vmem:[#allocation7 + $0x360] ss:$8 sps:$4 sm:$0xff]  }
 0x840   :  { %2350 = vmatprep.subr.bf16.mxu1 %v5822_v31  ;;  %v5885_v31 = vld [vmem:[#allocation7 + $0x374] ss:$8 sps:$4 sm:$0xff]  }
 0x841   :  { %v1880_v18 = vadd.f32 %v1879_v17, %v1878_v16  ;;  %v5856_v16 = vld [vmem:[#allocation7 + $0x230] ss:$8 sps:$4 sm:$0xff]  }
 0x842   :  { %v5859_v17 = vld [vmem:[#allocation7 + $0x330] ss:$8 sps:$4 sm:$0xff]  }
 0x843   :  { %1881 = vadd.xlane.f32.xlu1 %v1880_v18  ;;  %2351 = vmatpush1.bf16.msra.mxu1 %v5820_v33  ;;  %v5864_v18 = vld [vmem:[#allocation7 + $0x244] ss:$8 sps:$4 sm:$0xff]   ;;  %v5883_v33 = vld [vmem:[#allocation7 + $0x370] ss:$8 sps:$4 sm:$0xff]  }
 0x844   :  { %2352 = vmatprep.subr.bf16.mxu1 %v5828_v35  ;;  %v5891_v35 = vld [vmem:[#allocation7 + $0x384] ss:$8 sps:$4 sm:$0xff]  }
 0x847   :  { %2353 = vmatpush1.bf16.msra.mxu1 %v5826_v38  ;;  %v5889_v38 = vld [vmem:[#allocation7 + $0x380] ss:$8 sps:$4 sm:$0xff]  }
 0x848   :  { %2354 = vmatprep.subr.bf16.mxu1 %v5834_v45  ;;  %v5897_v45 = vld [vmem:[#allocation7 + $0x394] ss:$8 sps:$4 sm:$0xff]  }
 0x84b   :  { %2355 = vmatpush1.bf16.msra.mxu1 %v5832_v47  ;;  %v5895_v47 = vld [vmem:[#allocation7 + $0x390] ss:$8 sps:$4 sm:$0xff]  }
 0x84c   :  { %2812 = vmatprep.subr.bf16.mxu1 %v5840_v49  ;;  %v5903_v49 = vld [vmem:[#allocation7 + $0x3a4] ss:$8 sps:$4 sm:$0xff]  }
 0x8d0   :  { %v1882_v51 = vpop.xlane.xlu1 %1881 }
 0x8d1   :  { %v1883_v52 = vmul.f32 0.00390625, %v1882_v51  ;;  %v5901_v51 = vld [vmem:[#allocation7 + $0x3a0] ss:$8 sps:$4 sm:$0xff]  }
 0x8d3   :  { %v1884_v53 = vadd.f32 1e-05, %v1883_v52  ;;  %v5906_v52 = vld [vmem:[#allocation7 + $0x2b4] ss:$8 sps:$4 sm:$0xff]  }
 0x8d5   :  { %6250 = vrsqrt.f32 %v1884_v53  ;;  %v5909_v53 = vld [vmem:[#allocation7 + $0x3b4] ss:$8 sps:$4 sm:$0xff]  }
 0x8df   :  { %v6251_v40 = vpop.eup %6250 }
 0x8e0   :  { %v1886_v58 = vmul.f32 %v6251_v40, %v6909_v14  ;;  %v1887_v59 = vmul.f32 %v6251_v40, %v6912_v15  ;;  %v5858_v14 = vld [vmem:[#allocation7 + $0x234] ss:$8 sps:$4 sm:$0xff]   ;;  %v5910_v40 = vld [vmem:[#allocation7 + $0x2c0] ss:$8 sps:$4 sm:$0xff]  }
 0x8e1   :  { %v5861_v15 = vld [vmem:[#allocation7 + $0x334] ss:$8 sps:$4 sm:$0xff]  }
 0x8e2   :  { %v1900_v62 = vmul.f32 %v1896_v57, %v1887_v59  ;;  %v1899_v63 = vmul.f32 %v1892_v56, %v1886_v58  ;;  %v5912_v56 = vld [vmem:[#allocation7 + $0x2c4] ss:$8 sps:$4 sm:$0xff]   ;;  %v5913_v58 = vld [vmem:[#allocation7 + $0x3c0] ss:$8 sps:$4 sm:$0xff]   ;;  %v5918_v59 = vld [vmem:[#allocation7 + $0x2d4] ss:$8 sps:$4 sm:$0xff]  }
 0x8e3   :  { %v5915_v57 = vld [vmem:[#allocation7 + $0x3c4] ss:$8 sps:$4 sm:$0xff]  }
 0x8e4   :  { %v6924_v0 = vadd.f32 %v1909_v61, %v1900_v62  ;;  %v6926_v1 = vadd.f32 %v1905_v60, %v1899_v63  ;;  %v5921_v60 = vld [vmem:[#allocation7 + $0x3d4] ss:$8 sps:$4 sm:$0xff]   ;;  %v5916_v61 = vld [vmem:[#allocation7 + $0x2d0] ss:$8 sps:$4 sm:$0xff]   ;;  %v5924_v63 = vld [vmem:[#allocation7 + $0x2e4] ss:$8 sps:$4 sm:$0xff]  }
 0x8e5   :  { %v5919_v62 = vld [vmem:[#allocation7 + $0x3d0] ss:$8 sps:$4 sm:$0xff]  }
 0x8e6   :  { %v1982_v2 = vpack.c.bf16 %v6924_v0, %v6924_v0  ;;  %v1981_v3 = vpack.c.bf16 %v6926_v1, %v6926_v1 }
 0x8e8   :  { %2356 = vmatprep.mubr.bf16.mxu1 %v1982_v2  ;;  %2397 = vmatprep.mubr.bf16.mxu0 %v1982_v2  ;;  %v5927_v2 = vld [vmem:[#allocation7 + $0x3e4] ss:$8 sps:$4 sm:$0xff]  }
 0x8e9   :  { %2357 = vmatmul.mubr.bf16.vlgmr.msra.gmra.mrb[12].mxu1 %v1981_v3  ;;  %2398 = vmatmul.mubr.bf16.vlgmr.msra.gmra.mrb[16].mxu0 %v1981_v3  ;;  %v5922_v3 = vld [vmem:[#allocation7 + $0x2e0] ss:$8 sps:$4 sm:$0xff]  }
 0x8ea   :  { %2813 = vmatpush1.bf16.msra.mxu1 %v5838_v4  ;;  %2854 = vmatpush1.bf16.msra.mxu0 %v5841_v5  ;;  %v5925_v4 = vld [vmem:[#allocation7 + $0x3e0] ss:$8 sps:$4 sm:$0xff]   ;;  %v5930_v5 = vld [vmem:[#allocation7 + $0x2f4] ss:$8 sps:$4 sm:$0xff]  }
 0x8eb   :  { %2814 = vmatprep.subr.bf16.mxu1 %v5846_v6  ;;  %2855 = vmatprep.subr.bf16.mxu0 %v5849_v7  ;;  %v5933_v6 = vld [vmem:[#allocation7 + $0x3f4] ss:$8 sps:$4 sm:$0xff]   ;;  %v5928_v7 = vld [vmem:[#allocation7 + $0x2f0] ss:$8 sps:$4 sm:$0xff]  }
 0x8ee   :  { %2815 = vmatpush1.bf16.msra.mxu1 %v5844_v8  ;;  %2856 = vmatpush1.bf16.msra.mxu0 %v5847_v9  ;;  %v5931_v8 = vld [vmem:[#allocation7 + $0x3f0] ss:$8 sps:$4 sm:$0xff]   ;;  %v5025_v9 = vld [vmem:[%s7019_s6 + $0x4] sm:$0xf] }
 0x8ef   :  { %2816 = vmatprep.subr.bf16.mxu1 %v5852_v10  ;;  %2857 = vmatprep.subr.bf16.mxu0 %v5855_v11  ;;  %v1987_v10 = vrot.slane %v5025_v9, %v6837_v41  ;;  %v1995_v11 = vrot.slane %v5025_v9, %v6880_v37 }
 0x8f2   :  { %2817 = vmatpush1.bf16.msra.mxu1 %v5850_v12  ;;  %2858 = vmatpush1.bf16.msra.mxu0 %v5853_v13  ;;  %v1991_v12 = vrot.slane %v5025_v9, %v6843_v43  ;;  %v1999_v13 = vrot.slane %v5025_v9, %v6886_v42  ;;  %v5960_v9 = vld [vmem:[#allocation2 + $0x284] ss:$8 sps:$4 sm:$0xff]  }
 0x8f3   :  { %2818 = vmatprep.subr.bf16.mxu1 %v5858_v14  ;;  %2859 = vmatprep.subr.bf16.mxu0 %v5861_v15 }
 0x8f6   :  { %2819 = vmatpush1.bf16.msra.mxu1 %v5856_v16  ;;  %2860 = vmatpush1.bf16.msra.mxu0 %v5859_v17 }
 0x8f7   :  { %2820 = vmatprep.subr.bf16.mxu1 %v5864_v18  ;;  %2861 = vmatprep.subr.bf16.mxu0 %v5867_v19 }
 0x8fa   :  { %2821 = vmatpush1.bf16.msra.mxu1 %v5862_v20  ;;  %2862 = vmatpush1.bf16.msra.mxu0 %v5865_v21 }
 0x8fb   :  { %2822 = vmatprep.subr.bf16.mxu1 %v5870_v22  ;;  %2863 = vmatprep.subr.bf16.mxu0 %v5873_v23 }
 0x8fe   :  { %2823 = vmatpush1.bf16.msra.mxu1 %v5868_v24  ;;  %2864 = vmatpush1.bf16.msra.mxu0 %v5871_v25 }
 0x8ff   :  { %2824 = vmatprep.subr.bf16.mxu1 %v5876_v26  ;;  %2865 = vmatprep.subr.bf16.mxu0 %v5879_v27 }
 0x902   :  { %2825 = vmatpush1.bf16.msra.mxu1 %v5874_v28  ;;  %2866 = vmatpush1.bf16.msra.mxu0 %v5877_v30 }
 0x903   :  { %2826 = vmatprep.subr.bf16.mxu1 %v5882_v29  ;;  %2867 = vmatprep.subr.bf16.mxu0 %v5885_v31 }
 0x906   :  { %2827 = vmatpush1.bf16.msra.mxu1 %v5880_v32  ;;  %2868 = vmatpush1.bf16.msra.mxu0 %v5883_v33 }
 0x907   :  { %2828 = vmatprep.subr.bf16.mxu1 %v5888_v34  ;;  %2869 = vmatprep.subr.bf16.mxu0 %v5891_v35  ;;  %v2476_v34 = vld [vmem:[#allocation9 + $0x2] sm:$0x3] }
 0x908   :  { %v2485_v35 = vrot.slane %v2476_v34, %v6837_v41 }
 0x90a   :  { %2829 = vmatpush1.bf16.msra.mxu1 %v5886_v36  ;;  %2870 = vmatpush1.bf16.msra.mxu0 %v5889_v38  ;;  %v2489_v36 = vrot.slane %v2476_v34, %v6843_v43 }
 0x90b   :  { %2830 = vmatprep.subr.bf16.mxu1 %v5894_v44  ;;  %2871 = vmatprep.subr.bf16.mxu0 %v5897_v45 }
 0x90e   :  { %2831 = vmatpush1.bf16.msra.mxu1 %v5892_v46  ;;  %2872 = vmatpush1.bf16.msra.mxu0 %v5895_v47 }
 0x90f   :  { %2832 = vmatprep.subr.bf16.mxu1 %v5900_v48  ;;  %2873 = vmatprep.subr.bf16.mxu0 %v5903_v49 }
 0x912   :  { %2833 = vmatpush1.bf16.msra.mxu1 %v5898_v50  ;;  %2874 = vmatpush1.bf16.msra.mxu0 %v5901_v51 }
 0x913   :  { %2834 = vmatprep.subr.bf16.mxu1 %v5906_v52  ;;  %2875 = vmatprep.subr.bf16.mxu0 %v5909_v53 }
 0x916   :  { %2835 = vmatpush1.bf16.msra.mxu1 %v5904_v54  ;;  %2876 = vmatpush1.bf16.msra.mxu0 %v5907_v55 }
 0x917   :  { %2836 = vmatprep.subr.bf16.mxu1 %v5912_v56  ;;  %2877 = vmatprep.subr.bf16.mxu0 %v5915_v57 }
 0x91a   :  { %2837 = vmatpush1.bf16.msra.mxu1 %v5910_v40  ;;  %2878 = vmatpush1.bf16.msra.mxu0 %v5913_v58  ;;  %v5934_v40 = vld [vmem:[#allocation2 + $0x200] ss:$8 sps:$4 sm:$0xff]   ;;  %v5936_v58 = vld [vmem:[#allocation2 + $0x204] ss:$8 sps:$4 sm:$0xff]  }
 0x91b   :  { %2838 = vmatprep.subr.bf16.mxu1 %v5918_v59  ;;  %2879 = vmatprep.subr.bf16.mxu0 %v5921_v60  ;;  %v5939_v59 = vld [vmem:[#allocation2 + $0x214] ss:$8 sps:$4 sm:$0xff]   ;;  %v5937_v60 = vld [vmem:[#allocation2 + $0x210] ss:$8 sps:$4 sm:$0xff]  }
 0x91e   :  { %2839 = vmatpush1.bf16.msra.mxu1 %v5916_v61  ;;  %2880 = vmatpush1.bf16.msra.mxu0 %v5919_v62  ;;  %v5942_v61 = vld [vmem:[#allocation2 + $0x224] ss:$8 sps:$4 sm:$0xff]   ;;  %v5940_v62 = vld [vmem:[#allocation2 + $0x220] ss:$8 sps:$4 sm:$0xff]  }
 0x91f   :  { %2840 = vmatprep.subr.bf16.mxu1 %v5924_v63  ;;  %2881 = vmatprep.subr.bf16.mxu0 %v5927_v2  ;;  %v5945_v63 = vld [vmem:[#allocation2 + $0x234] ss:$8 sps:$4 sm:$0xff]   ;;  %v5943_v2 = vld [vmem:[#allocation2 + $0x230] ss:$8 sps:$4 sm:$0xff]  }
 0x922   :  { %2841 = vmatpush1.bf16.msra.mxu1 %v5922_v3  ;;  %2882 = vmatpush1.bf16.msra.mxu0 %v5925_v4  ;;  %v5951_v3 = vld [vmem:[#allocation2 + $0x254] ss:$8 sps:$4 sm:$0xff]   ;;  %v5949_v4 = vld [vmem:[#allocation2 + $0x250] ss:$8 sps:$4 sm:$0xff]  }
 0x923   :  { %2842 = vmatprep.subr.bf16.mxu1 %v5930_v5  ;;  %2883 = vmatprep.subr.bf16.mxu0 %v5933_v6  ;;  %v5954_v5 = vld [vmem:[#allocation2 + $0x264] ss:$8 sps:$4 sm:$0xff]   ;;  %v5952_v6 = vld [vmem:[#allocation2 + $0x260] ss:$8 sps:$4 sm:$0xff]  }
 0x926   :  { %2843 = vmatpush1.bf16.msra.mxu1 %v5928_v7  ;;  %2884 = vmatpush1.bf16.msra.mxu0 %v5931_v8  ;;  %v5957_v7 = vld [vmem:[#allocation2 + $0x274] ss:$8 sps:$4 sm:$0xff]   ;;  %v5955_v8 = vld [vmem:[#allocation2 + $0x270] ss:$8 sps:$4 sm:$0xff]  }
 0x927   :  { %3150 = vmatprep.subr.bf16.mxu1 %v5936_v58 }
 0x9bc   :  { %v2358_v14 = vpop.f32.mrb[12].mxu1  ;;  %v2399_v15 = vpop.f32.mrb[16].mxu0 }
 0x9bd   :  { %v2359_v16 = vadd.f32 %v2358_v14, %v1987_v10  ;;  %v2400_v17 = vadd.f32 %v2399_v15, %v1995_v11  ;;  %v2360_v18 = vpop.f32.mrb[13].mxu1  ;;  %v2401_v19 = vpop.f32.mrb[17].mxu0  ;;  %v5958_v10 = vld [vmem:[#allocation2 + $0x280] ss:$8 sps:$4 sm:$0xff]   ;;  %v5963_v11 = vld [vmem:[#allocation2 + $0x294] ss:$8 sps:$4 sm:$0xff]  }
 0x9be   :  { %v2361_v20 = vadd.f32 %v2360_v18, %v1991_v12  ;;  %v2402_v21 = vadd.f32 %v2401_v19, %v1999_v13  ;;  %v2362_v22 = vpop.f32.mrb[14].mxu1  ;;  %v2403_v23 = vpop.f32.mrb[18].mxu0  ;;  %v5961_v12 = vld [vmem:[#allocation2 + $0x290] ss:$8 sps:$4 sm:$0xff]  }
 0x9bf   :  { %v2406_v24 = vmax.f32 %v2359_v16, 0.0  ;;  %v2408_v25 = vmax.f32 %v2400_v17, 0.0  ;;  %v2363_v26 = vpop.f32.mrb[15].mxu1  ;;  %v2404_v27 = vpop.f32.mrb[19].mxu0  ;;  %v5969_v22 = vld [vmem:[#allocation2 + $0x2b4] ss:$8 sps:$4 sm:$0xff]  }
 0x9c0   :  { %v2407_v28 = vmax.f32 %v2361_v20, 0.0  ;;  %v2409_v30 = vmax.f32 %v2402_v21, 0.0  ;;  %v5966_v20 = vld [vmem:[#allocation2 + $0x2a4] ss:$8 sps:$4 sm:$0xff]   ;;  %v5964_v21 = vld [vmem:[#allocation2 + $0x2a0] ss:$8 sps:$4 sm:$0xff]  }
 0x9c1   :  { %v2477_v32 = vpack.c.bf16 %v2406_v24, %v2406_v24  ;;  %v2479_v33 = vpack.c.bf16 %v2408_v25, %v2408_v25  ;;  %v5967_v23 = vld [vmem:[#allocation2 + $0x2b0] ss:$8 sps:$4 sm:$0xff]   ;;  %v5972_v24 = vld [vmem:[#allocation2 + $0x2c4] ss:$8 sps:$4 sm:$0xff]   ;;  %v5970_v25 = vld [vmem:[#allocation2 + $0x2c0] ss:$8 sps:$4 sm:$0xff]  }
 0x9c2   :  { %v2478_v29 = vpack.c.bf16 %v2407_v28, %v2407_v28  ;;  %v2480_v31 = vpack.c.bf16 %v2409_v30, %v2409_v30  ;;  %v5975_v26 = vld [vmem:[#allocation2 + $0x2d4] ss:$8 sps:$4 sm:$0xff]   ;;  %v5973_v27 = vld [vmem:[#allocation2 + $0x2d0] ss:$8 sps:$4 sm:$0xff]   ;;  %v5978_v28 = vld [vmem:[#allocation2 + $0x2e4] ss:$8 sps:$4 sm:$0xff]  }
 0x9c3   :  { %v5976_v30 = vld [vmem:[#allocation2 + $0x2e0] ss:$8 sps:$4 sm:$0xff]  }
 0x9c4   :  { %2844 = vmatprep.mubr.bf16.mxu1 %v2478_v29  ;;  %2885 = vmatprep.mubr.bf16.mxu0 %v2480_v31  ;;  %v5981_v29 = vld [vmem:[#allocation2 + $0x2f4] ss:$8 sps:$4 sm:$0xff]   ;;  %v5979_v31 = vld [vmem:[#allocation2 + $0x2f0] ss:$8 sps:$4 sm:$0xff]  }
 0x9c5   :  { %2845 = vmatmul.mubr.bf16.vlgmr.msra.gmra.mrb[16].mxu1 %v2477_v32  ;;  %2886 = vmatmul.mubr.bf16.vlgmr.msra.gmra.mrb[20].mxu0 %v2479_v33 }
 0x9c6   :  { %3151 = vmatpush1.bf16.msra.mxu1 %v5934_v40 }
 0x9c7   :  { %3152 = vmatprep.subr.bf16.mxu1 %v5939_v59 }
 0x9ca   :  { %3153 = vmatpush1.bf16.msra.mxu1 %v5937_v60 }
 0x9cb   :  { %3154 = vmatprep.subr.bf16.mxu1 %v5942_v61 }
 0x9ce   :  { %3155 = vmatpush1.bf16.msra.mxu1 %v5940_v62 }
 0x9cf   :  { %3156 = vmatprep.subr.bf16.mxu1 %v5945_v63 }
 0x9d2   :  { %3157 = vmatpush1.bf16.msra.mxu1 %v5943_v2 }
 0xa98   :  { %v2846_v38 = vpop.f32.mrb[16].mxu1  ;;  %v2887_v44 = vpop.f32.mrb[20].mxu0 }
 0xa99   :  { %v2847_v45 = vadd.f32 %v2846_v38, %v2485_v35  ;;  %v2848_v46 = vpop.f32.mrb[17].mxu1  ;;  %v2889_v47 = vpop.f32.mrb[21].mxu0  ;;  %v2897_v35 = vld [vmem:[#allocation10 + $0x6] sm:$0x3] }
 0xa9a   :  { %v2849_v48 = vadd.f32 %v2848_v46, %v2489_v36  ;;  %v2850_v49 = vpop.f32.mrb[18].mxu1  ;;  %v2891_v50 = vpop.f32.mrb[22].mxu0  ;;  %v2899_v36 = vld [vmem:[#allocation12 + $0x6] sm:$0x3]  ;;  %v2920_v38 = vrot.slane %v2897_v35, %v6837_v41 }
 0xa9b   :  { %v2888_v51 = vadd.f32 %v2887_v44, %v2847_v45  ;;  %v2851_v52 = vpop.f32.mrb[19].mxu1  ;;  %v2892_v53 = vpop.f32.mrb[23].mxu0  ;;  %v2924_v44 = vrot.slane %v2897_v35, %v6843_v43  ;;  %v2937_v49 = vrot.slane %v2899_v36, %v6843_v43  ;;  %v6032_v35 = vld [vmem:[#allocation6 + $0x504] ss:$16 sps:$4 sm:$0xff]  }
 0xa9c   :  { %v2890_v54 = vadd.f32 %v2889_v47, %v2849_v48  ;;  %v2933_v48 = vrot.slane %v2899_v36, %v6837_v41  ;;  %v6035_v36 = vld [vmem:[#allocation6 + $0x50c] ss:$16 sps:$4 sm:$0xff]  }
 0xa9d   :  { %v2894_v55 = vadd.f32 %v2888_v51, %v6926_v1  ;;  %v5948_v1 = vld [vmem:[#allocation2 + $0x244] ss:$8 sps:$4 sm:$0xff]  }
 0xa9e   :  { %v2895_v56 = vadd.f32 %v2890_v54, %v6924_v0  ;;  %v5946_v0 = vld [vmem:[#allocation2 + $0x240] ss:$8 sps:$4 sm:$0xff]   ;;  %3158 = vmatprep.subr.bf16.mxu1 %v5948_v1 }
 0xa9f   :  { %3159 = vmatpush1.bf16.msra.mxu1 %v5946_v0 }
 0xaa0   :  { %v2900_v57 = vadd.f32 %v2895_v56, %v2894_v55  ;;  %3160 = vmatprep.subr.bf16.mxu1 %v5951_v3  ;;  %v5982_v3 = vld [vmem:[#allocation6 + $0x400] ss:$16 sps:$4 sm:$0xff]  }
 0xaa2   :  { %2901 = vadd.xlane.f32.xlu0 %v2900_v57 }
 0xaa3   :  { %3161 = vmatpush1.bf16.msra.mxu1 %v5949_v4  ;;  %v5984_v4 = vld [vmem:[#allocation6 + $0x404] ss:$16 sps:$4 sm:$0xff]  }
 0xaa4   :  { %3162 = vmatprep.subr.bf16.mxu1 %v5954_v5  ;;  %v5985_v5 = vld [vmem:[#allocation6 + $0x408] ss:$16 sps:$4 sm:$0xff]   ;;  %3649 = vmatprep.subr.bf16.mxu0 %v5984_v4  ;;  %v6065_v4 = vld [vmem:[#allocation6 + $0x5ac] ss:$16 sps:$4 sm:$0xff]  }
 0xaa5   :  { %3650 = vmatpush1.bf16.msra.mxu0 %v5982_v3  ;;  %v6062_v3 = vld [vmem:[#allocation6 + $0x5a4] ss:$16 sps:$4 sm:$0xff]  }
 0xaa7   :  { %3163 = vmatpush1.bf16.msra.mxu1 %v5952_v6  ;;  %v5987_v6 = vld [vmem:[#allocation6 + $0x40c] ss:$16 sps:$4 sm:$0xff]  }
 0xaa8   :  { %3164 = vmatprep.subr.bf16.mxu1 %v5957_v7  ;;  %v5990_v7 = vld [vmem:[#allocation6 + $0x424] ss:$16 sps:$4 sm:$0xff]  }
 0xaa9   :  { %3651 = vmatprep.subr.bf16.mxu0 %v5990_v7  ;;  %v6068_v7 = vld [vmem:[#allocation6 + $0x5c4] ss:$16 sps:$4 sm:$0xff]  }
 0xaab   :  { %3165 = vmatpush1.bf16.msra.mxu1 %v5955_v8  ;;  %v5993_v8 = vld [vmem:[#allocation6 + $0x42c] ss:$16 sps:$4 sm:$0xff]  }
 0xaac   :  { %3166 = vmatprep.subr.bf16.mxu1 %v5960_v9  ;;  %v5988_v9 = vld [vmem:[#allocation6 + $0x420] ss:$16 sps:$4 sm:$0xff]  }
 0xaad   :  { %3652 = vmatpush1.bf16.msra.mxu0 %v5988_v9  ;;  %v6066_v9 = vld [vmem:[#allocation6 + $0x5c0] ss:$16 sps:$4 sm:$0xff]  }
 0xaaf   :  { %3167 = vmatpush1.bf16.msra.mxu1 %v5958_v10  ;;  %v5991_v10 = vld [vmem:[#allocation6 + $0x428] ss:$16 sps:$4 sm:$0xff]  }
 0xab0   :  { %3168 = vmatprep.subr.bf16.mxu1 %v5963_v11  ;;  %v5996_v11 = vld [vmem:[#allocation6 + $0x444] ss:$16 sps:$4 sm:$0xff]  }
 0xab1   :  { %3653 = vmatprep.subr.bf16.mxu0 %v5996_v11  ;;  %v6074_v11 = vld [vmem:[#allocation6 + $0x5e4] ss:$16 sps:$4 sm:$0xff]  }
 0xab3   :  { %3169 = vmatpush1.bf16.msra.mxu1 %v5961_v12  ;;  %v5999_v12 = vld [vmem:[#allocation6 + $0x44c] ss:$16 sps:$4 sm:$0xff]  }
 0xab4   :  { %3170 = vmatprep.subr.bf16.mxu1 %v5966_v20  ;;  %v6011_v20 = vld [vmem:[#allocation6 + $0x48c] ss:$16 sps:$4 sm:$0xff]  }
 0xab7   :  { %3171 = vmatpush1.bf16.msra.mxu1 %v5964_v21  ;;  %v6006_v21 = vld [vmem:[#allocation6 + $0x480] ss:$16 sps:$4 sm:$0xff]  }
 0xab8   :  { %3172 = vmatprep.subr.bf16.mxu1 %v5969_v22  ;;  %v6009_v22 = vld [vmem:[#allocation6 + $0x488] ss:$16 sps:$4 sm:$0xff]  }
 0xabb   :  { %3173 = vmatpush1.bf16.msra.mxu1 %v5967_v23  ;;  %v6014_v23 = vld [vmem:[#allocation6 + $0x4a4] ss:$16 sps:$4 sm:$0xff]  }
 0xabc   :  { %3174 = vmatprep.subr.bf16.mxu1 %v5972_v24  ;;  %v6017_v24 = vld [vmem:[#allocation6 + $0x4ac] ss:$16 sps:$4 sm:$0xff]  }
 0xabf   :  { %3175 = vmatpush1.bf16.msra.mxu1 %v5970_v25  ;;  %v6012_v25 = vld [vmem:[#allocation6 + $0x4a0] ss:$16 sps:$4 sm:$0xff]  }
 0xac0   :  { %3176 = vmatprep.subr.bf16.mxu1 %v5975_v26  ;;  %v6015_v26 = vld [vmem:[#allocation6 + $0x4a8] ss:$16 sps:$4 sm:$0xff]  }
 0xac3   :  { %3177 = vmatpush1.bf16.msra.mxu1 %v5973_v27  ;;  %v6020_v27 = vld [vmem:[#allocation6 + $0x4c4] ss:$16 sps:$4 sm:$0xff]  }
 0xac4   :  { %3178 = vmatprep.subr.bf16.mxu1 %v5978_v28  ;;  %v6023_v28 = vld [vmem:[#allocation6 + $0x4cc] ss:$16 sps:$4 sm:$0xff]  }
 0xac7   :  { %3179 = vmatpush1.bf16.msra.mxu1 %v5976_v30  ;;  %v6018_v30 = vld [vmem:[#allocation6 + $0x4c0] ss:$16 sps:$4 sm:$0xff]  }
 0xac8   :  { %3180 = vmatprep.subr.bf16.mxu1 %v5981_v29  ;;  %v6021_v29 = vld [vmem:[#allocation6 + $0x4c8] ss:$16 sps:$4 sm:$0xff]  }
 0xacb   :  { %3181 = vmatpush1.bf16.msra.mxu1 %v5979_v31  ;;  %v6026_v31 = vld [vmem:[#allocation6 + $0x4e4] ss:$16 sps:$4 sm:$0xff]  }
 0xacc   :  { %3690 = vmatprep.subr.bf16.mxu1 %v5987_v6  ;;  %v6063_v6 = vld [vmem:[#allocation6 + $0x5a8] ss:$16 sps:$4 sm:$0xff]  }
 0xb2f   :  { %v2902_v13 = vpop.xlane.xlu0 %2901 }
 0xb30   :  { %v2903_v14 = vmul.f32 0.00390625, %v2902_v13  ;;  %v5994_v13 = vld [vmem:[#allocation6 + $0x440] ss:$16 sps:$4 sm:$0xff]  }
 0xb31   :  { %3654 = vmatpush1.bf16.msra.mxu0 %v5994_v13  ;;  %v6072_v13 = vld [vmem:[#allocation6 + $0x5e0] ss:$16 sps:$4 sm:$0xff]  }
 0xb32   :  { %v2904_v15 = vsub.f32 %v2894_v55, %v2903_v14  ;;  %v2905_v16 = vsub.f32 %v2895_v56, %v2903_v14  ;;  %v2976_v56 = vld [vmem:[#allocation4 + $0x4] sm:$0x3]  ;;  %v5997_v14 = vld [vmem:[#allocation6 + $0x448] ss:$16 sps:$4 sm:$0xff]  }
 0xb33   :  { %v2983_v57 = vrot.slane %v2976_v56, %v6837_v41  ;;  %v2987_v40 = vrot.slane %v2976_v56, %v6843_v43  ;;  %v6044_v56 = vld [vmem:[#allocation6 + $0x544] ss:$16 sps:$4 sm:$0xff]  }
 0xb34   :  { %v2906_v17 = vmul.f32 %v2904_v15, %v2904_v15  ;;  %v2907_v18 = vmul.f32 %v2905_v16, %v2905_v16 }
 0xb36   :  { %v2908_v19 = vadd.f32 %v2907_v18, %v2906_v17  ;;  %v6000_v17 = vld [vmem:[#allocation6 + $0x460] ss:$16 sps:$4 sm:$0xff]   ;;  %v6003_v18 = vld [vmem:[#allocation6 + $0x468] ss:$16 sps:$4 sm:$0xff]  }
 0xb38   :  { %2909 = vadd.xlane.f32.xlu1 %v2908_v19  ;;  %v6008_v19 = vld [vmem:[#allocation6 + $0x484] ss:$16 sps:$4 sm:$0xff]  }
 0xbc5   :  { %v2910_v32 = vpop.xlane.xlu1 %2909 }
 0xbc6   :  { %v2911_v33 = vmul.f32 0.00390625, %v2910_v32  ;;  %v6029_v32 = vld [vmem:[#allocation6 + $0x4ec] ss:$16 sps:$4 sm:$0xff]  }
 0xbc8   :  { %v2912_v34 = vadd.f32 1e-05, %v2911_v33  ;;  %v6024_v33 = vld [vmem:[#allocation6 + $0x4e0] ss:$16 sps:$4 sm:$0xff]  }
 0xbca   :  { %6252 = vrsqrt.f32 %v2912_v34  ;;  %v6027_v34 = vld [vmem:[#allocation6 + $0x4e8] ss:$16 sps:$4 sm:$0xff]  }
 0xbd4   :  { %v6253_v45 = vpop.eup %6252 }
 0xbd5   :  { %v2914_v46 = vmul.f32 %v6253_v45, %v2904_v15  ;;  %v2915_v47 = vmul.f32 %v6253_v45, %v2905_v16  ;;  %v6002_v15 = vld [vmem:[#allocation6 + $0x464] ss:$16 sps:$4 sm:$0xff]   ;;  %v6005_v16 = vld [vmem:[#allocation6 + $0x46c] ss:$16 sps:$4 sm:$0xff]  }
 0xbd6   :  { %3655 = vmatprep.subr.bf16.mxu0 %v6002_v15  ;;  %v6038_v45 = vld [vmem:[#allocation6 + $0x524] ss:$16 sps:$4 sm:$0xff]  }
 0xbd7   :  { %v2928_v50 = vmul.f32 %v2924_v44, %v2915_v47  ;;  %v2927_v51 = vmul.f32 %v2920_v38, %v2914_v46  ;;  %3656 = vmatpush1.bf16.msra.mxu0 %v6000_v17  ;;  %v6030_v38 = vld [vmem:[#allocation6 + $0x500] ss:$16 sps:$4 sm:$0xff]   ;;  %v6033_v44 = vld [vmem:[#allocation6 + $0x508] ss:$16 sps:$4 sm:$0xff]   ;;  %v6041_v46 = vld [vmem:[#allocation6 + $0x52c] ss:$16 sps:$4 sm:$0xff]  }
 0xbd8   :  { %3657 = vmatprep.subr.bf16.mxu0 %v6008_v19  ;;  %v6036_v47 = vld [vmem:[#allocation6 + $0x520] ss:$16 sps:$4 sm:$0xff]   ;;  %v6080_v15 = vld [vmem:[#allocation7 + $0x404] ss:$8 sps:$4 sm:$0xff]  }
 0xbd9   :  { %v2941_v52 = vadd.f32 %v2937_v49, %v2928_v50  ;;  %v2940_v53 = vadd.f32 %v2933_v48, %v2927_v51  ;;  %v6039_v48 = vld [vmem:[#allocation6 + $0x528] ss:$16 sps:$4 sm:$0xff]  }
 0xbdb   :  { %v2978_v54 = vpack.c.bf16 %v2941_v52, %v2941_v52  ;;  %v2977_v55 = vpack.c.bf16 %v2940_v53, %v2940_v53  ;;  %3658 = vmatpush1.bf16.msra.mxu0 %v6006_v21  ;;  %v3196_v21 = vld [vmem:[#allocation12 + $0x8] sm:$0x3] }
 0xbdc   :  { %3659 = vmatprep.subr.bf16.mxu0 %v6014_v23 }
 0xbdd   :  { %3182 = vmatprep.mubr.bf16.mxu1 %v2978_v54 }
 0xbde   :  { %3183 = vmatmul.mubr.bf16.vlgmr.msra.gmra.mrb[20].mxu1 %v2977_v55 }
 0xbdf   :  { %3691 = vmatpush1.bf16.msra.mxu1 %v5985_v5  ;;  %3660 = vmatpush1.bf16.msra.mxu0 %v6012_v25  ;;  %v6060_v5 = vld [vmem:[#allocation6 + $0x5a0] ss:$16 sps:$4 sm:$0xff]  }
 0xbe0   :  { %3692 = vmatprep.subr.bf16.mxu1 %v5993_v8  ;;  %3661 = vmatprep.subr.bf16.mxu0 %v6020_v27  ;;  %v6071_v8 = vld [vmem:[#allocation6 + $0x5cc] ss:$16 sps:$4 sm:$0xff]   ;;  %v3230_v27 = vrot.slane %v3196_v21, %v6837_v41 }
 0xbe3   :  { %3693 = vmatpush1.bf16.msra.mxu1 %v5991_v10  ;;  %3662 = vmatpush1.bf16.msra.mxu0 %v6018_v30  ;;  %v6069_v10 = vld [vmem:[#allocation6 + $0x5c8] ss:$16 sps:$4 sm:$0xff]  }
 0xbe4   :  { %3694 = vmatprep.subr.bf16.mxu1 %v5999_v12  ;;  %3663 = vmatprep.subr.bf16.mxu0 %v6026_v31  ;;  %v6077_v12 = vld [vmem:[#allocation6 + $0x5ec] ss:$16 sps:$4 sm:$0xff]  }
 0xbe7   :  { %3695 = vmatpush1.bf16.msra.mxu1 %v5997_v14  ;;  %3664 = vmatpush1.bf16.msra.mxu0 %v6024_v33  ;;  %v6075_v14 = vld [vmem:[#allocation6 + $0x5e8] ss:$16 sps:$4 sm:$0xff]  }
 0xbe8   :  { %3696 = vmatprep.subr.bf16.mxu1 %v6005_v16  ;;  %3665 = vmatprep.subr.bf16.mxu0 %v6032_v35  ;;  %v6083_v16 = vld [vmem:[#allocation7 + $0x504] ss:$8 sps:$4 sm:$0xff]   ;;  %v6078_v35 = vld [vmem:[#allocation7 + $0x400] ss:$8 sps:$4 sm:$0xff]  }
 0xbeb   :  { %3697 = vmatpush1.bf16.msra.mxu1 %v6003_v18  ;;  %3666 = vmatpush1.bf16.msra.mxu0 %v6030_v38  ;;  %v6086_v38 = vld [vmem:[#allocation7 + $0x414] ss:$8 sps:$4 sm:$0xff]  }
 0xbec   :  { %3698 = vmatprep.subr.bf16.mxu1 %v6011_v20  ;;  %3667 = vmatprep.subr.bf16.mxu0 %v6038_v45  ;;  %v3194_v20 = vld [vmem:[#allocation10 + $0x8] sm:$0x3]  ;;  %v6084_v45 = vld [vmem:[#allocation7 + $0x410] ss:$8 sps:$4 sm:$0xff]  }
 0xbed   :  { %v3221_v23 = vrot.slane %v3194_v20, %v6843_v43 }
 0xbef   :  { %3699 = vmatpush1.bf16.msra.mxu1 %v6009_v22  ;;  %3668 = vmatpush1.bf16.msra.mxu0 %v6036_v47  ;;  %v3217_v22 = vrot.slane %v3194_v20, %v6837_v41  ;;  %v6092_v47 = vld [vmem:[#allocation7 + $0x424] ss:$8 sps:$4 sm:$0xff]   ;;  %v6144_v20 = vld [vmem:[#allocation7 + $0x4b0] ss:$8 sps:$4 sm:$0xff]  }
 0xbf0   :  { %3700 = vmatprep.subr.bf16.mxu1 %v6017_v24  ;;  %3669 = vmatprep.subr.bf16.mxu0 %v6044_v56  ;;  %v6107_v56 = vld [vmem:[#allocation7 + $0x544] ss:$8 sps:$4 sm:$0xff]  }
 0xbf3   :  { %3701 = vmatpush1.bf16.msra.mxu1 %v6015_v26 }
 0xbf4   :  { %3702 = vmatprep.subr.bf16.mxu1 %v6023_v28  ;;  %v3234_v28 = vrot.slane %v3196_v21, %v6843_v43  ;;  %v6147_v21 = vld [vmem:[#allocation7 + $0x5b0] ss:$8 sps:$4 sm:$0xff]  }
 0xbf7   :  { %3703 = vmatpush1.bf16.msra.mxu1 %v6021_v29 }
 0xbf8   :  { %3704 = vmatprep.subr.bf16.mxu1 %v6029_v32 }
 0xbfb   :  { %3705 = vmatpush1.bf16.msra.mxu1 %v6027_v34 }
 0xbfc   :  { %3706 = vmatprep.subr.bf16.mxu1 %v6035_v36  ;;  %v6081_v36 = vld [vmem:[#allocation7 + $0x500] ss:$8 sps:$4 sm:$0xff]  }
 0xbff   :  { %3707 = vmatpush1.bf16.msra.mxu1 %v6033_v44  ;;  %v6089_v44 = vld [vmem:[#allocation7 + $0x514] ss:$8 sps:$4 sm:$0xff]  }
 0xc00   :  { %3708 = vmatprep.subr.bf16.mxu1 %v6041_v46  ;;  %v6087_v46 = vld [vmem:[#allocation7 + $0x510] ss:$8 sps:$4 sm:$0xff]  }
 0xc03   :  { %3709 = vmatpush1.bf16.msra.mxu1 %v6039_v48  ;;  %v6095_v48 = vld [vmem:[#allocation7 + $0x524] ss:$8 sps:$4 sm:$0xff]  }
 0xcb1   :  { %v3184_v58 = vpop.f32.mrb[20].mxu1 }
 0xcb2   :  { %v3185_v59 = vadd.f32 %v3184_v58, %v2983_v57  ;;  %v3186_v60 = vpop.f32.mrb[21].mxu1  ;;  %v6047_v57 = vld [vmem:[#allocation6 + $0x54c] ss:$16 sps:$4 sm:$0xff]   ;;  %v6045_v58 = vld [vmem:[#allocation6 + $0x548] ss:$16 sps:$4 sm:$0xff]  }
 0xcb3   :  { %v3187_v61 = vadd.f32 %v3186_v60, %v2987_v40  ;;  %v3188_v62 = vpop.f32.mrb[22].mxu1  ;;  %v6042_v40 = vld [vmem:[#allocation6 + $0x540] ss:$16 sps:$4 sm:$0xff]   ;;  %3710 = vmatprep.subr.bf16.mxu1 %v6047_v57  ;;  %v6053_v60 = vld [vmem:[#allocation6 + $0x56c] ss:$16 sps:$4 sm:$0xff]  }
 0xcb4   :  { %v6949_v63 = vadd.f32 %v3185_v59, %v2940_v53  ;;  %v3189_v2 = vpop.f32.mrb[23].mxu1  ;;  %3670 = vmatpush1.bf16.msra.mxu0 %v6042_v40  ;;  %3711 = vmatpush1.bf16.msra.mxu1 %v6045_v58  ;;  %v6050_v59 = vld [vmem:[#allocation6 + $0x564] ss:$16 sps:$4 sm:$0xff]   ;;  %v6051_v62 = vld [vmem:[#allocation6 + $0x568] ss:$16 sps:$4 sm:$0xff]  }
 0xcb5   :  { %v6951_v1 = vadd.f32 %v3187_v61, %v2941_v52  ;;  %v6048_v61 = vld [vmem:[#allocation6 + $0x560] ss:$16 sps:$4 sm:$0xff]   ;;  %3671 = vmatprep.subr.bf16.mxu0 %v6050_v59  ;;  %3712 = vmatprep.subr.bf16.mxu1 %v6053_v60  ;;  %v6059_v2 = vld [vmem:[#allocation6 + $0x58c] ss:$16 sps:$4 sm:$0xff]  }
 0xcb6   :  { %v6102_v57 = vld [vmem:[#allocation7 + $0x440] ss:$8 sps:$4 sm:$0xff]   ;;  %v6110_v58 = vld [vmem:[#allocation7 + $0x454] ss:$8 sps:$4 sm:$0xff]   ;;  %v6108_v60 = vld [vmem:[#allocation7 + $0x450] ss:$8 sps:$4 sm:$0xff]  }
 0xcb7   :  { %v3197_v0 = vadd.f32 %v6951_v1, %v6949_v63  ;;  %v6105_v40 = vld [vmem:[#allocation7 + $0x540] ss:$8 sps:$4 sm:$0xff]   ;;  %v6113_v59 = vld [vmem:[#allocation7 + $0x554] ss:$8 sps:$4 sm:$0xff]  }
 0xcb8   :  { %3672 = vmatpush1.bf16.msra.mxu0 %v6048_v61  ;;  %3713 = vmatpush1.bf16.msra.mxu1 %v6051_v62  ;;  %v6111_v61 = vld [vmem:[#allocation7 + $0x550] ss:$8 sps:$4 sm:$0xff]   ;;  %v6116_v62 = vld [vmem:[#allocation7 + $0x464] ss:$8 sps:$4 sm:$0xff]  }
 0xcb9   :  { %3198 = vadd.xlane.f32.xlu0 %v3197_v0  ;;  %v6057_v0 = vld [vmem:[#allocation6 + $0x588] ss:$16 sps:$4 sm:$0xff]   ;;  %3714 = vmatprep.subr.bf16.mxu1 %v6059_v2 }
 0xcba   :  { %v6114_v2 = vld [vmem:[#allocation7 + $0x460] ss:$8 sps:$4 sm:$0xff]  }
 0xcbc   :  { %3715 = vmatpush1.bf16.msra.mxu1 %v6057_v0  ;;  %v6122_v0 = vld [vmem:[#allocation7 + $0x474] ss:$8 sps:$4 sm:$0xff]  }
 0xcbd   :  { %3716 = vmatprep.subr.bf16.mxu1 %v6065_v4  ;;  %v6120_v4 = vld [vmem:[#allocation7 + $0x470] ss:$8 sps:$4 sm:$0xff]  }
 0xcc0   :  { %3717 = vmatpush1.bf16.msra.mxu1 %v6063_v6  ;;  %v6128_v6 = vld [vmem:[#allocation7 + $0x484] ss:$8 sps:$4 sm:$0xff]  }
 0xcc1   :  { %3718 = vmatprep.subr.bf16.mxu1 %v6071_v8  ;;  %v6126_v8 = vld [vmem:[#allocation7 + $0x480] ss:$8 sps:$4 sm:$0xff]  }
 0xcc4   :  { %3719 = vmatpush1.bf16.msra.mxu1 %v6069_v10  ;;  %v6134_v10 = vld [vmem:[#allocation7 + $0x494] ss:$8 sps:$4 sm:$0xff]  }
 0xcc5   :  { %3720 = vmatprep.subr.bf16.mxu1 %v6077_v12  ;;  %v6132_v12 = vld [vmem:[#allocation7 + $0x490] ss:$8 sps:$4 sm:$0xff]  }
 0xcc8   :  { %3721 = vmatpush1.bf16.msra.mxu1 %v6075_v14  ;;  %v6140_v14 = vld [vmem:[#allocation7 + $0x4a4] ss:$8 sps:$4 sm:$0xff]  }
 0xcc9   :  { %4178 = vmatprep.subr.bf16.mxu1 %v6083_v16  ;;  %v6138_v16 = vld [vmem:[#allocation7 + $0x4a0] ss:$8 sps:$4 sm:$0xff]  }
 0xd46   :  { %v3199_v49 = vpop.xlane.xlu0 %3198 }
 0xd47   :  { %v3200_v50 = vmul.f32 0.00390625, %v3199_v49  ;;  %v6090_v49 = vld [vmem:[#allocation7 + $0x420] ss:$8 sps:$4 sm:$0xff]  }
 0xd49   :  { %v6956_v51 = vsub.f32 %v6949_v63, %v3200_v50  ;;  %v6959_v52 = vsub.f32 %v6951_v1, %v3200_v50  ;;  %v6056_v63 = vld [vmem:[#allocation6 + $0x584] ss:$16 sps:$4 sm:$0xff]   ;;  %v6054_v1 = vld [vmem:[#allocation6 + $0x580] ss:$16 sps:$4 sm:$0xff]  }
 0xd4a   :  { %3673 = vmatprep.subr.bf16.mxu0 %v6056_v63  ;;  %v6093_v50 = vld [vmem:[#allocation7 + $0x520] ss:$8 sps:$4 sm:$0xff]   ;;  %v6119_v63 = vld [vmem:[#allocation7 + $0x564] ss:$8 sps:$4 sm:$0xff]  }
 0xd4b   :  { %v3203_v53 = vmul.f32 %v6956_v51, %v6956_v51  ;;  %v3204_v54 = vmul.f32 %v6959_v52, %v6959_v52  ;;  %3674 = vmatpush1.bf16.msra.mxu0 %v6054_v1  ;;  %v6117_v1 = vld [vmem:[#allocation7 + $0x560] ss:$8 sps:$4 sm:$0xff]  }
 0xd4c   :  { %3675 = vmatprep.subr.bf16.mxu0 %v6062_v3  ;;  %v6125_v3 = vld [vmem:[#allocation7 + $0x574] ss:$8 sps:$4 sm:$0xff]  }
 0xd4d   :  { %v3205_v55 = vadd.f32 %v3204_v54, %v3203_v53  ;;  %v6096_v53 = vld [vmem:[#allocation7 + $0x430] ss:$8 sps:$4 sm:$0xff]  }
 0xd4e   :  { %v6099_v54 = vld [vmem:[#allocation7 + $0x530] ss:$8 sps:$4 sm:$0xff]  }
 0xd4f   :  { %3206 = vadd.xlane.f32.xlu1 %v3205_v55  ;;  %3676 = vmatpush1.bf16.msra.mxu0 %v6060_v5  ;;  %v6104_v55 = vld [vmem:[#allocation7 + $0x444] ss:$8 sps:$4 sm:$0xff]   ;;  %v6123_v5 = vld [vmem:[#allocation7 + $0x570] ss:$8 sps:$4 sm:$0xff]  }
 0xd50   :  { %3677 = vmatprep.subr.bf16.mxu0 %v6068_v7  ;;  %v6131_v7 = vld [vmem:[#allocation7 + $0x584] ss:$8 sps:$4 sm:$0xff]  }
 0xd53   :  { %3678 = vmatpush1.bf16.msra.mxu0 %v6066_v9  ;;  %v6129_v9 = vld [vmem:[#allocation7 + $0x580] ss:$8 sps:$4 sm:$0xff]  }
 0xd54   :  { %3679 = vmatprep.subr.bf16.mxu0 %v6074_v11  ;;  %v6137_v11 = vld [vmem:[#allocation7 + $0x594] ss:$8 sps:$4 sm:$0xff]  }
 0xd57   :  { %3680 = vmatpush1.bf16.msra.mxu0 %v6072_v13  ;;  %v6135_v13 = vld [vmem:[#allocation7 + $0x590] ss:$8 sps:$4 sm:$0xff]  }
 0xd58   :  { %4137 = vmatprep.subr.bf16.mxu0 %v6080_v15  ;;  %v6143_v15 = vld [vmem:[#allocation7 + $0x5a4] ss:$8 sps:$4 sm:$0xff]  }
 0xddc   :  { %v3207_v17 = vpop.xlane.xlu1 %3206 }
 0xddd   :  { %v3208_v18 = vmul.f32 0.00390625, %v3207_v17  ;;  %v6141_v17 = vld [vmem:[#allocation7 + $0x5a0] ss:$8 sps:$4 sm:$0xff]  }
 0xddf   :  { %v3209_v19 = vadd.f32 1e-05, %v3208_v18  ;;  %v6146_v18 = vld [vmem:[#allocation7 + $0x4b4] ss:$8 sps:$4 sm:$0xff]  }
 0xde1   :  { %6254 = vrsqrt.f32 %v3209_v19  ;;  %v6149_v19 = vld [vmem:[#allocation7 + $0x5b4] ss:$8 sps:$4 sm:$0xff]  }
 0xdeb   :  { %v6255_v24 = vpop.eup %6254 }
 0xdec   :  { %v3211_v25 = vmul.f32 %v6255_v24, %v6956_v51  ;;  %v3212_v26 = vmul.f32 %v6255_v24, %v6959_v52  ;;  %v6098_v51 = vld [vmem:[#allocation7 + $0x434] ss:$8 sps:$4 sm:$0xff]   ;;  %v6150_v24 = vld [vmem:[#allocation7 + $0x4c0] ss:$8 sps:$4 sm:$0xff]  }
 0xded   :  { %v6101_v52 = vld [vmem:[#allocation7 + $0x534] ss:$8 sps:$4 sm:$0xff]  }
 0xdee   :  { %v3225_v30 = vmul.f32 %v3221_v23, %v3212_v26  ;;  %v3224_v29 = vmul.f32 %v3217_v22, %v3211_v25  ;;  %v6152_v22 = vld [vmem:[#allocation7 + $0x4c4] ss:$8 sps:$4 sm:$0xff]   ;;  %v6153_v25 = vld [vmem:[#allocation7 + $0x5c0] ss:$8 sps:$4 sm:$0xff]   ;;  %v6158_v26 = vld [vmem:[#allocation7 + $0x4d4] ss:$8 sps:$4 sm:$0xff]  }
 0xdef   :  { %v6155_v23 = vld [vmem:[#allocation7 + $0x5c4] ss:$8 sps:$4 sm:$0xff]  }
 0xdf0   :  { %v6971_v31 = vadd.f32 %v3234_v28, %v3225_v30  ;;  %v6973_v32 = vadd.f32 %v3230_v27, %v3224_v29  ;;  %v6161_v27 = vld [vmem:[#allocation7 + $0x5d4] ss:$8 sps:$4 sm:$0xff]   ;;  %v6156_v28 = vld [vmem:[#allocation7 + $0x4d0] ss:$8 sps:$4 sm:$0xff]   ;;  %v6164_v29 = vld [vmem:[#allocation7 + $0x4e4] ss:$8 sps:$4 sm:$0xff]  }
 0xdf1   :  { %v6159_v30 = vld [vmem:[#allocation7 + $0x5d0] ss:$8 sps:$4 sm:$0xff]  }
 0xdf2   :  { %v3307_v33 = vpack.c.bf16 %v6971_v31, %v6971_v31  ;;  %v3306_v34 = vpack.c.bf16 %v6973_v32, %v6973_v32 }
 0xdf4   :  { %3681 = vmatprep.mubr.bf16.mxu0 %v3307_v33  ;;  %3722 = vmatprep.mubr.bf16.mxu1 %v3307_v33  ;;  %v6167_v33 = vld [vmem:[#allocation7 + $0x5e4] ss:$8 sps:$4 sm:$0xff]  }
 0xdf5   :  { %3682 = vmatmul.mubr.bf16.vlgmr.msra.gmra.mrb[24].mxu0 %v3306_v34  ;;  %3723 = vmatmul.mubr.bf16.vlgmr.msra.gmra.mrb[24].mxu1 %v3306_v34  ;;  %v6162_v34 = vld [vmem:[#allocation7 + $0x4e0] ss:$8 sps:$4 sm:$0xff]  }
 0xdf6   :  { %4138 = vmatpush1.bf16.msra.mxu0 %v6078_v35  ;;  %4179 = vmatpush1.bf16.msra.mxu1 %v6081_v36  ;;  %v6165_v35 = vld [vmem:[#allocation7 + $0x5e0] ss:$8 sps:$4 sm:$0xff]   ;;  %v6170_v36 = vld [vmem:[#allocation7 + $0x4f4] ss:$8 sps:$4 sm:$0xff]  }
 0xdf7   :  { %4139 = vmatprep.subr.bf16.mxu0 %v6086_v38  ;;  %4180 = vmatprep.subr.bf16.mxu1 %v6089_v44  ;;  %v6173_v38 = vld [vmem:[#allocation7 + $0x5f4] ss:$8 sps:$4 sm:$0xff]   ;;  %v6168_v44 = vld [vmem:[#allocation7 + $0x4f0] ss:$8 sps:$4 sm:$0xff]  }
 0xdfa   :  { %4140 = vmatpush1.bf16.msra.mxu0 %v6084_v45  ;;  %4181 = vmatpush1.bf16.msra.mxu1 %v6087_v46  ;;  %v6171_v45 = vld [vmem:[#allocation7 + $0x5f0] ss:$8 sps:$4 sm:$0xff]   ;;  %v5186_v46 = vld [vmem:[%s7019_s6 + $0x8] sm:$0xf] }
 0xdfb   :  { %4141 = vmatprep.subr.bf16.mxu0 %v6092_v47  ;;  %4182 = vmatprep.subr.bf16.mxu1 %v6095_v48  ;;  %v3312_v47 = vrot.slane %v5186_v46, %v6837_v41  ;;  %v3320_v48 = vrot.slane %v5186_v46, %v6880_v37 }
 0xdfe   :  { %4142 = vmatpush1.bf16.msra.mxu0 %v6090_v49  ;;  %4183 = vmatpush1.bf16.msra.mxu1 %v6093_v50  ;;  %v3316_v49 = vrot.slane %v5186_v46, %v6843_v43  ;;  %v3324_v50 = vrot.slane %v5186_v46, %v6886_v42  ;;  %v6203_v46 = vld [vmem:[#allocation13 + $0x94] ss:$8 sps:$4 sm:$0xff]  }
 0xdff   :  { %4143 = vmatprep.subr.bf16.mxu0 %v6098_v51  ;;  %4184 = vmatprep.subr.bf16.mxu1 %v6101_v52 }
 0xe02   :  { %4144 = vmatpush1.bf16.msra.mxu0 %v6096_v53  ;;  %4185 = vmatpush1.bf16.msra.mxu1 %v6099_v54 }
 0xe03   :  { %4145 = vmatprep.subr.bf16.mxu0 %v6104_v55  ;;  %4186 = vmatprep.subr.bf16.mxu1 %v6107_v56 }
 0xe06   :  { %4146 = vmatpush1.bf16.msra.mxu0 %v6102_v57  ;;  %4187 = vmatpush1.bf16.msra.mxu1 %v6105_v40 }
 0xe07   :  { %4147 = vmatprep.subr.bf16.mxu0 %v6110_v58  ;;  %4188 = vmatprep.subr.bf16.mxu1 %v6113_v59 }
 0xe0a   :  { %4148 = vmatpush1.bf16.msra.mxu0 %v6108_v60  ;;  %4189 = vmatpush1.bf16.msra.mxu1 %v6111_v61 }
 0xe0b   :  { %4149 = vmatprep.subr.bf16.mxu0 %v6116_v62  ;;  %4190 = vmatprep.subr.bf16.mxu1 %v6119_v63 }
 0xe0e   :  { %4150 = vmatpush1.bf16.msra.mxu0 %v6114_v2  ;;  %4191 = vmatpush1.bf16.msra.mxu1 %v6117_v1 }
 0xe0f   :  { %4151 = vmatprep.subr.bf16.mxu0 %v6122_v0  ;;  %4192 = vmatprep.subr.bf16.mxu1 %v6125_v3 }
 0xe12   :  { %4152 = vmatpush1.bf16.msra.mxu0 %v6120_v4  ;;  %4193 = vmatpush1.bf16.msra.mxu1 %v6123_v5  ;;  %v3801_v4 = vld [vmem:[#allocation9 + $0x4] sm:$0x3] }
 0xe13   :  { %4153 = vmatprep.subr.bf16.mxu0 %v6128_v6  ;;  %4194 = vmatprep.subr.bf16.mxu1 %v6131_v7  ;;  %v3810_v5 = vrot.slane %v3801_v4, %v6837_v41  ;;  %v3814_v6 = vrot.slane %v3801_v4, %v6843_v43  ;;  %v6226_v4 = vld [vmem:[#allocation15 + $0x50] sm:$0xff]  }
 0xe16   :  { %4154 = vmatpush1.bf16.msra.mxu0 %v6126_v8  ;;  %4195 = vmatpush1.bf16.msra.mxu1 %v6129_v9 }
 0xe17   :  { %4155 = vmatprep.subr.bf16.mxu0 %v6134_v10  ;;  %4196 = vmatprep.subr.bf16.mxu1 %v6137_v11 }
 0xe1a   :  { %4156 = vmatpush1.bf16.msra.mxu0 %v6132_v12  ;;  %4197 = vmatpush1.bf16.msra.mxu1 %v6135_v13 }
 0xe1b   :  { %4157 = vmatprep.subr.bf16.mxu0 %v6140_v14  ;;  %4198 = vmatprep.subr.bf16.mxu1 %v6143_v15 }
 0xe1e   :  { %4158 = vmatpush1.bf16.msra.mxu0 %v6138_v16  ;;  %4199 = vmatpush1.bf16.msra.mxu1 %v6141_v17 }
 0xe1f   :  { %4159 = vmatprep.subr.bf16.mxu0 %v6146_v18  ;;  %4200 = vmatprep.subr.bf16.mxu1 %v6149_v19 }
 0xe22   :  { %4160 = vmatpush1.bf16.msra.mxu0 %v6144_v20  ;;  %4201 = vmatpush1.bf16.msra.mxu1 %v6147_v21 }
 0xe23   :  { %4161 = vmatprep.subr.bf16.mxu0 %v6152_v22  ;;  %4202 = vmatprep.subr.bf16.mxu1 %v6155_v23  ;;  %v6174_v22 = vld [vmem:[#allocation13] ss:$8 sps:$4 sm:$0xff]   ;;  %v6176_v23 = vld [vmem:[#allocation13 + $0x4] ss:$8 sps:$4 sm:$0xff]  }
 0xe26   :  { %4162 = vmatpush1.bf16.msra.mxu0 %v6150_v24  ;;  %4203 = vmatpush1.bf16.msra.mxu1 %v6153_v25  ;;  %v6179_v24 = vld [vmem:[#allocation13 + $0x14] ss:$8 sps:$4 sm:$0xff]   ;;  %v6177_v25 = vld [vmem:[#allocation13 + $0x10] ss:$8 sps:$4 sm:$0xff]  }
 0xe27   :  { %4163 = vmatprep.subr.bf16.mxu0 %v6158_v26  ;;  %4204 = vmatprep.subr.bf16.mxu1 %v6161_v27  ;;  %v6182_v26 = vld [vmem:[#allocation13 + $0x24] ss:$8 sps:$4 sm:$0xff]   ;;  %v6180_v27 = vld [vmem:[#allocation13 + $0x20] ss:$8 sps:$4 sm:$0xff]  }
 0xe2a   :  { %4164 = vmatpush1.bf16.msra.mxu0 %v6156_v28  ;;  %4205 = vmatpush1.bf16.msra.mxu1 %v6159_v30  ;;  %v6185_v28 = vld [vmem:[#allocation13 + $0x34] ss:$8 sps:$4 sm:$0xff]   ;;  %v6183_v30 = vld [vmem:[#allocation13 + $0x30] ss:$8 sps:$4 sm:$0xff]  }
 0xe2b   :  { %4165 = vmatprep.subr.bf16.mxu0 %v6164_v29  ;;  %4206 = vmatprep.subr.bf16.mxu1 %v6167_v33  ;;  %v6191_v29 = vld [vmem:[#allocation13 + $0x54] ss:$8 sps:$4 sm:$0xff]   ;;  %v6189_v33 = vld [vmem:[#allocation13 + $0x50] ss:$8 sps:$4 sm:$0xff]  }
 0xe2e   :  { %4166 = vmatpush1.bf16.msra.mxu0 %v6162_v34  ;;  %4207 = vmatpush1.bf16.msra.mxu1 %v6165_v35  ;;  %v6194_v34 = vld [vmem:[#allocation13 + $0x64] ss:$8 sps:$4 sm:$0xff]   ;;  %v6192_v35 = vld [vmem:[#allocation13 + $0x60] ss:$8 sps:$4 sm:$0xff]  }
 0xe2f   :  { %4167 = vmatprep.subr.bf16.mxu0 %v6170_v36  ;;  %4208 = vmatprep.subr.bf16.mxu1 %v6173_v38  ;;  %v6197_v36 = vld [vmem:[#allocation13 + $0x74] ss:$8 sps:$4 sm:$0xff]   ;;  %v6195_v38 = vld [vmem:[#allocation13 + $0x70] ss:$8 sps:$4 sm:$0xff]  }
 0xe32   :  { %4168 = vmatpush1.bf16.msra.mxu0 %v6168_v44  ;;  %4209 = vmatpush1.bf16.msra.mxu1 %v6171_v45  ;;  %v6200_v44 = vld [vmem:[#allocation13 + $0x84] ss:$8 sps:$4 sm:$0xff]   ;;  %v6198_v45 = vld [vmem:[#allocation13 + $0x80] ss:$8 sps:$4 sm:$0xff]  }
 0xe33   :  { %4473 = vmatprep.subr.bf16.mxu0 %v6176_v23 }
 0xec8   :  { %v3683_v51 = vpop.f32.mrb[24].mxu0  ;;  %v3724_v52 = vpop.f32.mrb[24].mxu1 }
 0xec9   :  { %v3684_v53 = vadd.f32 %v3683_v51, %v3312_v47  ;;  %v3725_v54 = vadd.f32 %v3724_v52, %v3320_v48  ;;  %v3685_v55 = vpop.f32.mrb[25].mxu0  ;;  %v3726_v56 = vpop.f32.mrb[25].mxu1  ;;  %v6201_v47 = vld [vmem:[#allocation13 + $0x90] ss:$8 sps:$4 sm:$0xff]  }
 0xeca   :  { %v3686_v57 = vadd.f32 %v3685_v55, %v3316_v49  ;;  %v3727_v40 = vadd.f32 %v3726_v56, %v3324_v50  ;;  %v3687_v58 = vpop.f32.mrb[26].mxu0  ;;  %v3728_v59 = vpop.f32.mrb[26].mxu1  ;;  %v6206_v55 = vld [vmem:[#allocation13 + $0xa4] ss:$8 sps:$4 sm:$0xff]   ;;  %v6204_v56 = vld [vmem:[#allocation13 + $0xa0] ss:$8 sps:$4 sm:$0xff]  }
 0xecb   :  { %v3731_v60 = vmax.f32 %v3684_v53, 0.0  ;;  %v3733_v61 = vmax.f32 %v3725_v54, 0.0  ;;  %v3688_v62 = vpop.f32.mrb[27].mxu0  ;;  %v3729_v63 = vpop.f32.mrb[27].mxu1  ;;  %v6212_v58 = vld [vmem:[#allocation13 + $0xc4] ss:$8 sps:$4 sm:$0xff]  }
 0xecc   :  { %v3732_v2 = vmax.f32 %v3686_v57, 0.0  ;;  %v3734_v37 = vmax.f32 %v3727_v40, 0.0  ;;  %v6209_v57 = vld [vmem:[#allocation13 + $0xb4] ss:$8 sps:$4 sm:$0xff]   ;;  %v6207_v40 = vld [vmem:[#allocation13 + $0xb0] ss:$8 sps:$4 sm:$0xff]  }
 0xecd   :  { %v3802_v3 = vpack.c.bf16 %v3731_v60, %v3731_v60  ;;  %v3804_v42 = vpack.c.bf16 %v3733_v61, %v3733_v61  ;;  %v6210_v59 = vld [vmem:[#allocation13 + $0xc0] ss:$8 sps:$4 sm:$0xff]   ;;  %v6215_v60 = vld [vmem:[#allocation13 + $0xd4] ss:$8 sps:$4 sm:$0xff]   ;;  %v6213_v61 = vld [vmem:[#allocation13 + $0xd0] ss:$8 sps:$4 sm:$0xff]  }
 0xece   :  { %v3803_v1 = vpack.c.bf16 %v3732_v2, %v3732_v2  ;;  %v3805_v0 = vpack.c.bf16 %v3734_v37, %v3734_v37  ;;  %v6218_v62 = vld [vmem:[#allocation13 + $0xe4] ss:$8 sps:$4 sm:$0xff]   ;;  %v6216_v63 = vld [vmem:[#allocation13 + $0xe0] ss:$8 sps:$4 sm:$0xff]   ;;  %v6221_v2 = vld [vmem:[#allocation13 + $0xf4] ss:$8 sps:$4 sm:$0xff]  }
 0xecf   :  { %v6219_v37 = vld [vmem:[#allocation13 + $0xf0] ss:$8 sps:$4 sm:$0xff]  }
 0xed0   :  { %4169 = vmatprep.mubr.bf16.mxu0 %v3803_v1  ;;  %4210 = vmatprep.mubr.bf16.mxu1 %v3805_v0  ;;  %v6222_v1 = vld [vmem:[#allocation15 + $0x40] sm:$0xff]  }
 0xed1   :  { %4170 = vmatmul.mubr.bf16.vlgmr.msra.gmra.mrb[28].mxu0 %v3802_v3  ;;  %4211 = vmatmul.mubr.bf16.vlgmr.msra.gmra.mrb[28].mxu1 %v3804_v42  ;;  %v6223_v0 = vld [vmem:[#allocation15] sm:$0xff]   ;;  %v6224_v3 = vld [vmem:[#allocation15 + $0x48] sm:$0xff]  }
 0xed2   :  { %4474 = vmatpush1.bf16.msra.mxu0 %v6174_v22  ;;  %5374 = vmatprep.subr.bf16.mxu1 %v6222_v1  ;;  %v6225_v42 = vld [vmem:[#allocation15 + $0x8] sm:$0xff]  }
 0xed3   :  { %4475 = vmatprep.subr.bf16.mxu0 %v6179_v24  ;;  %5375 = vmatpush3.bf16.msra.mxu1 %v6223_v0 }
 0xed4   :  { %5376 = vmatprep.subr.bf16.mxu1 %v6224_v3  ;;  %v5364_v3 = vld [vmem:[#allocation19] ss:$0 sm:$0xff] }
 0xed6   :  { %4476 = vmatpush1.bf16.msra.mxu0 %v6177_v25 }
 0xed7   :  { %4477 = vmatprep.subr.bf16.mxu0 %v6182_v26  ;;  %5377 = vmatpush3.bf16.msra.mxu1 %v6225_v42 }
 0xed8   :  { %5378 = vmatprep.subr.bf16.mxu1 %v6226_v4 }
 0xeda   :  { %4478 = vmatpush1.bf16.msra.mxu0 %v6180_v27 }
 0xedb   :  { %4479 = vmatprep.subr.bf16.mxu0 %v6185_v28 }
 0xede   :  { %4480 = vmatpush1.bf16.msra.mxu0 %v6183_v30 }
 0xfa4   :  { %v4171_v7 = vpop.f32.mrb[28].mxu0  ;;  %v4212_v8 = vpop.f32.mrb[28].mxu1 }
 0xfa5   :  { %v4172_v9 = vadd.f32 %v4171_v7, %v3810_v5  ;;  %v4173_v10 = vpop.f32.mrb[29].mxu0  ;;  %v4214_v11 = vpop.f32.mrb[29].mxu1  ;;  %v6227_v5 = vld [vmem:[#allocation15 + $0x10] sm:$0xff]   ;;  %v6229_v7 = vld [vmem:[#allocation15 + $0x18] sm:$0xff]  }
 0xfa6   :  { %v4174_v12 = vadd.f32 %v4173_v10, %v3814_v6  ;;  %v4175_v13 = vpop.f32.mrb[30].mxu0  ;;  %v4216_v14 = vpop.f32.mrb[30].mxu1  ;;  %v6228_v6 = vld [vmem:[#allocation15 + $0x58] sm:$0xff]   ;;  %5379 = vmatpush3.bf16.msra.mxu1 %v6227_v5  ;;  %v6232_v10 = vld [vmem:[#allocation15 + $0x68] sm:$0xff]  }
 0xfa7   :  { %v4213_v15 = vadd.f32 %v4212_v8, %v4172_v9  ;;  %v4176_v16 = vpop.f32.mrb[31].mxu0  ;;  %v4217_v17 = vpop.f32.mrb[31].mxu1  ;;  %5380 = vmatprep.subr.bf16.mxu1 %v6228_v6  ;;  %v6230_v8 = vld [vmem:[#allocation15 + $0x60] sm:$0xff]  }
 0xfa8   :  { %v4215_v18 = vadd.f32 %v4214_v11, %v4174_v12  ;;  %v6231_v9 = vld [vmem:[#allocation15 + $0x20] sm:$0xff]   ;;  %v6233_v11 = vld [vmem:[#allocation15 + $0x28] sm:$0xff]   ;;  %v4224_v16 = vld [vmem:[#allocation12 + $0xa] sm:$0x3] }
 0xfa9   :  { %v4219_v19 = vadd.f32 %v4213_v15, %v6973_v32  ;;  %v6188_v32 = vld [vmem:[#allocation13 + $0x44] ss:$8 sps:$4 sm:$0xff]   ;;  %v4222_v15 = vld [vmem:[#allocation10 + $0xa] sm:$0x3]  ;;  %v4258_v22 = vrot.slane %v4224_v16, %v6837_v41  ;;  %v4262_v23 = vrot.slane %v4224_v16, %v6843_v43 }
 0xfaa   :  { %v4220_v20 = vadd.f32 %v4215_v18, %v6971_v31  ;;  %v6186_v31 = vld [vmem:[#allocation13 + $0x40] ss:$8 sps:$4 sm:$0xff]   ;;  %4481 = vmatprep.subr.bf16.mxu0 %v6188_v32  ;;  %5381 = vmatpush3.bf16.msra.mxu1 %v6229_v7  ;;  %v4245_v17 = vrot.slane %v4222_v15, %v6837_v41  ;;  %v4249_v18 = vrot.slane %v4222_v15, %v6843_v43  ;;  %v6234_v32 = vld [vmem:[#allocation15 + $0x70] sm:$0xff]  }
 0xfab   :  { %4482 = vmatpush1.bf16.msra.mxu0 %v6186_v31  ;;  %5382 = vmatprep.subr.bf16.mxu1 %v6230_v8  ;;  %v6235_v31 = vld [vmem:[#allocation15 + $0x30] sm:$0xff]  }
 0xfac   :  { %v4225_v21 = vadd.f32 %v4220_v20, %v4219_v19  ;;  %4483 = vmatprep.subr.bf16.mxu0 %v6191_v29  ;;  %v6236_v29 = vld [vmem:[#allocation15 + $0x78] sm:$0xff]  }
 0xfae   :  { %4226 = vadd.xlane.f32.xlu0 %v4225_v21  ;;  %5383 = vmatpush3.bf16.msra.mxu1 %v6231_v9 }
 0xfaf   :  { %4484 = vmatpush1.bf16.msra.mxu0 %v6189_v33  ;;  %5384 = vmatprep.subr.bf16.mxu1 %v6232_v10  ;;  %v6237_v33 = vld [vmem:[#allocation15 + $0x38] sm:$0xff]  }
 0xfb0   :  { %4485 = vmatprep.subr.bf16.mxu0 %v6194_v34  ;;  %v6238_v34 = vld [vmem:[#allocation18] sm:$0xff]  }
 0xfb2   :  { %5385 = vmatpush3.bf16.msra.mxu1 %v6233_v11  ;;  %v4807_v11 = vand.u32 127, %v224_v39 }
 0xfb3   :  { %4486 = vmatpush1.bf16.msra.mxu0 %v6192_v35  ;;  %5386 = vmatprep.subr.bf16.mxu1 %v6234_v32  ;;  %v6561_v35 = vmov 0.0  }
 0xfb4   :  { %4487 = vmatprep.subr.bf16.mxu0 %v6197_v36  ;;  %v6239_v36 = vld [vmem:[#allocation18 + $0x8] sm:$0xff]   ;;  %vm4808_vm2 = vcmp.lt.s32.totalorder %v4807_v11, 4 }
 0xfb6   :  { %5387 = vmatpush3.bf16.msra.mxu1 %v6235_v31 }
 0xfb7   :  { %4488 = vmatpush1.bf16.msra.mxu0 %v6195_v38  ;;  %5388 = vmatprep.subr.bf16.mxu1 %v6236_v29  ;;  %v6240_v38 = vld [vmem:[#allocation18 + $0x10] sm:$0xff]  }
 0xfb8   :  { %4489 = vmatprep.subr.bf16.mxu0 %v6200_v44  ;;  %v6241_v44 = vld [vmem:[#allocation18 + $0x18] sm:$0xff]  }
 0xfba   :  { %5389 = vmatpush3.bf16.msra.mxu1 %v6237_v33 }
 0xfbb   :  { %4490 = vmatpush1.bf16.msra.mxu0 %v6198_v45  ;;  %v6242_v45 = vld [vmem:[#allocation18 + $0x20] sm:$0xff]  }
 0xfbc   :  { %4491 = vmatprep.subr.bf16.mxu0 %v6203_v46  ;;  %v6243_v46 = vld [vmem:[#allocation18 + $0x28] sm:$0xff]  }
 0xfbf   :  { %4492 = vmatpush1.bf16.msra.mxu0 %v6201_v47  ;;  %v4299_v47 = vld [vmem:[%s7025_s12] sm:$0x3] }
 0xfc0   :  { %4493 = vmatprep.subr.bf16.mxu0 %v6206_v55 }
 0xfc3   :  { %4494 = vmatpush1.bf16.msra.mxu0 %v6204_v56 }
 0xfc4   :  { %4495 = vmatprep.subr.bf16.mxu0 %v6209_v57 }
 0xfc7   :  { %4496 = vmatpush1.bf16.msra.mxu0 %v6207_v40 }
 0xfc8   :  { %4497 = vmatprep.subr.bf16.mxu0 %v6212_v58 }
 0xfcb   :  { %4498 = vmatpush1.bf16.msra.mxu0 %v6210_v59  ;;  %v6244_v59 = vld [vmem:[#allocation18 + $0x30] sm:$0xff]  }
 0xfcc   :  { %4499 = vmatprep.subr.bf16.mxu0 %v6215_v60  ;;  %v6245_v60 = vld [vmem:[#allocation18 + $0x38] sm:$0xff]  }
 0xfcf   :  { %4500 = vmatpush1.bf16.msra.mxu0 %v6213_v61 }
 0xfd0   :  { %4501 = vmatprep.subr.bf16.mxu0 %v6218_v62 }
 0xfd3   :  { %4502 = vmatpush1.bf16.msra.mxu0 %v6216_v63 }
 0xfd4   :  { %4503 = vmatprep.subr.bf16.mxu0 %v6221_v2 }
 0xfd7   :  { %4504 = vmatpush1.bf16.msra.mxu0 %v6219_v37 }
 0xfd8   :  { %5405 = vmatprep.subr.bf16.mxu0 %v6561_v35 }
0x103b   :  { %v4227_v48 = vpop.xlane.xlu0 %4226 }
0x103c   :  { %v4228_v49 = vmul.f32 0.00390625, %v4227_v48  ;;  %v4306_v48 = vrot.slane %v4299_v47, %v6837_v41 }
0x103e   :  { %v6990_v50 = vsub.f32 %v4219_v19, %v4228_v49  ;;  %v6992_v51 = vsub.f32 %v4220_v20, %v4228_v49  ;;  %v4310_v49 = vrot.slane %v4299_v47, %v6843_v43  ;;  %v5347_v43 = vld [vmem:[#allocation16] ss:$0 sm:$0xff] }
0x1040   :  { %v4231_v52 = vmul.f32 %v6990_v50, %v6990_v50  ;;  %v4232_v53 = vmul.f32 %v6992_v51, %v6992_v51 }
0x1042   :  { %v4233_v54 = vadd.f32 %v4232_v53, %v4231_v52 }
0x1044   :  { %4234 = vadd.xlane.f32.xlu1 %v4233_v54 }
0x10d1   :  { %v4235_v12 = vpop.xlane.xlu1 %4234 }
0x10d2   :  { %v4236_v13 = vmul.f32 0.00390625, %v4235_v12 }
0x10d4   :  { %v4237_v14 = vadd.f32 1e-05, %v4236_v13 }
0x10d6   :  { %6256 = vrsqrt.f32 %v4237_v14 }
0x10e0   :  { %v6257_v19 = vpop.eup %6256 }
0x10e1   :  { %v4239_v20 = vmul.f32 %v6257_v19, %v6990_v50  ;;  %v4240_v21 = vmul.f32 %v6257_v19, %v6992_v51 }
0x10e3   :  { %v4253_v24 = vmul.f32 %v4249_v18, %v4240_v21  ;;  %v4252_v25 = vmul.f32 %v4245_v17, %v4239_v20 }
0x10e5   :  { %v4266_v26 = vadd.f32 %v4262_v23, %v4253_v24  ;;  %v4265_v27 = vadd.f32 %v4258_v22, %v4252_v25 }
0x10e7   :  { %v4301_v28 = vpack.c.bf16 %v4266_v26, %v4266_v26  ;;  %v4300_v30 = vpack.c.bf16 %v4265_v27, %v4265_v27 }
0x10e9   :  { %4505 = vmatprep.mubr.bf16.mxu0 %v4301_v28 }
0x10ea   :  { %4506 = vmatmul.mubr.bf16.vlgmr.msra.gmra.mrb[32].mxu0 %v4300_v30 }
0x10eb   :  { %5406 = vmatpush3.bf16.msra.mxu0 %v6238_v34  ;;  %5421 = vmatprep.mubr.msk.bf16.mxu0 %vm6562_vm1, %v6561_v35 }
0x10ec   :  { %5407 = vmatprep.subr.bf16.mxu0 %v6561_v35 }
0x10ef   :  { %5408 = vmatpush3.bf16.msra.mxu0 %v6239_v36 }
0x10f0   :  { %5409 = vmatprep.subr.bf16.mxu0 %v6561_v35 }
0x10f3   :  { %5410 = vmatpush3.bf16.msra.mxu0 %v6240_v38 }
0x10f4   :  { %5411 = vmatprep.subr.bf16.mxu0 %v6561_v35 }
0x10f7   :  { %5412 = vmatpush3.bf16.msra.mxu0 %v6241_v44 }
0x10f8   :  { %5413 = vmatprep.subr.bf16.mxu0 %v6561_v35 }
0x10fb   :  { %5414 = vmatpush3.bf16.msra.mxu0 %v6242_v45 }
0x10fc   :  { %5415 = vmatprep.subr.bf16.mxu0 %v6561_v35 }
0x10ff   :  { %5416 = vmatpush3.bf16.msra.mxu0 %v6243_v46 }
0x1100   :  { %5417 = vmatprep.subr.bf16.mxu0 %v6561_v35 }
0x1103   :  { %5418 = vmatpush3.bf16.msra.mxu0 %v6244_v59 }
0x1104   :  { %5419 = vmatprep.subr.bf16.mxu0 %v6561_v35 }
0x1107   :  { %5420 = vmatpush3.bf16.msra.mxu0 %v6245_v60 }
0x11bd   :  { %v4507_v50 = vpop.f32.mrb[32].mxu0 }
0x11be   :  { %v4508_v51 = vadd.f32 %v4507_v50, %v4306_v48  ;;  %v4509_v52 = vpop.f32.mrb[33].mxu0 }
0x11bf   :  { %v4510_v53 = vadd.f32 %v4509_v52, %v4310_v49  ;;  %v4511_v54 = vpop.f32.mrb[34].mxu0 }
0x11c0   :  { %v4514_v55 = vmax.f32 %v4508_v51, 0.0  ;;  %v4512_v56 = vpop.f32.mrb[35].mxu0 }
0x11c1   :  { %v4515_v57 = vmax.f32 %v4510_v53, 0.0 }
0x11c2   :  { %v4549_v58 = vpack.c.bf16 %v4514_v55, %v4514_v55 }
0x11c3   :  { %v4550_v40 = vpack.c.bf16 %v4515_v57, %v4515_v57 }
0x11c5   :  { %4685 = vmatprep.mubr.bf16.mxu1 %v4550_v40 }
0x11c6   :  { %4686 = vmatmul.mubr.bf16.vlgmr.msra.gmra.mrb[32].mxu1 %v4549_v58 }
0x1299   :  { %v5390_v41 = vpop.f32.mrb[32].mxu1 }
0x129a   :  { %v5391_v61 = vpop.f32.mrb[33].mxu1 }
0x129b   :  { %v5392_v62 = vadd.f32 %v5391_v61, %v5390_v41  ;;  %v5393_v63 = vpop.f32.mrb[34].mxu1 }
0x129c   :  { %v5394_v2 = vpop.f32.mrb[35].mxu1 }
0x129d   :  { %v4688_v37 = vadd.f32 %v5392_v62, %v5347_v43 }
0x129f   :  { %v4693_v1 = vmax.f32 %v4688_v37, 0.0 }
0x12a1   :  { %v4711_v0 = vpack.c.bf16 %v4693_v1, %v4693_v1 }
0x12a3   :  { %5422 = vmatmul.mubr.bf16.vlgmr.msra.gmra.mrb[36].mxu0 %v4711_v0 }
0x1376   :  { %v4800_v42 = vpop.f32.mrb[36].mxu0 }
0x1377   :  { %v4801_v4 = vadd.f32 %v5364_v3, %v4800_v42  ;;  %v5423_v5 = vpop.f32.mrb[37].mxu0 }
0x1378   :  { %v4803_v6 = vpop.f32.mrb[38].mxu0 }
0x1379   :  { %v5373_v7 = vmul.f32 -1.442695, %v4801_v4  ;;  %v5424_v8 = vpop.f32.mrb[39].mxu0 }
0x137b   :  { %6258 = vpow2.f32 %v5373_v7 }
0x1385   :  { %v6259_v9 = vpop.eup %6258 }
0x1386   :  { %v4812_v10 = vadd.f32 1.0, %v6259_v9 }
0x1388   :  { %6260 = vrcp.f32 %v4812_v10 }
0x1392   :  { %v6261_v12 = vpop.eup %6260 }
0x1393   :  { %v4815_v13 = vsel %vm4808_vm2, %v6261_v12, %v4801_v4 }
0x1394   :  { %4816 = vst [vmem:[%s7037_s22] sm:$0xff] %v4815_v13 }
0x1395   :  { %4821 = vsyncpa [#allocation3], 1 }
0x1396   :  { %4822 = vsyncpa [#allocation5], 1 }
0x1397   :  { %4823 = vsyncpa [#allocation8], 1 }
0x1398   :  { %4824 = vsyncpa [#allocation11], 1 }
0x1399   :  { %4825 = vsyncpa [#allocation14], 1 }
0x139a   :  { %4826 = vsyncpa [#allocation17], 1 }
0x139b   :  { %4827 = vsyncpa [#allocation20], 1 }

</bundles_post_ra>
